<compile_context>
chip_gen: v5e
topology: v5e:2x2
jax: 0.10.0
libtpu: 0.0.40
codegen_flags: <defaults>
</compile_context>

<pallas_src>
import jax
import jax.numpy as jnp
from jax.experimental import pallas as pl
from jax.experimental.pallas import tpu as pltpu

K = 5  # kernel size of both ConvTranspose2d layers

# Per-axis taps of ConvTranspose(k=5, s=2, p=1):
#   y[2m]   = x[m]*w[1]   + x[m-1]*w[3]
#   y[2m+1] = x[m+1]*w[0] + x[m]*w[2] + x[m-1]*w[4]
# entries: (input offset di, weight index kh)
_TAPS1 = {
    0: ((0, 1), (-1, 3)),           # even output phase
    1: ((1, 0), (0, 2), (-1, 4)),   # odd output phase
}

# Per-axis taps of conv2 expressed on the *phase planes* of v2
# (v2[2a] = even plane E[a], v2[2a+1] = odd plane O[a]).
# Output index o = 4q + class; entries: (v2 phase t: 0=E/1=O, plane offset dq, k)
_TAPS2 = {
    0: ((0, 0, 1), (1, -1, 3)),
    1: ((1, 0, 0), (0, 0, 2), (1, -1, 4)),
    2: ((1, 0, 1), (0, 0, 3)),
    3: ((0, 1, 0), (1, 0, 2), (0, 0, 4)),
}

# Distinct (phase, plane-offset) column combinations appearing in _TAPS2.
_COL_COMBOS = []
for _pc in range(4):
    for _t, _d, _k in _TAPS2[_pc]:
        if (_t, _d) not in _COL_COMBOS:
            _COL_COMBOS.append((_t, _d))


def _make_kernel(H, W, tq, C4):
    """Kernel closure over static shape parameters.

    xup_ref : (H+5, 4W+20) zero-padded, 4x column-upsampled input  [VMEM, resident]
              row r = 2 + x_row, lane 8 + 4*u + j = x[:, u]
    w*_ref  : (5, 5) ConvTranspose2d weights (un-flipped)           [SMEM]
    b*_ref  : (1,) biases                                           [SMEM]
    out_ref : (2, tq, 4, C4) block = one band of tq v2-rows,
              out[ch, q, pr, c] = v4[4*q + pr, c]  (both channels identical)
    """
    erows = tq + 2          # band rows incl. 1-row halo each side (v2 rows)
    elanes = C4 + 8         # lanes incl. 4-lane halo each side

    def kernel(xup_ref, w1_ref, b1_ref, w2_ref, b2_ref, out_ref):
        row0 = pl.program_id(0) * tq        # first v2-row (q index) of this band

        # ---- hoist all SMEM scalar reads once (review item: no per-tap reads) ----
        w1v = [[w1_ref[i, j] for j in range(K)] for i in range(K)]
        w2v = [[w2_ref[i, j] for j in range(K)] for i in range(K)]
        b1s = b1_ref[0]
        b2s = b2_ref[0]

        # ---- stage 1: conv1 + relu, evaluated on the 4x column-upsampled grid ----
        # local row l  in [0, erows)  maps to v2-row   a = row0 - 1 + l
        # local lane L in [0, elanes) maps to v2-col   u = L//4 - 1
        xs = {}
        for di in (-1, 0, 1):
            for dj in (-1, 0, 1):
                xs[(di, dj)] = xup_ref[pl.ds(row0 + 1 + di, erows),
                                       pl.ds(4 + 4 * dj, elanes)]

        a_idx = (jax.lax.broadcasted_iota(jnp.int32, (erows, elanes), 0)
                 + (row0 - 1))
        lam = jax.lax.broadcasted_iota(jnp.int32, (erows, elanes), 1)
        bias1 = jnp.full((erows, elanes), b1s, dtype=jnp.float32)   # built once

        qu = {}
        for tr in (0, 1):
            for tc in (0, 1):
                acc = bias1
                for di, kh in _TAPS1[tr]:
                    for dj, kw in _TAPS1[tc]:
                        acc = acc + xs[(di, dj)] * w1v[kh][kw]
                # zero outside the valid v2 extent (rows a in [0, H-tr],
                # cols u in [0, W-tc]); this also provides the conv2 halo.
                valid = ((a_idx >= 0) & (a_idx <= H - tr) &
                         (lam >= 4) & (lam < C4 + 4 - 4 * tc))
                qu[(tr, tc)] = jnp.where(valid, jnp.maximum(acc, 0.0), 0.0)

        # ---- stage 2: conv2 + relu, written directly in final interleaved layout ----
        pc_lane = jax.lax.broadcasted_iota(jnp.int32, (1, C4), 1) % 4
        bias2 = jnp.full((tq, C4), b2s, dtype=jnp.float32)          # built once

        # lane-periodic weight vectors: wvec[c] = w2[kh, kw] if column class
        # c%4 uses column tap (tc, dc, kw), else 0.  Built once, memoised.
        wvecs = {}

        def col_wvec(kh, tc, dc):
            key = (kh, tc, dc)
            if key not in wvecs:
                vec = jnp.zeros((1, C4), dtype=jnp.float32)
                for pc in range(4):
                    for t, d, kw in _TAPS2[pc]:
                        if t == tc and d == dc:
                            vec = vec + jnp.where(pc_lane == pc,
                                                  w2v[kh][kw], 0.0)
                wvecs[key] = vec
            return wvecs[key]

        # memoised shifted views of the (already lane-upsampled) v2 planes:
        # each distinct (plane, row-shift, col-shift) is materialised once.
        views = {}

        def qview(tr, tc, dr, dc):
            key = (tr, tc, dr, dc)
            if key not in views:
                views[key] = qu[(tr, tc)][1 + dr:1 + dr + tq,
                                          4 + 4 * dc:4 + 4 * dc + C4]
            return views[key]

        for pr in range(4):                                   # output row class
            acc = bias2
            for tr, dr, kh in _TAPS2[pr]:                     # row taps
                for tc, dc in _COL_COMBOS:                    # column taps (per-lane)
                    acc = acc + qview(tr, tc, dr, dc) * col_wvec(kh, tc, dc)
            res = jnp.maximum(acc, 0.0)
            # torch.cat([v4, v4], dim=1): both channels written in-kernel.
            # TODO(synk): these are sublane-stride-4 masked stores; building the
            # dense (4*tq, C4) row-interleaved band in registers needs a sublane
            # repack with no clean Mosaic lowering, so the strided store stays.
            out_ref[0, :, pr, :] = res
            out_ref[1, :, pr, :] = res

    return kernel


def _pick_band_rows(hq, lo=8, hi=64):
    """Largest divisor of hq in [lo, hi] giving >= 2 bands; else a single band."""
    cands = [d for d in range(lo, min(hi, hq // 2) + 1) if hq % d == 0]
    return max(cands) if cands else hq


def model_forward(x, w1, b1, w2, b2):
    """x: (1, 1, H, W) f32.  w*: (1, 1, 5, 5) ConvTranspose2d weights, b*: (1,).
    Returns (1, 2, 4H+4, 4W+4), matching Model.forward."""
    img = x[0, 0]
    H, W = img.shape
    hq, wq = H + 1, W + 1
    C4 = 4 * wq                      # final output width 4W+4
    tq = _pick_band_rows(hq)
    nb = hq // tq

    # TODO(synk): the 4x column upsample of the tiny input is left to XLA —
    # in-kernel lane expansion has no clean Mosaic lowering.
    xup = jnp.pad(jnp.repeat(img, 4, axis=1), ((2, 3), (8, 12)))
    WX = 4 * W + 20
    assert xup.shape == (H + 5, WX)

    out = pl.pallas_call(
        _make_kernel(H, W, tq, C4),
        out_shape=jax.ShapeDtypeStruct((2, hq, 4, C4), jnp.float32),
        grid_spec=pltpu.PrefetchScalarGridSpec(
            num_scalar_prefetch=0,
            grid=(nb,),
            in_specs=[
                pl.BlockSpec((H + 5, WX), lambda i: (0, 0)),         # resident input
                pl.BlockSpec(memory_space=pltpu.MemorySpace.SMEM),   # w1
                pl.BlockSpec(memory_space=pltpu.MemorySpace.SMEM),   # b1
                pl.BlockSpec(memory_space=pltpu.MemorySpace.SMEM),   # w2
                pl.BlockSpec(memory_space=pltpu.MemorySpace.SMEM),   # b2
            ],
            out_specs=pl.BlockSpec((2, tq, 4, C4), lambda i: (0, i, 0, 0)),
        ),
        compiler_params=pltpu.CompilerParams(
            # bands are fully independent (each recomputes its small conv1 halo)
            dimension_semantics=("parallel",),
            vmem_limit_bytes=32 * 1024 * 1024),
    )(xup, w1[0, 0], b1, w2[0, 0], b2)

    # (2, hq, 4, C4) -> (1, 2, 4*hq, 4*wq): identical row-major layout (bitcast).
    return out.reshape(1, 2, 4 * hq, C4)


def _reference_forward(x, w1, b1, w2, b2):
    """Pure-JAX reference using XLA convs (PyTorch ConvTranspose2d semantics)."""
    def convt(inp, wgt, b, out_pad):
        wf = jnp.flip(wgt, axis=(2, 3)).transpose(1, 0, 2, 3)   # (out, in, kH, kW)
        y = jax.lax.conv_general_dilated(
            inp, wf, window_strides=(1, 1),
            padding=((3, 3 + out_pad), (3, 3 + out_pad)),
            lhs_dilation=(2, 2),
            dimension_numbers=("NCHW", "OIHW", "NCHW"),
            precision=jax.lax.Precision.HIGHEST)
        return y + b.reshape(1, -1, 1, 1)

    v2 = jnp.maximum(convt(x, w1, b1, 0), 0.0)
    v4 = jnp.maximum(convt(v2, w2, b2, 1), 0.0)
    return jnp.concatenate([v4, v4], axis=1)


if __name__ == "__main__":
    key = jax.random.PRNGKey(0)
    k_x, k_w1, k_b1, k_w2, k_b2 = jax.random.split(key, 5)

    # Small, non-square shape consistent with the module (original spec 1x1x128x128).
    # H=31 -> hq=32 -> 2 row bands, so the multi-band grid path is exercised.
    H, W = 31, 23
    x = jax.random.normal(k_x, (1, 1, H, W), dtype=jnp.float32)

    # ConvTranspose2d(1, 1, 5) parameter shapes.
    w1 = jax.random.normal(k_w1, (1, 1, K, K), dtype=jnp.float32) * 0.2
    b1 = jax.random.normal(k_b1, (1,), dtype=jnp.float32) * 0.1
    w2 = jax.random.normal(k_w2, (1, 1, K, K), dtype=jnp.float32) * 0.2
    b2 = jax.random.normal(k_b2, (1,), dtype=jnp.float32) * 0.1

    out = jax.jit(model_forward)(x, w1, b1, w2, b2)
    out = jax.block_until_ready(out)

    ref = jax.block_until_ready(_reference_forward(x, w1, b1, w2, b2))
    assert out.shape == (1, 2, 4 * H + 4, 4 * W + 4), out.shape
    assert jnp.allclose(out, ref, atol=1e-4, rtol=1e-4), "mismatch vs reference"

    print("KERNEL_OK")
</pallas_src>

<mosaic_0001>
module attributes {stable_mosaic.version = 11 : i64} {
  func.func @kernel(%arg0: i32, %arg1: memref<36x112xf32, #tpu.memory_space<vmem>>, %arg2: memref<5x5xf32, #tpu.memory_space<smem>>, %arg3: memref<1xf32, #tpu.memory_space<smem>>, %arg4: memref<5x5xf32, #tpu.memory_space<smem>>, %arg5: memref<1xf32, #tpu.memory_space<smem>>, %arg6: memref<2x16x4x96xf32, #tpu.memory_space<vmem>>) attributes {dimension_semantics = [#tpu.dimension_semantics<parallel>], iteration_bounds = array<i64: 2>, scalar_prefetch = 0 : i64, scratch_operands = 0 : i64, tpu.core_type = #tpu.core_type<tc>, window_params = [{pipeline_mode = #tpu.pipeline_mode<synchronous>, transform_indices = @transform_0, window_bounds = array<i64: 36, 112>}, {transform_indices = @transform_1, window_bounds = array<i64: 5, 5>}, {transform_indices = @transform_2, window_bounds = array<i64: 1>}, {transform_indices = @transform_3, window_bounds = array<i64: 5, 5>}, {transform_indices = @transform_4, window_bounds = array<i64: 1>}, {transform_indices = @transform_5, window_bounds = array<i64: 2, 16, 4, 96>}]} {
    %c16_i32 = arith.constant 16 : i32
    %0 = arith.muli %arg0, %c16_i32 : i32
    %c0 = arith.constant 0 : index
    %c0_0 = arith.constant 0 : index
    %1 = memref.load %arg2[%c0, %c0_0] : memref<5x5xf32, #tpu.memory_space<smem>>
    %c0_1 = arith.constant 0 : index
    %c1 = arith.constant 1 : index
    %2 = memref.load %arg2[%c0_1, %c1] : memref<5x5xf32, #tpu.memory_space<smem>>
    %c0_2 = arith.constant 0 : index
    %c2 = arith.constant 2 : index
    %3 = memref.load %arg2[%c0_2, %c2] : memref<5x5xf32, #tpu.memory_space<smem>>
    %c0_3 = arith.constant 0 : index
    %c3 = arith.constant 3 : index
    %4 = memref.load %arg2[%c0_3, %c3] : memref<5x5xf32, #tpu.memory_space<smem>>
    %c0_4 = arith.constant 0 : index
    %c4 = arith.constant 4 : index
    %5 = memref.load %arg2[%c0_4, %c4] : memref<5x5xf32, #tpu.memory_space<smem>>
    %c1_5 = arith.constant 1 : index
    %c0_6 = arith.constant 0 : index
    %6 = memref.load %arg2[%c1_5, %c0_6] : memref<5x5xf32, #tpu.memory_space<smem>>
    %c1_7 = arith.constant 1 : index
    %c1_8 = arith.constant 1 : index
    %7 = memref.load %arg2[%c1_7, %c1_8] : memref<5x5xf32, #tpu.memory_space<smem>>
    %c1_9 = arith.constant 1 : index
    %c2_10 = arith.constant 2 : index
    %8 = memref.load %arg2[%c1_9, %c2_10] : memref<5x5xf32, #tpu.memory_space<smem>>
    %c1_11 = arith.constant 1 : index
    %c3_12 = arith.constant 3 : index
    %9 = memref.load %arg2[%c1_11, %c3_12] : memref<5x5xf32, #tpu.memory_space<smem>>
    %c1_13 = arith.constant 1 : index
    %c4_14 = arith.constant 4 : index
    %10 = memref.load %arg2[%c1_13, %c4_14] : memref<5x5xf32, #tpu.memory_space<smem>>
    %c2_15 = arith.constant 2 : index
    %c0_16 = arith.constant 0 : index
    %11 = memref.load %arg2[%c2_15, %c0_16] : memref<5x5xf32, #tpu.memory_space<smem>>
    %c2_17 = arith.constant 2 : index
    %c1_18 = arith.constant 1 : index
    %12 = memref.load %arg2[%c2_17, %c1_18] : memref<5x5xf32, #tpu.memory_space<smem>>
    %c2_19 = arith.constant 2 : index
    %c2_20 = arith.constant 2 : index
    %13 = memref.load %arg2[%c2_19, %c2_20] : memref<5x5xf32, #tpu.memory_space<smem>>
    %c2_21 = arith.constant 2 : index
    %c3_22 = arith.constant 3 : index
    %14 = memref.load %arg2[%c2_21, %c3_22] : memref<5x5xf32, #tpu.memory_space<smem>>
    %c2_23 = arith.constant 2 : index
    %c4_24 = arith.constant 4 : index
    %15 = memref.load %arg2[%c2_23, %c4_24] : memref<5x5xf32, #tpu.memory_space<smem>>
    %c3_25 = arith.constant 3 : index
    %c0_26 = arith.constant 0 : index
    %16 = memref.load %arg2[%c3_25, %c0_26] : memref<5x5xf32, #tpu.memory_space<smem>>
    %c3_27 = arith.constant 3 : index
    %c1_28 = arith.constant 1 : index
    %17 = memref.load %arg2[%c3_27, %c1_28] : memref<5x5xf32, #tpu.memory_space<smem>>
    %c3_29 = arith.constant 3 : index
    %c2_30 = arith.constant 2 : index
    %18 = memref.load %arg2[%c3_29, %c2_30] : memref<5x5xf32, #tpu.memory_space<smem>>
    %c3_31 = arith.constant 3 : index
    %c3_32 = arith.constant 3 : index
    %19 = memref.load %arg2[%c3_31, %c3_32] : memref<5x5xf32, #tpu.memory_space<smem>>
    %c3_33 = arith.constant 3 : index
    %c4_34 = arith.constant 4 : index
    %20 = memref.load %arg2[%c3_33, %c4_34] : memref<5x5xf32, #tpu.memory_space<smem>>
    %c4_35 = arith.constant 4 : index
    %c0_36 = arith.constant 0 : index
    %21 = memref.load %arg2[%c4_35, %c0_36] : memref<5x5xf32, #tpu.memory_space<smem>>
    %c4_37 = arith.constant 4 : index
    %c1_38 = arith.constant 1 : index
    %22 = memref.load %arg2[%c4_37, %c1_38] : memref<5x5xf32, #tpu.memory_space<smem>>
    %c4_39 = arith.constant 4 : index
    %c2_40 = arith.constant 2 : index
    %23 = memref.load %arg2[%c4_39, %c2_40] : memref<5x5xf32, #tpu.memory_space<smem>>
    %c4_41 = arith.constant 4 : index
    %c3_42 = arith.constant 3 : index
    %24 = memref.load %arg2[%c4_41, %c3_42] : memref<5x5xf32, #tpu.memory_space<smem>>
    %c4_43 = arith.constant 4 : index
    %c4_44 = arith.constant 4 : index
    %25 = memref.load %arg2[%c4_43, %c4_44] : memref<5x5xf32, #tpu.memory_space<smem>>
    %c0_45 = arith.constant 0 : index
    %c0_46 = arith.constant 0 : index
    %26 = memref.load %arg4[%c0_45, %c0_46] : memref<5x5xf32, #tpu.memory_space<smem>>
    %c0_47 = arith.constant 0 : index
    %c1_48 = arith.constant 1 : index
    %27 = memref.load %arg4[%c0_47, %c1_48] : memref<5x5xf32, #tpu.memory_space<smem>>
    %c0_49 = arith.constant 0 : index
    %c2_50 = arith.constant 2 : index
    %28 = memref.load %arg4[%c0_49, %c2_50] : memref<5x5xf32, #tpu.memory_space<smem>>
    %c0_51 = arith.constant 0 : index
    %c3_52 = arith.constant 3 : index
    %29 = memref.load %arg4[%c0_51, %c3_52] : memref<5x5xf32, #tpu.memory_space<smem>>
    %c0_53 = arith.constant 0 : index
    %c4_54 = arith.constant 4 : index
    %30 = memref.load %arg4[%c0_53, %c4_54] : memref<5x5xf32, #tpu.memory_space<smem>>
    %c1_55 = arith.constant 1 : index
    %c0_56 = arith.constant 0 : index
    %31 = memref.load %arg4[%c1_55, %c0_56] : memref<5x5xf32, #tpu.memory_space<smem>>
    %c1_57 = arith.constant 1 : index
    %c1_58 = arith.constant 1 : index
    %32 = memref.load %arg4[%c1_57, %c1_58] : memref<5x5xf32, #tpu.memory_space<smem>>
    %c1_59 = arith.constant 1 : index
    %c2_60 = arith.constant 2 : index
    %33 = memref.load %arg4[%c1_59, %c2_60] : memref<5x5xf32, #tpu.memory_space<smem>>
    %c1_61 = arith.constant 1 : index
    %c3_62 = arith.constant 3 : index
    %34 = memref.load %arg4[%c1_61, %c3_62] : memref<5x5xf32, #tpu.memory_space<smem>>
    %c1_63 = arith.constant 1 : index
    %c4_64 = arith.constant 4 : index
    %35 = memref.load %arg4[%c1_63, %c4_64] : memref<5x5xf32, #tpu.memory_space<smem>>
    %c2_65 = arith.constant 2 : index
    %c0_66 = arith.constant 0 : index
    %36 = memref.load %arg4[%c2_65, %c0_66] : memref<5x5xf32, #tpu.memory_space<smem>>
    %c2_67 = arith.constant 2 : index
    %c1_68 = arith.constant 1 : index
    %37 = memref.load %arg4[%c2_67, %c1_68] : memref<5x5xf32, #tpu.memory_space<smem>>
    %c2_69 = arith.constant 2 : index
    %c2_70 = arith.constant 2 : index
    %38 = memref.load %arg4[%c2_69, %c2_70] : memref<5x5xf32, #tpu.memory_space<smem>>
    %c2_71 = arith.constant 2 : index
    %c3_72 = arith.constant 3 : index
    %39 = memref.load %arg4[%c2_71, %c3_72] : memref<5x5xf32, #tpu.memory_space<smem>>
    %c2_73 = arith.constant 2 : index
    %c4_74 = arith.constant 4 : index
    %40 = memref.load %arg4[%c2_73, %c4_74] : memref<5x5xf32, #tpu.memory_space<smem>>
    %c3_75 = arith.constant 3 : index
    %c0_76 = arith.constant 0 : index
    %41 = memref.load %arg4[%c3_75, %c0_76] : memref<5x5xf32, #tpu.memory_space<smem>>
    %c3_77 = arith.constant 3 : index
    %c1_78 = arith.constant 1 : index
    %42 = memref.load %arg4[%c3_77, %c1_78] : memref<5x5xf32, #tpu.memory_space<smem>>
    %c3_79 = arith.constant 3 : index
    %c2_80 = arith.constant 2 : index
    %43 = memref.load %arg4[%c3_79, %c2_80] : memref<5x5xf32, #tpu.memory_space<smem>>
    %c3_81 = arith.constant 3 : index
    %c3_82 = arith.constant 3 : index
    %44 = memref.load %arg4[%c3_81, %c3_82] : memref<5x5xf32, #tpu.memory_space<smem>>
    %c3_83 = arith.constant 3 : index
    %c4_84 = arith.constant 4 : index
    %45 = memref.load %arg4[%c3_83, %c4_84] : memref<5x5xf32, #tpu.memory_space<smem>>
    %c4_85 = arith.constant 4 : index
    %c0_86 = arith.constant 0 : index
    %46 = memref.load %arg4[%c4_85, %c0_86] : memref<5x5xf32, #tpu.memory_space<smem>>
    %c4_87 = arith.constant 4 : index
    %c1_88 = arith.constant 1 : index
    %47 = memref.load %arg4[%c4_87, %c1_88] : memref<5x5xf32, #tpu.memory_space<smem>>
    %c4_89 = arith.constant 4 : index
    %c2_90 = arith.constant 2 : index
    %48 = memref.load %arg4[%c4_89, %c2_90] : memref<5x5xf32, #tpu.memory_space<smem>>
    %c4_91 = arith.constant 4 : index
    %c3_92 = arith.constant 3 : index
    %49 = memref.load %arg4[%c4_91, %c3_92] : memref<5x5xf32, #tpu.memory_space<smem>>
    %c4_93 = arith.constant 4 : index
    %c4_94 = arith.constant 4 : index
    %50 = memref.load %arg4[%c4_93, %c4_94] : memref<5x5xf32, #tpu.memory_space<smem>>
    %c0_95 = arith.constant 0 : index
    %51 = memref.load %arg3[%c0_95] : memref<1xf32, #tpu.memory_space<smem>>
    %c0_96 = arith.constant 0 : index
    %52 = memref.load %arg5[%c0_96] : memref<1xf32, #tpu.memory_space<smem>>
    %c1_i32 = arith.constant 1 : i32
    %53 = arith.addi %0, %c1_i32 : i32
    %c-1_i32 = arith.constant -1 : i32
    %54 = arith.addi %53, %c-1_i32 : i32
    %55 = arith.index_cast %54 : i32 to index
    %c0_97 = arith.constant 0 : index
    %56 = vector.load %arg1[%55, %c0_97] : memref<36x112xf32, #tpu.memory_space<vmem>>, vector<18x104xf32>
    %c1_i32_98 = arith.constant 1 : i32
    %57 = arith.addi %0, %c1_i32_98 : i32
    %c-1_i32_99 = arith.constant -1 : i32
    %58 = arith.addi %57, %c-1_i32_99 : i32
    %59 = arith.index_cast %58 : i32 to index
    %c4_100 = arith.constant 4 : index
    %60 = vector.load %arg1[%59, %c4_100] : memref<36x112xf32, #tpu.memory_space<vmem>>, vector<18x104xf32>
    %c1_i32_101 = arith.constant 1 : i32
    %61 = arith.addi %0, %c1_i32_101 : i32
    %c-1_i32_102 = arith.constant -1 : i32
    %62 = arith.addi %61, %c-1_i32_102 : i32
    %63 = arith.index_cast %62 : i32 to index
    %c8 = arith.constant 8 : index
    %64 = vector.load %arg1[%63, %c8] : memref<36x112xf32, #tpu.memory_space<vmem>>, vector<18x104xf32>
    %c1_i32_103 = arith.constant 1 : i32
    %65 = arith.addi %0, %c1_i32_103 : i32
    %c0_i32 = arith.constant 0 : i32
    %66 = arith.addi %65, %c0_i32 : i32
    %67 = arith.index_cast %66 : i32 to index
    %c0_104 = arith.constant 0 : index
    %68 = vector.load %arg1[%67, %c0_104] : memref<36x112xf32, #tpu.memory_space<vmem>>, vector<18x104xf32>
    %c1_i32_105 = arith.constant 1 : i32
    %69 = arith.addi %0, %c1_i32_105 : i32
    %c0_i32_106 = arith.constant 0 : i32
    %70 = arith.addi %69, %c0_i32_106 : i32
    %71 = arith.index_cast %70 : i32 to index
    %c4_107 = arith.constant 4 : index
    %72 = vector.load %arg1[%71, %c4_107] : memref<36x112xf32, #tpu.memory_space<vmem>>, vector<18x104xf32>
    %c1_i32_108 = arith.constant 1 : i32
    %73 = arith.addi %0, %c1_i32_108 : i32
    %c0_i32_109 = arith.constant 0 : i32
    %74 = arith.addi %73, %c0_i32_109 : i32
    %75 = arith.index_cast %74 : i32 to index
    %c8_110 = arith.constant 8 : index
    %76 = vector.load %arg1[%75, %c8_110] : memref<36x112xf32, #tpu.memory_space<vmem>>, vector<18x104xf32>
    %c1_i32_111 = arith.constant 1 : i32
    %77 = arith.addi %0, %c1_i32_111 : i32
    %c1_i32_112 = arith.constant 1 : i32
    %78 = arith.addi %77, %c1_i32_112 : i32
    %79 = arith.index_cast %78 : i32 to index
    %c0_113 = arith.constant 0 : index
    %80 = vector.load %arg1[%79, %c0_113] : memref<36x112xf32, #tpu.memory_space<vmem>>, vector<18x104xf32>
    %c1_i32_114 = arith.constant 1 : i32
    %81 = arith.addi %0, %c1_i32_114 : i32
    %c1_i32_115 = arith.constant 1 : i32
    %82 = arith.addi %81, %c1_i32_115 : i32
    %83 = arith.index_cast %82 : i32 to index
    %c4_116 = arith.constant 4 : index
    %84 = vector.load %arg1[%83, %c4_116] : memref<36x112xf32, #tpu.memory_space<vmem>>, vector<18x104xf32>
    %c1_i32_117 = arith.constant 1 : i32
    %85 = arith.addi %0, %c1_i32_117 : i32
    %c1_i32_118 = arith.constant 1 : i32
    %86 = arith.addi %85, %c1_i32_118 : i32
    %87 = arith.index_cast %86 : i32 to index
    %c8_119 = arith.constant 8 : index
    %88 = vector.load %arg1[%87, %c8_119] : memref<36x112xf32, #tpu.memory_space<vmem>>, vector<18x104xf32>
    %89 = tpu.iota {dimensions = array<i32: 0>} : vector<18x104xi32>
    %c1_i32_120 = arith.constant 1 : i32
    %90 = arith.subi %0, %c1_i32_120 : i32
    %91 = vector.broadcast %90 : i32 to vector<18x104xi32>
    %92 = arith.addi %89, %91 : vector<18x104xi32>
    %93 = tpu.iota {dimensions = array<i32: 1>} : vector<18x104xi32>
    %94 = vector.broadcast %51 : f32 to vector<18x104xf32>
    %95 = vector.broadcast %7 : f32 to vector<18x104xf32>
    %96 = arith.mulf %72, %95 : vector<18x104xf32>
    %97 = arith.addf %94, %96 : vector<18x104xf32>
    %98 = vector.broadcast %9 : f32 to vector<18x104xf32>
    %99 = arith.mulf %68, %98 : vector<18x104xf32>
    %100 = arith.addf %97, %99 : vector<18x104xf32>
    %101 = vector.broadcast %17 : f32 to vector<18x104xf32>
    %102 = arith.mulf %60, %101 : vector<18x104xf32>
    %103 = arith.addf %100, %102 : vector<18x104xf32>
    %104 = vector.broadcast %19 : f32 to vector<18x104xf32>
    %105 = arith.mulf %56, %104 : vector<18x104xf32>
    %106 = arith.addf %103, %105 : vector<18x104xf32>
    %c0_i32_121 = arith.constant 0 : i32
    %107 = vector.broadcast %c0_i32_121 : i32 to vector<18x104xi32>
    %108 = arith.cmpi sge, %92, %107 : vector<18x104xi32>
    %c31_i32 = arith.constant 31 : i32
    %109 = vector.broadcast %c31_i32 : i32 to vector<18x104xi32>
    %110 = arith.cmpi sle, %92, %109 : vector<18x104xi32>
    %111 = arith.andi %108, %110 : vector<18x104xi1>
    %c4_i32 = arith.constant 4 : i32
    %112 = vector.broadcast %c4_i32 : i32 to vector<18x104xi32>
    %113 = arith.cmpi sge, %93, %112 : vector<18x104xi32>
    %114 = arith.andi %111, %113 : vector<18x104xi1>
    %c100_i32 = arith.constant 100 : i32
    %115 = vector.broadcast %c100_i32 : i32 to vector<18x104xi32>
    %116 = arith.cmpi slt, %93, %115 : vector<18x104xi32>
    %117 = arith.andi %114, %116 : vector<18x104xi1>
    %cst = arith.constant 0.000000e+00 : f32
    %118 = vector.broadcast %cst : f32 to vector<18x104xf32>
    %119 = arith.maximumf %106, %118 : vector<18x104xf32>
    %cst_122 = arith.constant 0.000000e+00 : f32
    %120 = vector.broadcast %cst_122 : f32 to vector<18x104xf32>
    %121 = arith.select %117, %119, %120 : vector<18x104xi1>, vector<18x104xf32>
    %122 = vector.broadcast %6 : f32 to vector<18x104xf32>
    %123 = arith.mulf %76, %122 : vector<18x104xf32>
    %124 = arith.addf %94, %123 : vector<18x104xf32>
    %125 = vector.broadcast %8 : f32 to vector<18x104xf32>
    %126 = arith.mulf %72, %125 : vector<18x104xf32>
    %127 = arith.addf %124, %126 : vector<18x104xf32>
    %128 = vector.broadcast %10 : f32 to vector<18x104xf32>
    %129 = arith.mulf %68, %128 : vector<18x104xf32>
    %130 = arith.addf %127, %129 : vector<18x104xf32>
    %131 = vector.broadcast %16 : f32 to vector<18x104xf32>
    %132 = arith.mulf %64, %131 : vector<18x104xf32>
    %133 = arith.addf %130, %132 : vector<18x104xf32>
    %134 = vector.broadcast %18 : f32 to vector<18x104xf32>
    %135 = arith.mulf %60, %134 : vector<18x104xf32>
    %136 = arith.addf %133, %135 : vector<18x104xf32>
    %137 = vector.broadcast %20 : f32 to vector<18x104xf32>
    %138 = arith.mulf %56, %137 : vector<18x104xf32>
    %139 = arith.addf %136, %138 : vector<18x104xf32>
    %c0_i32_123 = arith.constant 0 : i32
    %140 = vector.broadcast %c0_i32_123 : i32 to vector<18x104xi32>
    %141 = arith.cmpi sge, %92, %140 : vector<18x104xi32>
    %c31_i32_124 = arith.constant 31 : i32
    %142 = vector.broadcast %c31_i32_124 : i32 to vector<18x104xi32>
    %143 = arith.cmpi sle, %92, %142 : vector<18x104xi32>
    %144 = arith.andi %141, %143 : vector<18x104xi1>
    %c4_i32_125 = arith.constant 4 : i32
    %145 = vector.broadcast %c4_i32_125 : i32 to vector<18x104xi32>
    %146 = arith.cmpi sge, %93, %145 : vector<18x104xi32>
    %147 = arith.andi %144, %146 : vector<18x104xi1>
    %c96_i32 = arith.constant 96 : i32
    %148 = vector.broadcast %c96_i32 : i32 to vector<18x104xi32>
    %149 = arith.cmpi slt, %93, %148 : vector<18x104xi32>
    %150 = arith.andi %147, %149 : vector<18x104xi1>
    %cst_126 = arith.constant 0.000000e+00 : f32
    %151 = vector.broadcast %cst_126 : f32 to vector<18x104xf32>
    %152 = arith.maximumf %139, %151 : vector<18x104xf32>
    %cst_127 = arith.constant 0.000000e+00 : f32
    %153 = vector.broadcast %cst_127 : f32 to vector<18x104xf32>
    %154 = arith.select %150, %152, %153 : vector<18x104xi1>, vector<18x104xf32>
    %155 = vector.broadcast %2 : f32 to vector<18x104xf32>
    %156 = arith.mulf %84, %155 : vector<18x104xf32>
    %157 = arith.addf %94, %156 : vector<18x104xf32>
    %158 = vector.broadcast %4 : f32 to vector<18x104xf32>
    %159 = arith.mulf %80, %158 : vector<18x104xf32>
    %160 = arith.addf %157, %159 : vector<18x104xf32>
    %161 = vector.broadcast %12 : f32 to vector<18x104xf32>
    %162 = arith.mulf %72, %161 : vector<18x104xf32>
    %163 = arith.addf %160, %162 : vector<18x104xf32>
    %164 = vector.broadcast %14 : f32 to vector<18x104xf32>
    %165 = arith.mulf %68, %164 : vector<18x104xf32>
    %166 = arith.addf %163, %165 : vector<18x104xf32>
    %167 = vector.broadcast %22 : f32 to vector<18x104xf32>
    %168 = arith.mulf %60, %167 : vector<18x104xf32>
    %169 = arith.addf %166, %168 : vector<18x104xf32>
    %170 = vector.broadcast %24 : f32 to vector<18x104xf32>
    %171 = arith.mulf %56, %170 : vector<18x104xf32>
    %172 = arith.addf %169, %171 : vector<18x104xf32>
    %c0_i32_128 = arith.constant 0 : i32
    %173 = vector.broadcast %c0_i32_128 : i32 to vector<18x104xi32>
    %174 = arith.cmpi sge, %92, %173 : vector<18x104xi32>
    %c30_i32 = arith.constant 30 : i32
    %175 = vector.broadcast %c30_i32 : i32 to vector<18x104xi32>
    %176 = arith.cmpi sle, %92, %175 : vector<18x104xi32>
    %177 = arith.andi %174, %176 : vector<18x104xi1>
    %c4_i32_129 = arith.constant 4 : i32
    %178 = vector.broadcast %c4_i32_129 : i32 to vector<18x104xi32>
    %179 = arith.cmpi sge, %93, %178 : vector<18x104xi32>
    %180 = arith.andi %177, %179 : vector<18x104xi1>
    %c100_i32_130 = arith.constant 100 : i32
    %181 = vector.broadcast %c100_i32_130 : i32 to vector<18x104xi32>
    %182 = arith.cmpi slt, %93, %181 : vector<18x104xi32>
    %183 = arith.andi %180, %182 : vector<18x104xi1>
    %cst_131 = arith.constant 0.000000e+00 : f32
    %184 = vector.broadcast %cst_131 : f32 to vector<18x104xf32>
    %185 = arith.maximumf %172, %184 : vector<18x104xf32>
    %cst_132 = arith.constant 0.000000e+00 : f32
    %186 = vector.broadcast %cst_132 : f32 to vector<18x104xf32>
    %187 = arith.select %183, %185, %186 : vector<18x104xi1>, vector<18x104xf32>
    %188 = vector.broadcast %1 : f32 to vector<18x104xf32>
    %189 = arith.mulf %88, %188 : vector<18x104xf32>
    %190 = arith.addf %94, %189 : vector<18x104xf32>
    %191 = vector.broadcast %3 : f32 to vector<18x104xf32>
    %192 = arith.mulf %84, %191 : vector<18x104xf32>
    %193 = arith.addf %190, %192 : vector<18x104xf32>
    %194 = vector.broadcast %5 : f32 to vector<18x104xf32>
    %195 = arith.mulf %80, %194 : vector<18x104xf32>
    %196 = arith.addf %193, %195 : vector<18x104xf32>
    %197 = vector.broadcast %11 : f32 to vector<18x104xf32>
    %198 = arith.mulf %76, %197 : vector<18x104xf32>
    %199 = arith.addf %196, %198 : vector<18x104xf32>
    %200 = vector.broadcast %13 : f32 to vector<18x104xf32>
    %201 = arith.mulf %72, %200 : vector<18x104xf32>
    %202 = arith.addf %199, %201 : vector<18x104xf32>
    %203 = vector.broadcast %15 : f32 to vector<18x104xf32>
    %204 = arith.mulf %68, %203 : vector<18x104xf32>
    %205 = arith.addf %202, %204 : vector<18x104xf32>
    %206 = vector.broadcast %21 : f32 to vector<18x104xf32>
    %207 = arith.mulf %64, %206 : vector<18x104xf32>
    %208 = arith.addf %205, %207 : vector<18x104xf32>
    %209 = vector.broadcast %23 : f32 to vector<18x104xf32>
    %210 = arith.mulf %60, %209 : vector<18x104xf32>
    %211 = arith.addf %208, %210 : vector<18x104xf32>
    %212 = vector.broadcast %25 : f32 to vector<18x104xf32>
    %213 = arith.mulf %56, %212 : vector<18x104xf32>
    %214 = arith.addf %211, %213 : vector<18x104xf32>
    %c0_i32_133 = arith.constant 0 : i32
    %215 = vector.broadcast %c0_i32_133 : i32 to vector<18x104xi32>
    %216 = arith.cmpi sge, %92, %215 : vector<18x104xi32>
    %c30_i32_134 = arith.constant 30 : i32
    %217 = vector.broadcast %c30_i32_134 : i32 to vector<18x104xi32>
    %218 = arith.cmpi sle, %92, %217 : vector<18x104xi32>
    %219 = arith.andi %216, %218 : vector<18x104xi1>
    %c4_i32_135 = arith.constant 4 : i32
    %220 = vector.broadcast %c4_i32_135 : i32 to vector<18x104xi32>
    %221 = arith.cmpi sge, %93, %220 : vector<18x104xi32>
    %222 = arith.andi %219, %221 : vector<18x104xi1>
    %c96_i32_136 = arith.constant 96 : i32
    %223 = vector.broadcast %c96_i32_136 : i32 to vector<18x104xi32>
    %224 = arith.cmpi slt, %93, %223 : vector<18x104xi32>
    %225 = arith.andi %222, %224 : vector<18x104xi1>
    %cst_137 = arith.constant 0.000000e+00 : f32
    %226 = vector.broadcast %cst_137 : f32 to vector<18x104xf32>
    %227 = arith.maximumf %214, %226 : vector<18x104xf32>
    %cst_138 = arith.constant 0.000000e+00 : f32
    %228 = vector.broadcast %cst_138 : f32 to vector<18x104xf32>
    %229 = arith.select %225, %227, %228 : vector<18x104xi1>, vector<18x104xf32>
    %230 = tpu.iota {dimensions = array<i32: 1>} : vector<1x96xi32>
    %c4_i32_139 = arith.constant 4 : i32
    %c0_i32_140 = arith.constant 0 : i32
    %231 = arith.cmpi eq, %c4_i32_139, %c0_i32_140 : i32
    %c1_i32_141 = arith.constant 1 : i32
    %232 = arith.select %231, %c1_i32_141, %c4_i32_139 : i32
    %233 = vector.broadcast %232 : i32 to vector<1x96xi32>
    %234 = arith.remsi %230, %233 : vector<1x96xi32>
    %c0_i32_142 = arith.constant 0 : i32
    %235 = vector.broadcast %c0_i32_142 : i32 to vector<1x96xi32>
    %236 = arith.cmpi ne, %234, %235 : vector<1x96xi32>
    %c0_i32_143 = arith.constant 0 : i32
    %237 = vector.broadcast %c0_i32_143 : i32 to vector<1x96xi32>
    %238 = arith.cmpi slt, %234, %237 : vector<1x96xi32>
    %c0_i32_144 = arith.constant 0 : i32
    %239 = arith.cmpi slt, %232, %c0_i32_144 : i32
    %240 = vector.broadcast %239 : i1 to vector<1x96xi1>
    %241 = vector.broadcast %240 : vector<1x96xi1> to vector<1x96xi1>
    %242 = arith.xori %238, %241 : vector<1x96xi1>
    %243 = arith.andi %242, %236 : vector<1x96xi1>
    %244 = vector.broadcast %232 : i32 to vector<1x96xi32>
    %245 = arith.addi %234, %244 : vector<1x96xi32>
    %246 = arith.select %243, %245, %234 : vector<1x96xi1>, vector<1x96xi32>
    %247 = vector.broadcast %52 : f32 to vector<16x96xf32>
    %248 = vector.extract_strided_slice %121 {offsets = [1, 4], sizes = [16, 96], strides = [1, 1]} : vector<18x104xf32> to vector<16x96xf32>
    %cst_145 = arith.constant 0.000000e+00 : f32
    %249 = vector.broadcast %cst_145 : f32 to vector<1x96xf32>
    %c0_i32_146 = arith.constant 0 : i32
    %250 = vector.broadcast %c0_i32_146 : i32 to vector<1x96xi32>
    %251 = arith.cmpi eq, %246, %250 : vector<1x96xi32>
    %cst_147 = arith.constant 0.000000e+00 : f32
    %252 = vector.broadcast %32 : f32 to vector<1x96xf32>
    %253 = vector.broadcast %cst_147 : f32 to vector<1x96xf32>
    %254 = arith.select %251, %252, %253 : vector<1x96xi1>, vector<1x96xf32>
    %255 = arith.addf %249, %254 : vector<1x96xf32>
    %c1_i32_148 = arith.constant 1 : i32
    %256 = vector.broadcast %c1_i32_148 : i32 to vector<1x96xi32>
    %257 = arith.cmpi eq, %246, %256 : vector<1x96xi32>
    %cst_149 = arith.constant 0.000000e+00 : f32
    %258 = vector.broadcast %33 : f32 to vector<1x96xf32>
    %259 = vector.broadcast %cst_149 : f32 to vector<1x96xf32>
    %260 = arith.select %257, %258, %259 : vector<1x96xi1>, vector<1x96xf32>
    %261 = arith.addf %255, %260 : vector<1x96xf32>
    %c2_i32 = arith.constant 2 : i32
    %262 = vector.broadcast %c2_i32 : i32 to vector<1x96xi32>
    %263 = arith.cmpi eq, %246, %262 : vector<1x96xi32>
    %cst_150 = arith.constant 0.000000e+00 : f32
    %264 = vector.broadcast %34 : f32 to vector<1x96xf32>
    %265 = vector.broadcast %cst_150 : f32 to vector<1x96xf32>
    %266 = arith.select %263, %264, %265 : vector<1x96xi1>, vector<1x96xf32>
    %267 = arith.addf %261, %266 : vector<1x96xf32>
    %c3_i32 = arith.constant 3 : i32
    %268 = vector.broadcast %c3_i32 : i32 to vector<1x96xi32>
    %269 = arith.cmpi eq, %246, %268 : vector<1x96xi32>
    %cst_151 = arith.constant 0.000000e+00 : f32
    %270 = vector.broadcast %35 : f32 to vector<1x96xf32>
    %271 = vector.broadcast %cst_151 : f32 to vector<1x96xf32>
    %272 = arith.select %269, %270, %271 : vector<1x96xi1>, vector<1x96xf32>
    %273 = arith.addf %267, %272 : vector<1x96xf32>
    %274 = vector.broadcast %273 : vector<1x96xf32> to vector<16x96xf32>
    %275 = arith.mulf %248, %274 : vector<16x96xf32>
    %276 = arith.addf %247, %275 : vector<16x96xf32>
    %277 = vector.extract_strided_slice %154 {offsets = [1, 0], sizes = [16, 96], strides = [1, 1]} : vector<18x104xf32> to vector<16x96xf32>
    %cst_152 = arith.constant 0.000000e+00 : f32
    %278 = vector.broadcast %cst_152 : f32 to vector<1x96xf32>
    %c0_i32_153 = arith.constant 0 : i32
    %279 = vector.broadcast %c0_i32_153 : i32 to vector<1x96xi32>
    %280 = arith.cmpi eq, %246, %279 : vector<1x96xi32>
    %cst_154 = arith.constant 0.000000e+00 : f32
    %281 = vector.broadcast %34 : f32 to vector<1x96xf32>
    %282 = vector.broadcast %cst_154 : f32 to vector<1x96xf32>
    %283 = arith.select %280, %281, %282 : vector<1x96xi1>, vector<1x96xf32>
    %284 = arith.addf %278, %283 : vector<1x96xf32>
    %c1_i32_155 = arith.constant 1 : i32
    %285 = vector.broadcast %c1_i32_155 : i32 to vector<1x96xi32>
    %286 = arith.cmpi eq, %246, %285 : vector<1x96xi32>
    %cst_156 = arith.constant 0.000000e+00 : f32
    %287 = vector.broadcast %35 : f32 to vector<1x96xf32>
    %288 = vector.broadcast %cst_156 : f32 to vector<1x96xf32>
    %289 = arith.select %286, %287, %288 : vector<1x96xi1>, vector<1x96xf32>
    %290 = arith.addf %284, %289 : vector<1x96xf32>
    %291 = vector.broadcast %290 : vector<1x96xf32> to vector<16x96xf32>
    %292 = arith.mulf %277, %291 : vector<16x96xf32>
    %293 = arith.addf %276, %292 : vector<16x96xf32>
    %294 = vector.extract_strided_slice %154 {offsets = [1, 4], sizes = [16, 96], strides = [1, 1]} : vector<18x104xf32> to vector<16x96xf32>
    %cst_157 = arith.constant 0.000000e+00 : f32
    %295 = vector.broadcast %cst_157 : f32 to vector<1x96xf32>
    %c1_i32_158 = arith.constant 1 : i32
    %296 = vector.broadcast %c1_i32_158 : i32 to vector<1x96xi32>
    %297 = arith.cmpi eq, %246, %296 : vector<1x96xi32>
    %cst_159 = arith.constant 0.000000e+00 : f32
    %298 = vector.broadcast %31 : f32 to vector<1x96xf32>
    %299 = vector.broadcast %cst_159 : f32 to vector<1x96xf32>
    %300 = arith.select %297, %298, %299 : vector<1x96xi1>, vector<1x96xf32>
    %301 = arith.addf %295, %300 : vector<1x96xf32>
    %c2_i32_160 = arith.constant 2 : i32
    %302 = vector.broadcast %c2_i32_160 : i32 to vector<1x96xi32>
    %303 = arith.cmpi eq, %246, %302 : vector<1x96xi32>
    %cst_161 = arith.constant 0.000000e+00 : f32
    %304 = vector.broadcast %32 : f32 to vector<1x96xf32>
    %305 = vector.broadcast %cst_161 : f32 to vector<1x96xf32>
    %306 = arith.select %303, %304, %305 : vector<1x96xi1>, vector<1x96xf32>
    %307 = arith.addf %301, %306 : vector<1x96xf32>
    %c3_i32_162 = arith.constant 3 : i32
    %308 = vector.broadcast %c3_i32_162 : i32 to vector<1x96xi32>
    %309 = arith.cmpi eq, %246, %308 : vector<1x96xi32>
    %cst_163 = arith.constant 0.000000e+00 : f32
    %310 = vector.broadcast %33 : f32 to vector<1x96xf32>
    %311 = vector.broadcast %cst_163 : f32 to vector<1x96xf32>
    %312 = arith.select %309, %310, %311 : vector<1x96xi1>, vector<1x96xf32>
    %313 = arith.addf %307, %312 : vector<1x96xf32>
    %314 = vector.broadcast %313 : vector<1x96xf32> to vector<16x96xf32>
    %315 = arith.mulf %294, %314 : vector<16x96xf32>
    %316 = arith.addf %293, %315 : vector<16x96xf32>
    %317 = vector.extract_strided_slice %121 {offsets = [1, 8], sizes = [16, 96], strides = [1, 1]} : vector<18x104xf32> to vector<16x96xf32>
    %cst_164 = arith.constant 0.000000e+00 : f32
    %318 = vector.broadcast %cst_164 : f32 to vector<1x96xf32>
    %c3_i32_165 = arith.constant 3 : i32
    %319 = vector.broadcast %c3_i32_165 : i32 to vector<1x96xi32>
    %320 = arith.cmpi eq, %246, %319 : vector<1x96xi32>
    %cst_166 = arith.constant 0.000000e+00 : f32
    %321 = vector.broadcast %31 : f32 to vector<1x96xf32>
    %322 = vector.broadcast %cst_166 : f32 to vector<1x96xf32>
    %323 = arith.select %320, %321, %322 : vector<1x96xi1>, vector<1x96xf32>
    %324 = arith.addf %318, %323 : vector<1x96xf32>
    %325 = vector.broadcast %324 : vector<1x96xf32> to vector<16x96xf32>
    %326 = arith.mulf %317, %325 : vector<16x96xf32>
    %327 = arith.addf %316, %326 : vector<16x96xf32>
    %328 = vector.extract_strided_slice %187 {offsets = [0, 4], sizes = [16, 96], strides = [1, 1]} : vector<18x104xf32> to vector<16x96xf32>
    %cst_167 = arith.constant 0.000000e+00 : f32
    %329 = vector.broadcast %cst_167 : f32 to vector<1x96xf32>
    %c0_i32_168 = arith.constant 0 : i32
    %330 = vector.broadcast %c0_i32_168 : i32 to vector<1x96xi32>
    %331 = arith.cmpi eq, %246, %330 : vector<1x96xi32>
    %cst_169 = arith.constant 0.000000e+00 : f32
    %332 = vector.broadcast %42 : f32 to vector<1x96xf32>
    %333 = vector.broadcast %cst_169 : f32 to vector<1x96xf32>
    %334 = arith.select %331, %332, %333 : vector<1x96xi1>, vector<1x96xf32>
    %335 = arith.addf %329, %334 : vector<1x96xf32>
    %c1_i32_170 = arith.constant 1 : i32
    %336 = vector.broadcast %c1_i32_170 : i32 to vector<1x96xi32>
    %337 = arith.cmpi eq, %246, %336 : vector<1x96xi32>
    %cst_171 = arith.constant 0.000000e+00 : f32
    %338 = vector.broadcast %43 : f32 to vector<1x96xf32>
    %339 = vector.broadcast %cst_171 : f32 to vector<1x96xf32>
    %340 = arith.select %337, %338, %339 : vector<1x96xi1>, vector<1x96xf32>
    %341 = arith.addf %335, %340 : vector<1x96xf32>
    %c2_i32_172 = arith.constant 2 : i32
    %342 = vector.broadcast %c2_i32_172 : i32 to vector<1x96xi32>
    %343 = arith.cmpi eq, %246, %342 : vector<1x96xi32>
    %cst_173 = arith.constant 0.000000e+00 : f32
    %344 = vector.broadcast %44 : f32 to vector<1x96xf32>
    %345 = vector.broadcast %cst_173 : f32 to vector<1x96xf32>
    %346 = arith.select %343, %344, %345 : vector<1x96xi1>, vector<1x96xf32>
    %347 = arith.addf %341, %346 : vector<1x96xf32>
    %c3_i32_174 = arith.constant 3 : i32
    %348 = vector.broadcast %c3_i32_174 : i32 to vector<1x96xi32>
    %349 = arith.cmpi eq, %246, %348 : vector<1x96xi32>
    %cst_175 = arith.constant 0.000000e+00 : f32
    %350 = vector.broadcast %45 : f32 to vector<1x96xf32>
    %351 = vector.broadcast %cst_175 : f32 to vector<1x96xf32>
    %352 = arith.select %349, %350, %351 : vector<1x96xi1>, vector<1x96xf32>
    %353 = arith.addf %347, %352 : vector<1x96xf32>
    %354 = vector.broadcast %353 : vector<1x96xf32> to vector<16x96xf32>
    %355 = arith.mulf %328, %354 : vector<16x96xf32>
    %356 = arith.addf %327, %355 : vector<16x96xf32>
    %357 = vector.extract_strided_slice %229 {offsets = [0, 0], sizes = [16, 96], strides = [1, 1]} : vector<18x104xf32> to vector<16x96xf32>
    %cst_176 = arith.constant 0.000000e+00 : f32
    %358 = vector.broadcast %cst_176 : f32 to vector<1x96xf32>
    %c0_i32_177 = arith.constant 0 : i32
    %359 = vector.broadcast %c0_i32_177 : i32 to vector<1x96xi32>
    %360 = arith.cmpi eq, %246, %359 : vector<1x96xi32>
    %cst_178 = arith.constant 0.000000e+00 : f32
    %361 = vector.broadcast %44 : f32 to vector<1x96xf32>
    %362 = vector.broadcast %cst_178 : f32 to vector<1x96xf32>
    %363 = arith.select %360, %361, %362 : vector<1x96xi1>, vector<1x96xf32>
    %364 = arith.addf %358, %363 : vector<1x96xf32>
    %c1_i32_179 = arith.constant 1 : i32
    %365 = vector.broadcast %c1_i32_179 : i32 to vector<1x96xi32>
    %366 = arith.cmpi eq, %246, %365 : vector<1x96xi32>
    %cst_180 = arith.constant 0.000000e+00 : f32
    %367 = vector.broadcast %45 : f32 to vector<1x96xf32>
    %368 = vector.broadcast %cst_180 : f32 to vector<1x96xf32>
    %369 = arith.select %366, %367, %368 : vector<1x96xi1>, vector<1x96xf32>
    %370 = arith.addf %364, %369 : vector<1x96xf32>
    %371 = vector.broadcast %370 : vector<1x96xf32> to vector<16x96xf32>
    %372 = arith.mulf %357, %371 : vector<16x96xf32>
    %373 = arith.addf %356, %372 : vector<16x96xf32>
    %374 = vector.extract_strided_slice %229 {offsets = [0, 4], sizes = [16, 96], strides = [1, 1]} : vector<18x104xf32> to vector<16x96xf32>
    %cst_181 = arith.constant 0.000000e+00 : f32
    %375 = vector.broadcast %cst_181 : f32 to vector<1x96xf32>
    %c1_i32_182 = arith.constant 1 : i32
    %376 = vector.broadcast %c1_i32_182 : i32 to vector<1x96xi32>
    %377 = arith.cmpi eq, %246, %376 : vector<1x96xi32>
    %cst_183 = arith.constant 0.000000e+00 : f32
    %378 = vector.broadcast %41 : f32 to vector<1x96xf32>
    %379 = vector.broadcast %cst_183 : f32 to vector<1x96xf32>
    %380 = arith.select %377, %378, %379 : vector<1x96xi1>, vector<1x96xf32>
    %381 = arith.addf %375, %380 : vector<1x96xf32>
    %c2_i32_184 = arith.constant 2 : i32
    %382 = vector.broadcast %c2_i32_184 : i32 to vector<1x96xi32>
    %383 = arith.cmpi eq, %246, %382 : vector<1x96xi32>
    %cst_185 = arith.constant 0.000000e+00 : f32
    %384 = vector.broadcast %42 : f32 to vector<1x96xf32>
    %385 = vector.broadcast %cst_185 : f32 to vector<1x96xf32>
    %386 = arith.select %383, %384, %385 : vector<1x96xi1>, vector<1x96xf32>
    %387 = arith.addf %381, %386 : vector<1x96xf32>
    %c3_i32_186 = arith.constant 3 : i32
    %388 = vector.broadcast %c3_i32_186 : i32 to vector<1x96xi32>
    %389 = arith.cmpi eq, %246, %388 : vector<1x96xi32>
    %cst_187 = arith.constant 0.000000e+00 : f32
    %390 = vector.broadcast %43 : f32 to vector<1x96xf32>
    %391 = vector.broadcast %cst_187 : f32 to vector<1x96xf32>
    %392 = arith.select %389, %390, %391 : vector<1x96xi1>, vector<1x96xf32>
    %393 = arith.addf %387, %392 : vector<1x96xf32>
    %394 = vector.broadcast %393 : vector<1x96xf32> to vector<16x96xf32>
    %395 = arith.mulf %374, %394 : vector<16x96xf32>
    %396 = arith.addf %373, %395 : vector<16x96xf32>
    %397 = vector.extract_strided_slice %187 {offsets = [0, 8], sizes = [16, 96], strides = [1, 1]} : vector<18x104xf32> to vector<16x96xf32>
    %cst_188 = arith.constant 0.000000e+00 : f32
    %398 = vector.broadcast %cst_188 : f32 to vector<1x96xf32>
    %c3_i32_189 = arith.constant 3 : i32
    %399 = vector.broadcast %c3_i32_189 : i32 to vector<1x96xi32>
    %400 = arith.cmpi eq, %246, %399 : vector<1x96xi32>
    %cst_190 = arith.constant 0.000000e+00 : f32
    %401 = vector.broadcast %41 : f32 to vector<1x96xf32>
    %402 = vector.broadcast %cst_190 : f32 to vector<1x96xf32>
    %403 = arith.select %400, %401, %402 : vector<1x96xi1>, vector<1x96xf32>
    %404 = arith.addf %398, %403 : vector<1x96xf32>
    %405 = vector.broadcast %404 : vector<1x96xf32> to vector<16x96xf32>
    %406 = arith.mulf %397, %405 : vector<16x96xf32>
    %407 = arith.addf %396, %406 : vector<16x96xf32>
    %cst_191 = arith.constant 0.000000e+00 : f32
    %408 = vector.broadcast %cst_191 : f32 to vector<16x96xf32>
    %409 = arith.maximumf %407, %408 : vector<16x96xf32>
    %c0_192 = arith.constant 0 : index
    %c0_193 = arith.constant 0 : index
    %c0_194 = arith.constant 0 : index
    %c0_195 = arith.constant 0 : index
    %410 = vector.load %arg6[%c0_192, %c0_193, %c0_194, %c0_195] : memref<2x16x4x96xf32, #tpu.memory_space<vmem>>, vector<1x16x1x96xf32>
    %411 = vector.shape_cast %410 : vector<1x16x1x96xf32> to vector<16x96xf32>
    %412 = vector.shape_cast %409 : vector<16x96xf32> to vector<1x16x1x96xf32>
    tpu.vector_store %arg6[%c0_192, %c0_193, %c0_194, %c0_195], %412 {strides = array<i32>} : memref<2x16x4x96xf32, #tpu.memory_space<vmem>>, vector<1x16x1x96xf32>,
    %c1_196 = arith.constant 1 : index
    %c0_197 = arith.constant 0 : index
    %c0_198 = arith.constant 0 : index
    %c0_199 = arith.constant 0 : index
    %413 = vector.load %arg6[%c1_196, %c0_197, %c0_198, %c0_199] : memref<2x16x4x96xf32, #tpu.memory_space<vmem>>, vector<1x16x1x96xf32>
    %414 = vector.shape_cast %413 : vector<1x16x1x96xf32> to vector<16x96xf32>
    %415 = vector.shape_cast %409 : vector<16x96xf32> to vector<1x16x1x96xf32>
    tpu.vector_store %arg6[%c1_196, %c0_197, %c0_198, %c0_199], %415 {strides = array<i32>} : memref<2x16x4x96xf32, #tpu.memory_space<vmem>>, vector<1x16x1x96xf32>,
    %416 = vector.extract_strided_slice %187 {offsets = [1, 4], sizes = [16, 96], strides = [1, 1]} : vector<18x104xf32> to vector<16x96xf32>
    %cst_200 = arith.constant 0.000000e+00 : f32
    %417 = vector.broadcast %cst_200 : f32 to vector<1x96xf32>
    %c0_i32_201 = arith.constant 0 : i32
    %418 = vector.broadcast %c0_i32_201 : i32 to vector<1x96xi32>
    %419 = arith.cmpi eq, %246, %418 : vector<1x96xi32>
    %cst_202 = arith.constant 0.000000e+00 : f32
    %420 = vector.broadcast %27 : f32 to vector<1x96xf32>
    %421 = vector.broadcast %cst_202 : f32 to vector<1x96xf32>
    %422 = arith.select %419, %420, %421 : vector<1x96xi1>, vector<1x96xf32>
    %423 = arith.addf %417, %422 : vector<1x96xf32>
    %c1_i32_203 = arith.constant 1 : i32
    %424 = vector.broadcast %c1_i32_203 : i32 to vector<1x96xi32>
    %425 = arith.cmpi eq, %246, %424 : vector<1x96xi32>
    %cst_204 = arith.constant 0.000000e+00 : f32
    %426 = vector.broadcast %28 : f32 to vector<1x96xf32>
    %427 = vector.broadcast %cst_204 : f32 to vector<1x96xf32>
    %428 = arith.select %425, %426, %427 : vector<1x96xi1>, vector<1x96xf32>
    %429 = arith.addf %423, %428 : vector<1x96xf32>
    %c2_i32_205 = arith.constant 2 : i32
    %430 = vector.broadcast %c2_i32_205 : i32 to vector<1x96xi32>
    %431 = arith.cmpi eq, %246, %430 : vector<1x96xi32>
    %cst_206 = arith.constant 0.000000e+00 : f32
    %432 = vector.broadcast %29 : f32 to vector<1x96xf32>
    %433 = vector.broadcast %cst_206 : f32 to vector<1x96xf32>
    %434 = arith.select %431, %432, %433 : vector<1x96xi1>, vector<1x96xf32>
    %435 = arith.addf %429, %434 : vector<1x96xf32>
    %c3_i32_207 = arith.constant 3 : i32
    %436 = vector.broadcast %c3_i32_207 : i32 to vector<1x96xi32>
    %437 = arith.cmpi eq, %246, %436 : vector<1x96xi32>
    %cst_208 = arith.constant 0.000000e+00 : f32
    %438 = vector.broadcast %30 : f32 to vector<1x96xf32>
    %439 = vector.broadcast %cst_208 : f32 to vector<1x96xf32>
    %440 = arith.select %437, %438, %439 : vector<1x96xi1>, vector<1x96xf32>
    %441 = arith.addf %435, %440 : vector<1x96xf32>
    %442 = vector.broadcast %441 : vector<1x96xf32> to vector<16x96xf32>
    %443 = arith.mulf %416, %442 : vector<16x96xf32>
    %444 = arith.addf %247, %443 : vector<16x96xf32>
    %445 = vector.extract_strided_slice %229 {offsets = [1, 0], sizes = [16, 96], strides = [1, 1]} : vector<18x104xf32> to vector<16x96xf32>
    %cst_209 = arith.constant 0.000000e+00 : f32
    %446 = vector.broadcast %cst_209 : f32 to vector<1x96xf32>
    %c0_i32_210 = arith.constant 0 : i32
    %447 = vector.broadcast %c0_i32_210 : i32 to vector<1x96xi32>
    %448 = arith.cmpi eq, %246, %447 : vector<1x96xi32>
    %cst_211 = arith.constant 0.000000e+00 : f32
    %449 = vector.broadcast %29 : f32 to vector<1x96xf32>
    %450 = vector.broadcast %cst_211 : f32 to vector<1x96xf32>
    %451 = arith.select %448, %449, %450 : vector<1x96xi1>, vector<1x96xf32>
    %452 = arith.addf %446, %451 : vector<1x96xf32>
    %c1_i32_212 = arith.constant 1 : i32
    %453 = vector.broadcast %c1_i32_212 : i32 to vector<1x96xi32>
    %454 = arith.cmpi eq, %246, %453 : vector<1x96xi32>
    %cst_213 = arith.constant 0.000000e+00 : f32
    %455 = vector.broadcast %30 : f32 to vector<1x96xf32>
    %456 = vector.broadcast %cst_213 : f32 to vector<1x96xf32>
    %457 = arith.select %454, %455, %456 : vector<1x96xi1>, vector<1x96xf32>
    %458 = arith.addf %452, %457 : vector<1x96xf32>
    %459 = vector.broadcast %458 : vector<1x96xf32> to vector<16x96xf32>
    %460 = arith.mulf %445, %459 : vector<16x96xf32>
    %461 = arith.addf %444, %460 : vector<16x96xf32>
    %462 = vector.extract_strided_slice %229 {offsets = [1, 4], sizes = [16, 96], strides = [1, 1]} : vector<18x104xf32> to vector<16x96xf32>
    %cst_214 = arith.constant 0.000000e+00 : f32
    %463 = vector.broadcast %cst_214 : f32 to vector<1x96xf32>
    %c1_i32_215 = arith.constant 1 : i32
    %464 = vector.broadcast %c1_i32_215 : i32 to vector<1x96xi32>
    %465 = arith.cmpi eq, %246, %464 : vector<1x96xi32>
    %cst_216 = arith.constant 0.000000e+00 : f32
    %466 = vector.broadcast %26 : f32 to vector<1x96xf32>
    %467 = vector.broadcast %cst_216 : f32 to vector<1x96xf32>
    %468 = arith.select %465, %466, %467 : vector<1x96xi1>, vector<1x96xf32>
    %469 = arith.addf %463, %468 : vector<1x96xf32>
    %c2_i32_217 = arith.constant 2 : i32
    %470 = vector.broadcast %c2_i32_217 : i32 to vector<1x96xi32>
    %471 = arith.cmpi eq, %246, %470 : vector<1x96xi32>
    %cst_218 = arith.constant 0.000000e+00 : f32
    %472 = vector.broadcast %27 : f32 to vector<1x96xf32>
    %473 = vector.broadcast %cst_218 : f32 to vector<1x96xf32>
    %474 = arith.select %471, %472, %473 : vector<1x96xi1>, vector<1x96xf32>
    %475 = arith.addf %469, %474 : vector<1x96xf32>
    %c3_i32_219 = arith.constant 3 : i32
    %476 = vector.broadcast %c3_i32_219 : i32 to vector<1x96xi32>
    %477 = arith.cmpi eq, %246, %476 : vector<1x96xi32>
    %cst_220 = arith.constant 0.000000e+00 : f32
    %478 = vector.broadcast %28 : f32 to vector<1x96xf32>
    %479 = vector.broadcast %cst_220 : f32 to vector<1x96xf32>
    %480 = arith.select %477, %478, %479 : vector<1x96xi1>, vector<1x96xf32>
    %481 = arith.addf %475, %480 : vector<1x96xf32>
    %482 = vector.broadcast %481 : vector<1x96xf32> to vector<16x96xf32>
    %483 = arith.mulf %462, %482 : vector<16x96xf32>
    %484 = arith.addf %461, %483 : vector<16x96xf32>
    %485 = vector.extract_strided_slice %187 {offsets = [1, 8], sizes = [16, 96], strides = [1, 1]} : vector<18x104xf32> to vector<16x96xf32>
    %cst_221 = arith.constant 0.000000e+00 : f32
    %486 = vector.broadcast %cst_221 : f32 to vector<1x96xf32>
    %c3_i32_222 = arith.constant 3 : i32
    %487 = vector.broadcast %c3_i32_222 : i32 to vector<1x96xi32>
    %488 = arith.cmpi eq, %246, %487 : vector<1x96xi32>
    %cst_223 = arith.constant 0.000000e+00 : f32
    %489 = vector.broadcast %26 : f32 to vector<1x96xf32>
    %490 = vector.broadcast %cst_223 : f32 to vector<1x96xf32>
    %491 = arith.select %488, %489, %490 : vector<1x96xi1>, vector<1x96xf32>
    %492 = arith.addf %486, %491 : vector<1x96xf32>
    %493 = vector.broadcast %492 : vector<1x96xf32> to vector<16x96xf32>
    %494 = arith.mulf %485, %493 : vector<16x96xf32>
    %495 = arith.addf %484, %494 : vector<16x96xf32>
    %cst_224 = arith.constant 0.000000e+00 : f32
    %496 = vector.broadcast %cst_224 : f32 to vector<1x96xf32>
    %c0_i32_225 = arith.constant 0 : i32
    %497 = vector.broadcast %c0_i32_225 : i32 to vector<1x96xi32>
    %498 = arith.cmpi eq, %246, %497 : vector<1x96xi32>
    %cst_226 = arith.constant 0.000000e+00 : f32
    %499 = vector.broadcast %37 : f32 to vector<1x96xf32>
    %500 = vector.broadcast %cst_226 : f32 to vector<1x96xf32>
    %501 = arith.select %498, %499, %500 : vector<1x96xi1>, vector<1x96xf32>
    %502 = arith.addf %496, %501 : vector<1x96xf32>
    %c1_i32_227 = arith.constant 1 : i32
    %503 = vector.broadcast %c1_i32_227 : i32 to vector<1x96xi32>
    %504 = arith.cmpi eq, %246, %503 : vector<1x96xi32>
    %cst_228 = arith.constant 0.000000e+00 : f32
    %505 = vector.broadcast %38 : f32 to vector<1x96xf32>
    %506 = vector.broadcast %cst_228 : f32 to vector<1x96xf32>
    %507 = arith.select %504, %505, %506 : vector<1x96xi1>, vector<1x96xf32>
    %508 = arith.addf %502, %507 : vector<1x96xf32>
    %c2_i32_229 = arith.constant 2 : i32
    %509 = vector.broadcast %c2_i32_229 : i32 to vector<1x96xi32>
    %510 = arith.cmpi eq, %246, %509 : vector<1x96xi32>
    %cst_230 = arith.constant 0.000000e+00 : f32
    %511 = vector.broadcast %39 : f32 to vector<1x96xf32>
    %512 = vector.broadcast %cst_230 : f32 to vector<1x96xf32>
    %513 = arith.select %510, %511, %512 : vector<1x96xi1>, vector<1x96xf32>
    %514 = arith.addf %508, %513 : vector<1x96xf32>
    %c3_i32_231 = arith.constant 3 : i32
    %515 = vector.broadcast %c3_i32_231 : i32 to vector<1x96xi32>
    %516 = arith.cmpi eq, %246, %515 : vector<1x96xi32>
    %cst_232 = arith.constant 0.000000e+00 : f32
    %517 = vector.broadcast %40 : f32 to vector<1x96xf32>
    %518 = vector.broadcast %cst_232 : f32 to vector<1x96xf32>
    %519 = arith.select %516, %517, %518 : vector<1x96xi1>, vector<1x96xf32>
    %520 = arith.addf %514, %519 : vector<1x96xf32>
    %521 = vector.broadcast %520 : vector<1x96xf32> to vector<16x96xf32>
    %522 = arith.mulf %248, %521 : vector<16x96xf32>
    %523 = arith.addf %495, %522 : vector<16x96xf32>
    %cst_233 = arith.constant 0.000000e+00 : f32
    %524 = vector.broadcast %cst_233 : f32 to vector<1x96xf32>
    %c0_i32_234 = arith.constant 0 : i32
    %525 = vector.broadcast %c0_i32_234 : i32 to vector<1x96xi32>
    %526 = arith.cmpi eq, %246, %525 : vector<1x96xi32>
    %cst_235 = arith.constant 0.000000e+00 : f32
    %527 = vector.broadcast %39 : f32 to vector<1x96xf32>
    %528 = vector.broadcast %cst_235 : f32 to vector<1x96xf32>
    %529 = arith.select %526, %527, %528 : vector<1x96xi1>, vector<1x96xf32>
    %530 = arith.addf %524, %529 : vector<1x96xf32>
    %c1_i32_236 = arith.constant 1 : i32
    %531 = vector.broadcast %c1_i32_236 : i32 to vector<1x96xi32>
    %532 = arith.cmpi eq, %246, %531 : vector<1x96xi32>
    %cst_237 = arith.constant 0.000000e+00 : f32
    %533 = vector.broadcast %40 : f32 to vector<1x96xf32>
    %534 = vector.broadcast %cst_237 : f32 to vector<1x96xf32>
    %535 = arith.select %532, %533, %534 : vector<1x96xi1>, vector<1x96xf32>
    %536 = arith.addf %530, %535 : vector<1x96xf32>
    %537 = vector.broadcast %536 : vector<1x96xf32> to vector<16x96xf32>
    %538 = arith.mulf %277, %537 : vector<16x96xf32>
    %539 = arith.addf %523, %538 : vector<16x96xf32>
    %cst_238 = arith.constant 0.000000e+00 : f32
    %540 = vector.broadcast %cst_238 : f32 to vector<1x96xf32>
    %c1_i32_239 = arith.constant 1 : i32
    %541 = vector.broadcast %c1_i32_239 : i32 to vector<1x96xi32>
    %542 = arith.cmpi eq, %246, %541 : vector<1x96xi32>
    %cst_240 = arith.constant 0.000000e+00 : f32
    %543 = vector.broadcast %36 : f32 to vector<1x96xf32>
    %544 = vector.broadcast %cst_240 : f32 to vector<1x96xf32>
    %545 = arith.select %542, %543, %544 : vector<1x96xi1>, vector<1x96xf32>
    %546 = arith.addf %540, %545 : vector<1x96xf32>
    %c2_i32_241 = arith.constant 2 : i32
    %547 = vector.broadcast %c2_i32_241 : i32 to vector<1x96xi32>
    %548 = arith.cmpi eq, %246, %547 : vector<1x96xi32>
    %cst_242 = arith.constant 0.000000e+00 : f32
    %549 = vector.broadcast %37 : f32 to vector<1x96xf32>
    %550 = vector.broadcast %cst_242 : f32 to vector<1x96xf32>
    %551 = arith.select %548, %549, %550 : vector<1x96xi1>, vector<1x96xf32>
    %552 = arith.addf %546, %551 : vector<1x96xf32>
    %c3_i32_243 = arith.constant 3 : i32
    %553 = vector.broadcast %c3_i32_243 : i32 to vector<1x96xi32>
    %554 = arith.cmpi eq, %246, %553 : vector<1x96xi32>
    %cst_244 = arith.constant 0.000000e+00 : f32
    %555 = vector.broadcast %38 : f32 to vector<1x96xf32>
    %556 = vector.broadcast %cst_244 : f32 to vector<1x96xf32>
    %557 = arith.select %554, %555, %556 : vector<1x96xi1>, vector<1x96xf32>
    %558 = arith.addf %552, %557 : vector<1x96xf32>
    %559 = vector.broadcast %558 : vector<1x96xf32> to vector<16x96xf32>
    %560 = arith.mulf %294, %559 : vector<16x96xf32>
    %561 = arith.addf %539, %560 : vector<16x96xf32>
    %cst_245 = arith.constant 0.000000e+00 : f32
    %562 = vector.broadcast %cst_245 : f32 to vector<1x96xf32>
    %c3_i32_246 = arith.constant 3 : i32
    %563 = vector.broadcast %c3_i32_246 : i32 to vector<1x96xi32>
    %564 = arith.cmpi eq, %246, %563 : vector<1x96xi32>
    %cst_247 = arith.constant 0.000000e+00 : f32
    %565 = vector.broadcast %36 : f32 to vector<1x96xf32>
    %566 = vector.broadcast %cst_247 : f32 to vector<1x96xf32>
    %567 = arith.select %564, %565, %566 : vector<1x96xi1>, vector<1x96xf32>
    %568 = arith.addf %562, %567 : vector<1x96xf32>
    %569 = vector.broadcast %568 : vector<1x96xf32> to vector<16x96xf32>
    %570 = arith.mulf %317, %569 : vector<16x96xf32>
    %571 = arith.addf %561, %570 : vector<16x96xf32>
    %cst_248 = arith.constant 0.000000e+00 : f32
    %572 = vector.broadcast %cst_248 : f32 to vector<1x96xf32>
    %c0_i32_249 = arith.constant 0 : i32
    %573 = vector.broadcast %c0_i32_249 : i32 to vector<1x96xi32>
    %574 = arith.cmpi eq, %246, %573 : vector<1x96xi32>
    %cst_250 = arith.constant 0.000000e+00 : f32
    %575 = vector.broadcast %47 : f32 to vector<1x96xf32>
    %576 = vector.broadcast %cst_250 : f32 to vector<1x96xf32>
    %577 = arith.select %574, %575, %576 : vector<1x96xi1>, vector<1x96xf32>
    %578 = arith.addf %572, %577 : vector<1x96xf32>
    %c1_i32_251 = arith.constant 1 : i32
    %579 = vector.broadcast %c1_i32_251 : i32 to vector<1x96xi32>
    %580 = arith.cmpi eq, %246, %579 : vector<1x96xi32>
    %cst_252 = arith.constant 0.000000e+00 : f32
    %581 = vector.broadcast %48 : f32 to vector<1x96xf32>
    %582 = vector.broadcast %cst_252 : f32 to vector<1x96xf32>
    %583 = arith.select %580, %581, %582 : vector<1x96xi1>, vector<1x96xf32>
    %584 = arith.addf %578, %583 : vector<1x96xf32>
    %c2_i32_253 = arith.constant 2 : i32
    %585 = vector.broadcast %c2_i32_253 : i32 to vector<1x96xi32>
    %586 = arith.cmpi eq, %246, %585 : vector<1x96xi32>
    %cst_254 = arith.constant 0.000000e+00 : f32
    %587 = vector.broadcast %49 : f32 to vector<1x96xf32>
    %588 = vector.broadcast %cst_254 : f32 to vector<1x96xf32>
    %589 = arith.select %586, %587, %588 : vector<1x96xi1>, vector<1x96xf32>
    %590 = arith.addf %584, %589 : vector<1x96xf32>
    %c3_i32_255 = arith.constant 3 : i32
    %591 = vector.broadcast %c3_i32_255 : i32 to vector<1x96xi32>
    %592 = arith.cmpi eq, %246, %591 : vector<1x96xi32>
    %cst_256 = arith.constant 0.000000e+00 : f32
    %593 = vector.broadcast %50 : f32 to vector<1x96xf32>
    %594 = vector.broadcast %cst_256 : f32 to vector<1x96xf32>
    %595 = arith.select %592, %593, %594 : vector<1x96xi1>, vector<1x96xf32>
    %596 = arith.addf %590, %595 : vector<1x96xf32>
    %597 = vector.broadcast %596 : vector<1x96xf32> to vector<16x96xf32>
    %598 = arith.mulf %328, %597 : vector<16x96xf32>
    %599 = arith.addf %571, %598 : vector<16x96xf32>
    %cst_257 = arith.constant 0.000000e+00 : f32
    %600 = vector.broadcast %cst_257 : f32 to vector<1x96xf32>
    %c0_i32_258 = arith.constant 0 : i32
    %601 = vector.broadcast %c0_i32_258 : i32 to vector<1x96xi32>
    %602 = arith.cmpi eq, %246, %601 : vector<1x96xi32>
    %cst_259 = arith.constant 0.000000e+00 : f32
    %603 = vector.broadcast %49 : f32 to vector<1x96xf32>
    %604 = vector.broadcast %cst_259 : f32 to vector<1x96xf32>
    %605 = arith.select %602, %603, %604 : vector<1x96xi1>, vector<1x96xf32>
    %606 = arith.addf %600, %605 : vector<1x96xf32>
    %c1_i32_260 = arith.constant 1 : i32
    %607 = vector.broadcast %c1_i32_260 : i32 to vector<1x96xi32>
    %608 = arith.cmpi eq, %246, %607 : vector<1x96xi32>
    %cst_261 = arith.constant 0.000000e+00 : f32
    %609 = vector.broadcast %50 : f32 to vector<1x96xf32>
    %610 = vector.broadcast %cst_261 : f32 to vector<1x96xf32>
    %611 = arith.select %608, %609, %610 : vector<1x96xi1>, vector<1x96xf32>
    %612 = arith.addf %606, %611 : vector<1x96xf32>
    %613 = vector.broadcast %612 : vector<1x96xf32> to vector<16x96xf32>
    %614 = arith.mulf %357, %613 : vector<16x96xf32>
    %615 = arith.addf %599, %614 : vector<16x96xf32>
    %cst_262 = arith.constant 0.000000e+00 : f32
    %616 = vector.broadcast %cst_262 : f32 to vector<1x96xf32>
    %c1_i32_263 = arith.constant 1 : i32
    %617 = vector.broadcast %c1_i32_263 : i32 to vector<1x96xi32>
    %618 = arith.cmpi eq, %246, %617 : vector<1x96xi32>
    %cst_264 = arith.constant 0.000000e+00 : f32
    %619 = vector.broadcast %46 : f32 to vector<1x96xf32>
    %620 = vector.broadcast %cst_264 : f32 to vector<1x96xf32>
    %621 = arith.select %618, %619, %620 : vector<1x96xi1>, vector<1x96xf32>
    %622 = arith.addf %616, %621 : vector<1x96xf32>
    %c2_i32_265 = arith.constant 2 : i32
    %623 = vector.broadcast %c2_i32_265 : i32 to vector<1x96xi32>
    %624 = arith.cmpi eq, %246, %623 : vector<1x96xi32>
    %cst_266 = arith.constant 0.000000e+00 : f32
    %625 = vector.broadcast %47 : f32 to vector<1x96xf32>
    %626 = vector.broadcast %cst_266 : f32 to vector<1x96xf32>
    %627 = arith.select %624, %625, %626 : vector<1x96xi1>, vector<1x96xf32>
    %628 = arith.addf %622, %627 : vector<1x96xf32>
    %c3_i32_267 = arith.constant 3 : i32
    %629 = vector.broadcast %c3_i32_267 : i32 to vector<1x96xi32>
    %630 = arith.cmpi eq, %246, %629 : vector<1x96xi32>
    %cst_268 = arith.constant 0.000000e+00 : f32
    %631 = vector.broadcast %48 : f32 to vector<1x96xf32>
    %632 = vector.broadcast %cst_268 : f32 to vector<1x96xf32>
    %633 = arith.select %630, %631, %632 : vector<1x96xi1>, vector<1x96xf32>
    %634 = arith.addf %628, %633 : vector<1x96xf32>
    %635 = vector.broadcast %634 : vector<1x96xf32> to vector<16x96xf32>
    %636 = arith.mulf %374, %635 : vector<16x96xf32>
    %637 = arith.addf %615, %636 : vector<16x96xf32>
    %cst_269 = arith.constant 0.000000e+00 : f32
    %638 = vector.broadcast %cst_269 : f32 to vector<1x96xf32>
    %c3_i32_270 = arith.constant 3 : i32
    %639 = vector.broadcast %c3_i32_270 : i32 to vector<1x96xi32>
    %640 = arith.cmpi eq, %246, %639 : vector<1x96xi32>
    %cst_271 = arith.constant 0.000000e+00 : f32
    %641 = vector.broadcast %46 : f32 to vector<1x96xf32>
    %642 = vector.broadcast %cst_271 : f32 to vector<1x96xf32>
    %643 = arith.select %640, %641, %642 : vector<1x96xi1>, vector<1x96xf32>
    %644 = arith.addf %638, %643 : vector<1x96xf32>
    %645 = vector.broadcast %644 : vector<1x96xf32> to vector<16x96xf32>
    %646 = arith.mulf %397, %645 : vector<16x96xf32>
    %647 = arith.addf %637, %646 : vector<16x96xf32>
    %cst_272 = arith.constant 0.000000e+00 : f32
    %648 = vector.broadcast %cst_272 : f32 to vector<16x96xf32>
    %649 = arith.maximumf %647, %648 : vector<16x96xf32>
    %c0_273 = arith.constant 0 : index
    %c0_274 = arith.constant 0 : index
    %c1_275 = arith.constant 1 : index
    %c0_276 = arith.constant 0 : index
    %650 = vector.load %arg6[%c0_273, %c0_274, %c1_275, %c0_276] : memref<2x16x4x96xf32, #tpu.memory_space<vmem>>, vector<1x16x1x96xf32>
    %651 = vector.shape_cast %650 : vector<1x16x1x96xf32> to vector<16x96xf32>
    %652 = vector.shape_cast %649 : vector<16x96xf32> to vector<1x16x1x96xf32>
    tpu.vector_store %arg6[%c0_273, %c0_274, %c1_275, %c0_276], %652 {strides = array<i32>} : memref<2x16x4x96xf32, #tpu.memory_space<vmem>>, vector<1x16x1x96xf32>,
    %c1_277 = arith.constant 1 : index
    %c0_278 = arith.constant 0 : index
    %c1_279 = arith.constant 1 : index
    %c0_280 = arith.constant 0 : index
    %653 = vector.load %arg6[%c1_277, %c0_278, %c1_279, %c0_280] : memref<2x16x4x96xf32, #tpu.memory_space<vmem>>, vector<1x16x1x96xf32>
    %654 = vector.shape_cast %653 : vector<1x16x1x96xf32> to vector<16x96xf32>
    %655 = vector.shape_cast %649 : vector<16x96xf32> to vector<1x16x1x96xf32>
    tpu.vector_store %arg6[%c1_277, %c0_278, %c1_279, %c0_280], %655 {strides = array<i32>} : memref<2x16x4x96xf32, #tpu.memory_space<vmem>>, vector<1x16x1x96xf32>,
    %656 = vector.broadcast %273 : vector<1x96xf32> to vector<16x96xf32>
    %657 = arith.mulf %416, %656 : vector<16x96xf32>
    %658 = arith.addf %247, %657 : vector<16x96xf32>
    %659 = vector.broadcast %290 : vector<1x96xf32> to vector<16x96xf32>
    %660 = arith.mulf %445, %659 : vector<16x96xf32>
    %661 = arith.addf %658, %660 : vector<16x96xf32>
    %662 = vector.broadcast %313 : vector<1x96xf32> to vector<16x96xf32>
    %663 = arith.mulf %462, %662 : vector<16x96xf32>
    %664 = arith.addf %661, %663 : vector<16x96xf32>
    %665 = vector.broadcast %324 : vector<1x96xf32> to vector<16x96xf32>
    %666 = arith.mulf %485, %665 : vector<16x96xf32>
    %667 = arith.addf %664, %666 : vector<16x96xf32>
    %668 = vector.broadcast %353 : vector<1x96xf32> to vector<16x96xf32>
    %669 = arith.mulf %248, %668 : vector<16x96xf32>
    %670 = arith.addf %667, %669 : vector<16x96xf32>
    %671 = vector.broadcast %370 : vector<1x96xf32> to vector<16x96xf32>
    %672 = arith.mulf %277, %671 : vector<16x96xf32>
    %673 = arith.addf %670, %672 : vector<16x96xf32>
    %674 = vector.broadcast %393 : vector<1x96xf32> to vector<16x96xf32>
    %675 = arith.mulf %294, %674 : vector<16x96xf32>
    %676 = arith.addf %673, %675 : vector<16x96xf32>
    %677 = vector.broadcast %404 : vector<1x96xf32> to vector<16x96xf32>
    %678 = arith.mulf %317, %677 : vector<16x96xf32>
    %679 = arith.addf %676, %678 : vector<16x96xf32>
    %cst_281 = arith.constant 0.000000e+00 : f32
    %680 = vector.broadcast %cst_281 : f32 to vector<16x96xf32>
    %681 = arith.maximumf %679, %680 : vector<16x96xf32>
    %c0_282 = arith.constant 0 : index
    %c0_283 = arith.constant 0 : index
    %c2_284 = arith.constant 2 : index
    %c0_285 = arith.constant 0 : index
    %682 = vector.load %arg6[%c0_282, %c0_283, %c2_284, %c0_285] : memref<2x16x4x96xf32, #tpu.memory_space<vmem>>, vector<1x16x1x96xf32>
    %683 = vector.shape_cast %682 : vector<1x16x1x96xf32> to vector<16x96xf32>
    %684 = vector.shape_cast %681 : vector<16x96xf32> to vector<1x16x1x96xf32>
    tpu.vector_store %arg6[%c0_282, %c0_283, %c2_284, %c0_285], %684 {strides = array<i32>} : memref<2x16x4x96xf32, #tpu.memory_space<vmem>>, vector<1x16x1x96xf32>,
    %c1_286 = arith.constant 1 : index
    %c0_287 = arith.constant 0 : index
    %c2_288 = arith.constant 2 : index
    %c0_289 = arith.constant 0 : index
    %685 = vector.load %arg6[%c1_286, %c0_287, %c2_288, %c0_289] : memref<2x16x4x96xf32, #tpu.memory_space<vmem>>, vector<1x16x1x96xf32>
    %686 = vector.shape_cast %685 : vector<1x16x1x96xf32> to vector<16x96xf32>
    %687 = vector.shape_cast %681 : vector<16x96xf32> to vector<1x16x1x96xf32>
    tpu.vector_store %arg6[%c1_286, %c0_287, %c2_288, %c0_289], %687 {strides = array<i32>} : memref<2x16x4x96xf32, #tpu.memory_space<vmem>>, vector<1x16x1x96xf32>,
    %688 = vector.extract_strided_slice %121 {offsets = [2, 4], sizes = [16, 96], strides = [1, 1]} : vector<18x104xf32> to vector<16x96xf32>
    %689 = vector.broadcast %441 : vector<1x96xf32> to vector<16x96xf32>
    %690 = arith.mulf %688, %689 : vector<16x96xf32>
    %691 = arith.addf %247, %690 : vector<16x96xf32>
    %692 = vector.extract_strided_slice %154 {offsets = [2, 0], sizes = [16, 96], strides = [1, 1]} : vector<18x104xf32> to vector<16x96xf32>
    %693 = vector.broadcast %458 : vector<1x96xf32> to vector<16x96xf32>
    %694 = arith.mulf %692, %693 : vector<16x96xf32>
    %695 = arith.addf %691, %694 : vector<16x96xf32>
    %696 = vector.extract_strided_slice %154 {offsets = [2, 4], sizes = [16, 96], strides = [1, 1]} : vector<18x104xf32> to vector<16x96xf32>
    %697 = vector.broadcast %481 : vector<1x96xf32> to vector<16x96xf32>
    %698 = arith.mulf %696, %697 : vector<16x96xf32>
    %699 = arith.addf %695, %698 : vector<16x96xf32>
    %700 = vector.extract_strided_slice %121 {offsets = [2, 8], sizes = [16, 96], strides = [1, 1]} : vector<18x104xf32> to vector<16x96xf32>
    %701 = vector.broadcast %492 : vector<1x96xf32> to vector<16x96xf32>
    %702 = arith.mulf %700, %701 : vector<16x96xf32>
    %703 = arith.addf %699, %702 : vector<16x96xf32>
    %704 = vector.broadcast %520 : vector<1x96xf32> to vector<16x96xf32>
    %705 = arith.mulf %416, %704 : vector<16x96xf32>
    %706 = arith.addf %703, %705 : vector<16x96xf32>
    %707 = vector.broadcast %536 : vector<1x96xf32> to vector<16x96xf32>
    %708 = arith.mulf %445, %707 : vector<16x96xf32>
    %709 = arith.addf %706, %708 : vector<16x96xf32>
    %710 = vector.broadcast %558 : vector<1x96xf32> to vector<16x96xf32>
    %711 = arith.mulf %462, %710 : vector<16x96xf32>
    %712 = arith.addf %709, %711 : vector<16x96xf32>
    %713 = vector.broadcast %568 : vector<1x96xf32> to vector<16x96xf32>
    %714 = arith.mulf %485, %713 : vector<16x96xf32>
    %715 = arith.addf %712, %714 : vector<16x96xf32>
    %716 = vector.broadcast %596 : vector<1x96xf32> to vector<16x96xf32>
    %717 = arith.mulf %248, %716 : vector<16x96xf32>
    %718 = arith.addf %715, %717 : vector<16x96xf32>
    %719 = vector.broadcast %612 : vector<1x96xf32> to vector<16x96xf32>
    %720 = arith.mulf %277, %719 : vector<16x96xf32>
    %721 = arith.addf %718, %720 : vector<16x96xf32>
    %722 = vector.broadcast %634 : vector<1x96xf32> to vector<16x96xf32>
    %723 = arith.mulf %294, %722 : vector<16x96xf32>
    %724 = arith.addf %721, %723 : vector<16x96xf32>
    %725 = vector.broadcast %644 : vector<1x96xf32> to vector<16x96xf32>
    %726 = arith.mulf %317, %725 : vector<16x96xf32>
    %727 = arith.addf %724, %726 : vector<16x96xf32>
    %cst_290 = arith.constant 0.000000e+00 : f32
    %728 = vector.broadcast %cst_290 : f32 to vector<16x96xf32>
    %729 = arith.maximumf %727, %728 : vector<16x96xf32>
    %c0_291 = arith.constant 0 : index
    %c0_292 = arith.constant 0 : index
    %c3_293 = arith.constant 3 : index
    %c0_294 = arith.constant 0 : index
    %730 = vector.load %arg6[%c0_291, %c0_292, %c3_293, %c0_294] : memref<2x16x4x96xf32, #tpu.memory_space<vmem>>, vector<1x16x1x96xf32>
    %731 = vector.shape_cast %730 : vector<1x16x1x96xf32> to vector<16x96xf32>
    %732 = vector.shape_cast %729 : vector<16x96xf32> to vector<1x16x1x96xf32>
    tpu.vector_store %arg6[%c0_291, %c0_292, %c3_293, %c0_294], %732 {strides = array<i32>} : memref<2x16x4x96xf32, #tpu.memory_space<vmem>>, vector<1x16x1x96xf32>,
    %c1_295 = arith.constant 1 : index
    %c0_296 = arith.constant 0 : index
    %c3_297 = arith.constant 3 : index
    %c0_298 = arith.constant 0 : index
    %733 = vector.load %arg6[%c1_295, %c0_296, %c3_297, %c0_298] : memref<2x16x4x96xf32, #tpu.memory_space<vmem>>, vector<1x16x1x96xf32>
    %734 = vector.shape_cast %733 : vector<1x16x1x96xf32> to vector<16x96xf32>
    %735 = vector.shape_cast %729 : vector<16x96xf32> to vector<1x16x1x96xf32>
    tpu.vector_store %arg6[%c1_295, %c0_296, %c3_297, %c0_298], %735 {strides = array<i32>} : memref<2x16x4x96xf32, #tpu.memory_space<vmem>>, vector<1x16x1x96xf32>,
    return
  }
  func.func @transform_0(%arg0: i32) -> (i32, i32) {
    %c0_i32 = arith.constant 0 : i32
    %c0_i32_0 = arith.constant 0 : i32
    %c0_i32_1 = arith.constant 0 : i32
    return %c0_i32, %c0_i32_0 : i32, i32
  }
  func.func @transform_1(%arg0: i32) -> (i32, i32) {
    %c0_i32 = arith.constant 0 : i32
    %c0_i32_0 = arith.constant 0 : i32
    %c0_i32_1 = arith.constant 0 : i32
    return %c0_i32, %c0_i32_0 : i32, i32
  }
  func.func @transform_2(%arg0: i32) -> i32 {
    %c0_i32 = arith.constant 0 : i32
    %c0_i32_0 = arith.constant 0 : i32
    return %c0_i32 : i32
  }
  func.func @transform_3(%arg0: i32) -> (i32, i32) {
    %c0_i32 = arith.constant 0 : i32
    %c0_i32_0 = arith.constant 0 : i32
    %c0_i32_1 = arith.constant 0 : i32
    return %c0_i32, %c0_i32_0 : i32, i32
  }
  func.func @transform_4(%arg0: i32) -> i32 {
    %c0_i32 = arith.constant 0 : i32
    %c0_i32_0 = arith.constant 0 : i32
    return %c0_i32 : i32
  }
  func.func @transform_5(%arg0: i32) -> (i32, i32, i32, i32) {
    %c0_i32 = arith.constant 0 : i32
    %c0_i32_0 = arith.constant 0 : i32
    %c0_i32_1 = arith.constant 0 : i32
    %c0_i32_2 = arith.constant 0 : i32
    return %c0_i32, %arg0, %c0_i32_0, %c0_i32_1 : i32, i32, i32, i32
  }
}

</mosaic_0001>

<bundles_post_ra>
// kernel: model_forward.1
= control target key start
LH: loop header
LB: loop body
LE: loop exit
PB: predicated region body
PF: predicated region fallthrough
CT: control target
= control target key end

     0   :  { %s4333_s0 = inlined_call_operand.vmem [shape: f32[36,112], index: 0, kind: input, shape index: {}]   ;;  %s4334_s1 = inlined_call_operand.vmem [shape: f32[5,5], index: 1, kind: input, shape index: {}]   ;;  %s4335_s2 = inlined_call_operand.<no memory space> [shape: f32[1], index: 2, kind: input, shape index: {}]   ;;  %s4336_s3 = inlined_call_operand.vmem [shape: f32[5,5], index: 3, kind: input, shape index: {}]   ;;  %s4337_s4 = inlined_call_operand.<no memory space> [shape: f32[1], index: 4, kind: input, shape index: {}]   ;;  %s4338_s5 = inlined_call_operand.vmem [shape: f32[2,32,4,96], index: 5, kind: output, shape index: {}]  }
   0x1   :  { %10 = sst [smem:[#allocation2]] %s4335_s2 }
   0x2   :  { %11 = sst [smem:[#allocation3]] %s4337_s4 }
   0x3   :  { %12 = vsyncpa [#allocation5], 0 }
   0x4   :  { %13 = vsyncpa [#allocation7], 0  ;;  %s2597_s22 = smov 0   ;;  %s2599_s23 = smov 0  }
   0x5   :  { %s2601_s24 = smov 0  }
   0x6 LB: > { %s2610_s2 = sadd.s32 4294967295, %s2553_s24   ;;  %s2612_s4 = sadd.s32 1, %s2553_s24   ;;  %s2553_s24 = sphi %s2601_s24, %s4427_s24   ;;  %s2549_s23 = sphi %s2599_s23, %s4426_s23   ;;  %s2545_s22 = sphi %s2597_s22, %s4425_s22  }
   0x7   : > { %s128_s25 = ssub.s32 %s2553_s24, %s2612_s4  ;;  %s131_s26 = sadd.s32 1, %s2549_s23 }
   0x8   : > { %p129_p0 = scmp.eq.s32.totalorder %s128_s25, 0  ;;  %p141_p1 = scmp.ne.s32.totalorder %s2549_s23, %s2545_s22 }
   0x9   : > { %p142_p2 = scmp.eq.s32.totalorder %s2610_s2, 1  ;;  %p2309_p3 = scmp.ge.s32.totalorder %s2553_s24, 1 }
   0xa   : > { %s2620_s27 = scalar_select %p129_p0, %s2549_s23, %s131_s26  }
   0xb   : > { %p2622_p4 = por %p142_p2, %p141_p1  ;;  %p155_p5 = scmp.lt.s32.totalorder %s2553_s24, 3 }
   0xc   : > { %p2459_p6 = scmp.eq.s32.totalorder %s2610_s2, 0  ;;  %s170_s6 = sshll.u32 %s4334_s1, 4  ;;  %s171_s6 = int_to_ptr.vmem [resolvable:$true] %s170_s6 }
   0xd   : > { %p156_p7 = pnand %p2309_p3, %p155_p5  ;;  %s183_s9 = sshll.u32 %s4336_s3, 4  ;;  %s184_s9 = int_to_ptr.vmem [resolvable:$true] %s183_s9 }
   0xe   : > { %s2555_s10 = smov [#allocation4]   ;;  %s2556_s11 = smov [#allocation6]  }
   0xf   : > { %p2452_p8 = pneg %p156_p7 }
  0x10   : > { %199 = sbr.rel (%p156_p7) target bundleno = 980 (0x3d4), region = 40 }
  0x11   : > { %p2453_p9 = pnand %p2459_p6, %p2452_p8 }
  0x13   : > { %2455 = dma.vmem_to_smem (!%p2453_p9), %s171_s6, 128, %s2555_s10, [#allocation5]  }
  0x14   : > { %2458 = dma.vmem_to_smem (!%p2453_p9), %s184_s9, 128, %s2556_s11, [#allocation7]  }
  0x15   : > { %2536 = dma.done.wait (%p2459_p6), [#allocation5], 128  }
  0x16   : > { %2538 = vsyncadd (%p2459_p6), [#allocation5], 4294967168 }
  0x17   : > { %2540 = dma.done.wait (%p2459_p6), [#allocation7], 128  }
  0x18   : > { %2542 = vsyncadd (%p2459_p6), [#allocation7], 4294967168 }
  0x19   : > { %211 = sfence }
  0x1a   : > { %s2316_s12 = sshll.u32 %s2610_s2, 4  ;;  %s2324_s13 = sld [smem:[#allocation4 + $0x83]] }
  0x1b   : > { %s2649_s16 = scalar_lea.vmem %s4333_s0, %s2316_s12  ;;  %s2334_s17 = sld [smem:[#allocation4 + $0x183]] }
  0x1c   : > { %v2652_v0 = vld [vmem:[%s2649_s16 + $0x11] sm:$0x3]  ;;  %v2655_v1 = vld [vmem:[%s2649_s16 + $0x1] sm:$0xff]  ;;  %s4341_s18 = smov 4   ;;  %v2666_v8 = vld [vmem:[%s2649_s16 + $0x9] sm:$0xff]  ;;  %s2323_s19 = sld [smem:[#allocation4 + $0x82]] }
  0x1d   : > { %v2658_v3 = vld [vmem:[%s2649_s16 + $0x8] sm:$0xff]  ;;  %v2669_v9 = vld [vmem:[%s2649_s16] sm:$0xff]  ;;  %v2673_v10 = vld [vmem:[%s2649_s16 + $0x10] sm:$0x3]  ;;  %s2325_s20 = sld [smem:[#allocation4 + $0x84]]  ;;  %s4345_s24 = smov 8  }
  0x1e   : > { %s2333_s21 = sld [smem:[#allocation4 + $0x182]]  ;;  %v2705_v31 = vld [vmem:[%s2649_s16 + $0x2] sm:$0xff]  ;;  %v2708_v32 = vld [vmem:[%s2649_s16 + $0xa] sm:$0xff]  ;;  %v2712_v33 = vld [vmem:[%s2649_s16 + $0x12] sm:$0x3] }
  0x1f   : > { %s2335_s25 = sld [smem:[#allocation4 + $0x184]] }
  0x20   : > { %v315_v2 = vstv %s2324_s13  ;;  %s2319_s26 = sld [smem:[#allocation4 + $0x3]] }
  0x21   : > { %v318_v4 = vmul.f32 %v2652_v0, %v315_v2  ;;  %v316_v5 = vmul.f32 %v2655_v1, %v315_v2  ;;  %v341_v6 = vstv %s2334_s17  ;;  %v317_v11 = vmul.f32 %v2666_v8, %v315_v2  ;;  %s2329_s29 = sld [smem:[#allocation4 + $0x103]] }
  0x22   : > { %v343_v7 = vmul.f32 %v341_v6, %v2658_v3  ;;  %v342_v12 = vmul.f32 %v341_v6, %v2669_v9  ;;  %v344_v13 = vmul.f32 %v341_v6, %v2673_v10  ;;  %v402_v14 = vstv %s2323_s19  ;;  %s2339_s30 = sld [smem:[#allocation4 + $0x203]] }
  0x23   : > { %326 = vrot.lane.b32.xlu1 %v318_v4, %s4341_s18  ;;  %322 = vrot.lane.b32.xlu0 %v316_v5, %s4341_s18  ;;  %v403_v15 = vmul.f32 %v2655_v1, %v402_v14  ;;  %v404_v16 = vmul.f32 %v2666_v8, %v402_v14  ;;  %v405_v17 = vmul.f32 %v2652_v0, %v402_v14  ;;  %v421_v18 = vstv %s2325_s20  ;;  %s2318_s6 = sld [smem:[#allocation4 + $0x2]]  ;;  %s4339_s20 = smov 124  }
  0x24   : > { %350 = vrot.lane.b32.xlu2 %v343_v7, %s4341_s18  ;;  %v422_v19 = vmul.f32 %v2655_v1, %v421_v18  ;;  %v423_v20 = vmul.f32 %v2666_v8, %v421_v18  ;;  %v424_v21 = vmul.f32 %v2652_v0, %v421_v18  ;;  %v447_v22 = vstv %s2333_s21  ;;  %s2320_s7 = sld [smem:[#allocation4 + $0x4]] }
  0x25   : > { %v448_v23 = vmul.f32 %v447_v22, %v2669_v9  ;;  %v449_v24 = vmul.f32 %v447_v22, %v2658_v3  ;;  %v450_v25 = vmul.f32 %v447_v22, %v2673_v10  ;;  %v466_v26 = vstv %s2335_s25  ;;  %s2328_s8 = sld [smem:[#allocation4 + $0x102]] }
  0x26   : > { %v467_v27 = vmul.f32 %v466_v26, %v2669_v9  ;;  %v468_v28 = vmul.f32 %v466_v26, %v2658_v3  ;;  %v469_v29 = vmul.f32 %v466_v26, %v2673_v10  ;;  %v514_v30 = vstv %s2319_s26  ;;  %s2330_s9 = sld [smem:[#allocation4 + $0x104]]  ;;  %s4343_s26 = smov 120  }
  0x27   : > { %v515_v34 = vmul.f32 %v2705_v31, %v514_v30  ;;  %v516_v35 = vmul.f32 %v2708_v32, %v514_v30  ;;  %v517_v36 = vmul.f32 %v2712_v33, %v514_v30  ;;  %v540_v37 = vstv %s2329_s29  ;;  %s2338_s10 = sld [smem:[#allocation4 + $0x202]] }
  0x28   : > { %v541_v38 = vmul.f32 %v2655_v1, %v540_v37  ;;  %v542_v39 = vmul.f32 %v2666_v8, %v540_v37  ;;  %v543_v40 = vmul.f32 %v2652_v0, %v540_v37  ;;  %v566_v41 = vstv %s2339_s30  ;;  %s2340_s11 = sld [smem:[#allocation4 + $0x204]] }
  0x29   : > { %v567_v42 = vmul.f32 %v566_v41, %v2669_v9  ;;  %v568_v43 = vmul.f32 %v566_v41, %v2658_v3  ;;  %v569_v44 = vmul.f32 %v566_v41, %v2673_v10  ;;  %v622_v45 = vstv %s2318_s6  ;;  %s2322_s13 = sld [smem:[#allocation4 + $0x81]] }
  0x2a   : > { %v623_v46 = vmul.f32 %v2705_v31, %v622_v45  ;;  %v624_v47 = vmul.f32 %v2708_v32, %v622_v45  ;;  %v625_v48 = vmul.f32 %v2712_v33, %v622_v45  ;;  %v641_v49 = vstv %s2320_s7  ;;  %s280_s14 = sld [smem:[#allocation2]] }
  0x2b   : > { %324 = vrot.lane.b32.xlu0 %v317_v11, %s4341_s18  ;;  %348 = vrot.lane.b32.xlu1 %v342_v12, %s4341_s18  ;;  %v642_v50 = vmul.f32 %v2705_v31, %v641_v49  ;;  %v643_v51 = vmul.f32 %v2708_v32, %v641_v49  ;;  %v644_v52 = vmul.f32 %v2712_v33, %v641_v49  ;;  %v667_v53 = vstv %s2328_s8  ;;  %s2321_s15 = sld [smem:[#allocation4 + $0x80]] }
  0x2c   : > { %352 = vrot.lane.b32.xlu2 %v344_v13, %s4341_s18  ;;  %v668_v54 = vmul.f32 %v2655_v1, %v667_v53  ;;  %v669_v55 = vmul.f32 %v2666_v8, %v667_v53  ;;  %v670_v56 = vmul.f32 %v2652_v0, %v667_v53  ;;  %v686_v57 = vstv %s2330_s9  ;;  %s2332_s16 = sld [smem:[#allocation4 + $0x181]] }
  0x2d   : > { %v687_v59 = vmul.f32 %v2655_v1, %v686_v57  ;;  %v688_v60 = vmul.f32 %v2666_v8, %v686_v57  ;;  %v689_v61 = vmul.f32 %v2652_v0, %v686_v57  ;;  %v712_v62 = vstv %s2338_s10  ;;  %s2331_s17 = sld [smem:[#allocation4 + $0x180]] }
  0x2e   : > { %v713_v2 = vmul.f32 %v712_v62, %v2669_v9  ;;  %v714_v4 = vmul.f32 %v712_v62, %v2658_v3  ;;  %v715_v5 = vmul.f32 %v712_v62, %v2673_v10  ;;  %v731_v6 = vstv %s2340_s11  ;;  %s2317_s19 = sld [smem:[#allocation4 + $0x1]] }
  0x2f   : > { %v308_v7 = vstv %s2322_s13  ;;  %v732_v12 = vmul.f32 %v731_v6, %v2669_v9  ;;  %v733_v13 = vmul.f32 %v731_v6, %v2658_v3  ;;  %s2327_s21 = sld [smem:[#allocation4 + $0x101]] }
  0x30   : > { %v309_v14 = vmul.f32 %v2655_v1, %v308_v7  ;;  %v311_v26 = vmul.f32 %v2652_v0, %v308_v7  ;;  %s2337_s25 = sld [smem:[#allocation4 + $0x201]] }
  0x31   : > { %s230_s29 = sld [smem:[#allocation4]] }
  0x32   : > { %s2326_s30 = sld [smem:[#allocation4 + $0x100]] }
  0x33   : > { %409 = vrot.lane.b32.xlu0 %v403_v15, %s4341_s18  ;;  %411 = vrot.lane.b32.xlu1 %v404_v16, %s4341_s18  ;;  %v2769_v15 = vstv %s280_s14  ;;  %v734_v16 = vmul.f32 %v731_v6, %v2673_v10  ;;  %s2336_s6 = sld [smem:[#allocation4 + $0x200]] }
  0x34   : > { %413 = vrot.lane.b32.xlu2 %v405_v17, %s4341_s18  ;;  %v395_v17 = vstv %s2321_s15  ;;  %v507_v57 = vstv %s2317_s19  ;;  %s2824_s7 = sld [smem:[#allocation6 + $0x83]] }
  0x35   : > { %v398_v18 = vmul.f32 %v2652_v0, %v395_v17  ;;  %s2826_s8 = sld [smem:[#allocation6 + $0x84]] }
  0x36   : > { %s2829_s9 = sld [smem:[#allocation6 + $0x80]] }
  0x37   : > { %s2835_s10 = sld [smem:[#allocation6 + $0x81]] }
  0x38   : > { %s2837_s11 = sld [smem:[#allocation6 + $0x180]] }
  0x39   : > { %s2840_s13 = sld [smem:[#allocation6]] }
  0x3a   : > { %s2845_s14 = sld [smem:[#allocation6 + $0x1]] }
  0x3b   : > { %428 = vrot.lane.b32.xlu0 %v422_v19, %s4345_s24  ;;  %430 = vrot.lane.b32.xlu1 %v423_v20, %s4345_s24  ;;  %v312_v19 = vadd.f32 %v309_v14, %v2769_v15  ;;  %v334_v20 = vstv %s2332_s16  ;;  %s2847_s15 = sld [smem:[#allocation6 + $0x183]] }
  0x3c   : > { %432 = vrot.lane.b32.xlu2 %v424_v21, %s4345_s24  ;;  %s2853_s16 = sld [smem:[#allocation6 + $0x184]] }
  0x3d   : > { %s2867_s19 = sld [smem:[#allocation6 + $0x82]] }
  0x43   : > { %454 = vrot.lane.b32.xlu0 %v448_v23, %s4341_s18  ;;  %456 = vrot.lane.b32.xlu1 %v449_v24, %s4341_s18  ;;  %v310_v23 = vmul.f32 %v2666_v8, %v308_v7 }
  0x44   : > { %458 = vrot.lane.b32.xlu2 %v450_v25, %s4341_s18  ;;  %v401_v25 = vadd.f32 %v398_v18, %v2769_v15 }
  0x4b   : > { %473 = vrot.lane.b32.xlu0 %v467_v27, %s4345_s24  ;;  %475 = vrot.lane.b32.xlu1 %v468_v28, %s4345_s24  ;;  %v335_v28 = vmul.f32 %v334_v20, %v2669_v9 }
  0x4c   : > { %477 = vrot.lane.b32.xlu2 %v469_v29, %s4345_s24  ;;  %v313_v29 = vadd.f32 %v310_v23, %v2769_v15 }
  0x53   : > { %521 = vrot.lane.b32.xlu0 %v515_v34, %s4341_s18  ;;  %523 = vrot.lane.b32.xlu1 %v516_v35, %s4341_s18  ;;  %v314_v34 = vadd.f32 %v311_v26, %v2769_v15  ;;  %v336_v35 = vmul.f32 %v334_v20, %v2658_v3 }
  0x54   : > { %525 = vrot.lane.b32.xlu2 %v517_v36, %s4341_s18 }
  0x5b   : > { %547 = vrot.lane.b32.xlu0 %v541_v38, %s4341_s18  ;;  %549 = vrot.lane.b32.xlu1 %v542_v39, %s4341_s18 }
  0x5c   : > { %551 = vrot.lane.b32.xlu2 %v543_v40, %s4341_s18  ;;  %v440_v40 = vstv %s2331_s17  ;;  %s2856_s17 = sld [smem:[#allocation6 + $0x181]] }
  0x63   : > { %573 = vrot.lane.b32.xlu0 %v567_v42, %s4341_s18  ;;  %575 = vrot.lane.b32.xlu1 %v568_v43, %s4341_s18  ;;  %v337_v42 = vmul.f32 %v334_v20, %v2673_v10  ;;  %v443_v43 = vmul.f32 %v440_v40, %v2673_v10 }
  0x64   : > { %577 = vrot.lane.b32.xlu2 %v569_v44, %s4341_s18 }
  0x6b   : > { %629 = vrot.lane.b32.xlu0 %v623_v46, %s4341_s18  ;;  %631 = vrot.lane.b32.xlu1 %v624_v47, %s4341_s18 }
  0x6c   : > { %633 = vrot.lane.b32.xlu2 %v625_v48, %s4341_s18 }
  0x73   : > { %648 = vrot.lane.b32.xlu0 %v642_v50, %s4345_s24  ;;  %650 = vrot.lane.b32.xlu1 %v643_v51, %s4345_s24 }
  0x74   : > { %652 = vrot.lane.b32.xlu2 %v644_v52, %s4345_s24 }
  0x7b   : > { %674 = vrot.lane.b32.xlu0 %v668_v54, %s4341_s18  ;;  %676 = vrot.lane.b32.xlu1 %v669_v55, %s4341_s18  ;;  %v397_v55 = vmul.f32 %v2666_v8, %v395_v17 }
  0x7c   : > { %678 = vrot.lane.b32.xlu2 %v670_v56, %s4341_s18 }
  0x7d   : > { %v400_v62 = vadd.f32 %v397_v55, %v2769_v15 }
  0x7e   : > { %v2750_v58 = vpop.permute.xlu2 %350 }
  0x83   : > { %693 = vrot.lane.b32.xlu0 %v687_v59, %s4345_s24  ;;  %695 = vrot.lane.b32.xlu1 %v688_v60, %s4345_s24  ;;  %v510_v60 = vmul.f32 %v2712_v33, %v507_v57 }
  0x84   : > { %697 = vrot.lane.b32.xlu2 %v689_v61, %s4345_s24 }
  0x86   : > { %v2758_v63 = vpop.permute.xlu2 %352 }
  0x8b   : > { %719 = vrot.lane.b32.xlu0 %v713_v2, %s4341_s18  ;;  %721 = vrot.lane.b32.xlu1 %v714_v4, %s4341_s18  ;;  %v396_v2 = vmul.f32 %v2655_v1, %v395_v17  ;;  %v442_v17 = vmul.f32 %v440_v40, %v2658_v3 }
  0x8c   : > { %723 = vrot.lane.b32.xlu2 %v715_v5, %s4341_s18  ;;  %v513_v5 = vadd.f32 %v510_v60, %v2769_v15  ;;  %s2941_s18 = sld [smem:[#allocation6 + $0x182]] }
  0x8d   : > { %v399_v14 = vadd.f32 %v396_v2, %v2769_v15 }
  0x8e   : > { %v414_v11 = vpop.permute.xlu2 %413 }
  0x8f   : > { %v420_v30 = vadd.f32 %v414_v11, %v401_v25  ;;  %v441_v25 = vmul.f32 %v440_v40, %v2669_v9 }
  0x93   : > { %738 = vrot.lane.b32.xlu0 %v732_v12, %s4345_s24  ;;  %740 = vrot.lane.b32.xlu1 %v733_v13, %s4345_s24  ;;  %v533_v13 = vstv %s2327_s21  ;;  %s2873_s21 = sld [smem:[#allocation6 + $0x3]] }
  0x94   : > { %742 = vrot.lane.b32.xlu2 %v734_v16, %s4345_s24  ;;  %v536_v18 = vmul.f32 %v2652_v0, %v533_v13 }
  0x95   : > { %v327_v21 = vpop.permute.xlu1 %326  ;;  %v323_v22 = vpop.permute.xlu0 %322 }
  0x96   : > { %v433_v24 = vpop.permute.xlu2 %432  ;;  %v331_v27 = vadd.f32 %v323_v22, %v312_v19  ;;  %v333_v45 = vadd.f32 %v327_v21, %v314_v34 }
  0x97   : > { %v439_v46 = vadd.f32 %v433_v24, %v420_v30 }
  0x98   : > { %v338_v36 = vadd.f32 %v335_v28, %v331_v27  ;;  %v340_v50 = vadd.f32 %v337_v42, %v333_v45  ;;  %v559_v28 = vstv %s2337_s25  ;;  %s2875_s25 = sld [smem:[#allocation6 + $0x4]] }
  0x99   : > { %v446_v51 = vadd.f32 %v443_v43, %v439_v46  ;;  %v562_v30 = vmul.f32 %v559_v28, %v2673_v10  ;;  %v509_v43 = vmul.f32 %v2708_v32, %v507_v57 }
  0x9a   : > { %v359_v61 = vadd.f32 %v2758_v63, %v340_v50 }
  0x9d   : > { %v325_v37 = vpop.permute.xlu0 %324  ;;  %v349_v38 = vpop.permute.xlu1 %348 }
  0x9e   : > { %v332_v39 = vadd.f32 %v325_v37, %v313_v29  ;;  %v357_v41 = vadd.f32 %v349_v38, %v338_v36  ;;  %v459_v44 = vpop.permute.xlu2 %458 }
  0x9f   : > { %v465_v59 = vadd.f32 %v459_v44, %v446_v51 }
  0xa0   : > { %v339_v47 = vadd.f32 %v336_v35, %v332_v39  ;;  %v377_v48 = vmax.f32 %v357_v41, 0.0 }
  0xa2   : > { %383 = vrot.lane.b32.xlu0 %v377_v48, %s4339_s20  ;;  %v358_v49 = vadd.f32 %v2750_v58, %v339_v47  ;;  %v379_v58 = vmax.f32 %v359_v61, 0.0  ;;  %v508_v48 = vmul.f32 %v2705_v31, %v507_v57  ;;  %v615_v61 = vstv %s230_s29  ;;  %s2877_s29 = sld [smem:[#allocation6 + $0x2]] }
  0xa3   : > { %v618_v57 = vmul.f32 %v2712_v33, %v615_v61 }
  0xa4   : > { %v378_v52 = vmax.f32 %v358_v49, 0.0  ;;  %387 = vrot.lane.b32.xlu2 %v379_v58, %s4339_s20  ;;  %v512_v49 = vadd.f32 %v509_v43, %v2769_v15 }
  0xa5   : > { %v410_v53 = vpop.permute.xlu0 %409  ;;  %v412_v54 = vpop.permute.xlu1 %411 }
  0xa6   : > { %385 = vrot.lane.b32.xlu1 %v378_v52, %s4339_s20  ;;  %v478_v56 = vpop.permute.xlu2 %477  ;;  %v419_v11 = vadd.f32 %v412_v54, %v400_v62  ;;  %v418_v20 = vadd.f32 %v410_v53, %v399_v14  ;;  %v511_v52 = vadd.f32 %v508_v48, %v2769_v15  ;;  %v535_v54 = vmul.f32 %v2666_v8, %v533_v13 }
  0xa7   : > { %v484_v4 = vadd.f32 %v478_v56, %v465_v59  ;;  %v534_v59 = vmul.f32 %v2655_v1, %v533_v13 }
  0xa9   : > { %v491_v16 = vmax.f32 %v484_v4, 0.0 }
  0xac   : > { %499 = vrot.lane.b32.xlu2 %v491_v16, %s4343_s26 }
  0xad   : > { %v429_v6 = vpop.permute.xlu0 %428  ;;  %v431_v7 = vpop.permute.xlu1 %430 }
  0xae   : > { %v526_v12 = vpop.permute.xlu2 %525  ;;  %v438_v19 = vadd.f32 %v431_v7, %v419_v11  ;;  %v437_v24 = vadd.f32 %v429_v6, %v418_v20  ;;  %v621_v7 = vadd.f32 %v618_v57, %v2769_v15 }
  0xaf   : > { %v532_v63 = vadd.f32 %v526_v12, %v513_v5  ;;  %v561_v5 = vmul.f32 %v559_v28, %v2658_v3  ;;  %v560_v12 = vmul.f32 %v559_v28, %v2669_v9 }
  0xb0   : > { %v445_v26 = vadd.f32 %v442_v17, %v438_v19  ;;  %v444_v34 = vadd.f32 %v441_v25, %v437_v24 }
  0xb1   : > { %v539_v21 = vadd.f32 %v536_v18, %v532_v63  ;;  %v660_v63 = vstv %s2326_s30  ;;  %s2887_s30 = sld [smem:[#allocation6 + $0x103]] }
  0xb5   : > { %v455_v22 = vpop.permute.xlu0 %454  ;;  %v457_v23 = vpop.permute.xlu1 %456 }
  0xb6   : > { %v552_v27 = vpop.permute.xlu2 %551  ;;  %v464_v35 = vadd.f32 %v457_v23, %v445_v26  ;;  %v463_v36 = vadd.f32 %v455_v22, %v444_v34  ;;  %v663_v22 = vmul.f32 %v2652_v0, %v660_v63  ;;  %v617_v34 = vmul.f32 %v2708_v32, %v615_v61 }
  0xb7   : > { %v558_v29 = vadd.f32 %v552_v27, %v539_v21 }
  0xb9   : > { %v565_v37 = vadd.f32 %v562_v30, %v558_v29  ;;  %v2818_v30 = vstv %s2336_s6  ;;  %s2895_s6 = sld [smem:[#allocation6 + $0x104]] }
  0xba   : > { %v708_v0 = vmul.f32 %v2818_v30, %v2673_v10 }
  0xbd   : > { %v474_v38 = vpop.permute.xlu0 %473  ;;  %v476_v39 = vpop.permute.xlu1 %475 }
  0xbe   : > { %v482_v41 = vadd.f32 %v474_v38, %v463_v36  ;;  %v483_v42 = vadd.f32 %v476_v39, %v464_v35  ;;  %v578_v44 = vpop.permute.xlu2 %577  ;;  %v620_v38 = vadd.f32 %v617_v34, %v2769_v15  ;;  %v873_v34 = vstv %s2856_s17 }
  0xbf   : > { %v584_v45 = vadd.f32 %v578_v44, %v565_v37  ;;  %v616_v44 = vmul.f32 %v2705_v31, %v615_v61 }
  0xc0   : > { %v489_v46 = vmax.f32 %v482_v41, 0.0  ;;  %v490_v40 = vmax.f32 %v483_v42, 0.0  ;;  %v296_v42 = vlaneseq }
  0xc1   : > { %v599_v47 = vmax.f32 %v584_v45, 0.0  ;;  %v619_v31 = vadd.f32 %v616_v44, %v2769_v15  ;;  %v797_v15 = vstv %s2826_s8  ;;  %s4368_s8 = smov 4  }
  0xc2   : > { %497 = vrot.lane.b32.xlu1 %v490_v40, %s4343_s26  ;;  %495 = vrot.lane.b32.xlu0 %v489_v46, %s4343_s26  ;;  %v2832_v10 = vand.u32 127, %v296_v42 }
  0xc3   : > { %607 = vrot.lane.b32.xlu2 %v599_v47, %s4339_s20  ;;  %v662_v47 = vmul.f32 %v2666_v8, %v660_v63  ;;  %v793_v8 = vstv %s2824_s7  ;;  %s4367_s7 = smov 120  }
  0xc4   : > { %vm369_vm11 = vcmp.ge.s32.totalorder %v2832_v10, 4 }
  0xc5   : > { %v522_v50 = vpop.permute.xlu0 %521  ;;  %v524_v51 = vpop.permute.xlu1 %523 }
  0xc6   : > { %v531_v53 = vadd.f32 %v524_v51, %v512_v49  ;;  %v634_v55 = vpop.permute.xlu2 %633  ;;  %v530_v56 = vadd.f32 %v522_v50, %v511_v52  ;;  %v2843_v50 = vand.u32 3, %v2832_v10 }
  0xc7   : > { %v640_v16 = vadd.f32 %v634_v55, %v621_v7  ;;  %v1105_v7 = vstv %s2845_s14 }
  0xc8   : > { %v538_v60 = vadd.f32 %v535_v54, %v531_v53  ;;  %v537_v2 = vadd.f32 %v534_v59, %v530_v56  ;;  %vm784_vm0 = vcmp.eq.s32.totalorder %v2843_v50, 0  ;;  %vm788_vm1 = vcmp.eq.s32.totalorder %v2843_v50, 1 }
  0xc9   : > { %v810_v54 = vsel %vm784_vm0, %v793_v8, 0.0  ;;  %v812_v55 = vsel %vm788_vm1, %v797_v15, 0.0  ;;  %v661_v56 = vmul.f32 %v2655_v1, %v660_v63  ;;  %vm796_vm2 = vcmp.eq.s32.totalorder %v2843_v50, 3 }
  0xca   : > { %v2869_v61 = vadd.f32 %v812_v55, %v810_v54  ;;  %v785_v1 = vstv %s2835_s10  ;;  %vm792_vm3 = vcmp.eq.s32.totalorder %v2843_v50, 2  ;;  %s2919_s10 = sld [smem:[#allocation6 + $0x101]] }
  0xcb   : > { %v835_v63 = vsel %vm792_vm3, %v785_v1, 0.0 }
  0xcd   : > { %v548_v62 = vpop.permute.xlu0 %547  ;;  %v550_v58 = vpop.permute.xlu1 %549 }
  0xce   : > { %v557_v4 = vadd.f32 %v550_v58, %v538_v60  ;;  %v653_v6 = vpop.permute.xlu2 %652  ;;  %v556_v11 = vadd.f32 %v548_v62, %v537_v2  ;;  %v832_v58 = vstv %s2829_s9  ;;  %s2900_s9 = sld [smem:[#allocation6 + $0x100]] }
  0xcf   : > { %v659_v21 = vadd.f32 %v653_v6, %v640_v16  ;;  %v849_v2 = vsel %vm796_vm2, %v832_v58, 0.0  ;;  %v879_v16 = vstv %s2847_s15 }
  0xd0   : > { %v564_v14 = vadd.f32 %v561_v5, %v557_v4  ;;  %v563_v13 = vadd.f32 %v560_v12, %v556_v11  ;;  %v707_v4 = vmul.f32 %v2818_v30, %v2658_v3  ;;  %v1149_v11 = vstv %s2840_s13 }
  0xd1   : > { %v666_v25 = vadd.f32 %v663_v22, %v659_v21  ;;  %v833_v12 = vsel %vm788_vm1, %v832_v58, 0.0  ;;  %v1152_v21 = vsel %vm792_vm3, %v1105_v7, 0.0  ;;  %v1190_v54 = vstv %s2919_s10 }
  0xd5   : > { %v574_v18 = vpop.permute.xlu0 %573  ;;  %v576_v19 = vpop.permute.xlu1 %575 }
  0xd6   : > { %v582_v33 = vadd.f32 %v574_v18, %v563_v13  ;;  %v583_v17 = vadd.f32 %v576_v19, %v564_v14  ;;  %v679_v20 = vpop.permute.xlu2 %678  ;;  %v706_v14 = vmul.f32 %v2818_v30, %v2669_v9  ;;  %v882_v13 = vstv %s2853_s16 }
  0xd7   : > { %v685_v29 = vadd.f32 %v679_v20, %v666_v25  ;;  %v903_v18 = vsel %vm784_vm0, %v879_v16, 0.0  ;;  %v905_v9 = vsel %vm788_vm1, %v882_v13, 0.0  ;;  %v1150_v20 = vsel %vm788_vm1, %v1149_v11, 0.0 }
  0xd8   : > { %v597_v23 = vmax.f32 %v582_v33, 0.0  ;;  %v598_v24 = vmax.f32 %v583_v17, 0.0  ;;  %v926_v17 = vstv %s2837_s11  ;;  %v2921_v22 = vadd.f32 %v905_v9, %v903_v18  ;;  %s225_s11 = sand.u32 1, %s2545_s22   ;;  %s2443_s22 = sshll.u32 (%p2622_p4), %s2610_s2, 6 }
  0xd9   : > { %v789_v25 = vstv %s2867_s19  ;;  %s2373_s19 = sadd.s32 4294967295, %s2316_s12  ;;  %s2956_s12 = sld [smem:[#allocation6 + $0x203]]  ;;  %v798_v9 = vsel %vm796_vm2, %v797_v15, 0.0 }
  0xda   : > { %603 = vrot.lane.b32.xlu0 %v597_v23, %s4339_s20  ;;  %605 = vrot.lane.b32.xlu1 %v598_v24, %s4339_s20  ;;  %s2929_s20 = sld [smem:[#allocation6 + $0x102]]  ;;  %s2315_s13 = sshll.u32 %s225_s11, 7 }
  0xdb   : > { %s3980_s14 = scalar_lea.vmem [#allocation8], %s2315_s13  ;;  %s2073_s17 = scalar_lea.vmem (%p2622_p4), %s4338_s5, %s2443_s22 }
  0xdd   : > { %v630_v26 = vpop.permute.xlu0 %629  ;;  %v632_v27 = vpop.permute.xlu1 %631 }
  0xde   : > { %v698_v28 = vpop.permute.xlu2 %697  ;;  %v639_v43 = vadd.f32 %v632_v27, %v620_v38  ;;  %v638_v53 = vadd.f32 %v630_v26, %v619_v31  ;;  %v1111_v26 = vstv %s2873_s21  ;;  %v786_v27 = vsel %vm784_vm0, %v785_v1, 0.0 }
  0xdf   : > { %v704_v35 = vadd.f32 %v698_v28, %v685_v29  ;;  %v2927_v28 = vadd.f32 %v835_v63, %v833_v12  ;;  %v1114_v29 = vstv %s2875_s25  ;;  %v1127_v30 = vsel %vm784_vm0, %v1111_v26, 0.0 }
  0xe0   : > { %v1153_v38 = vadd.f32 %v1152_v21, %v1150_v20  ;;  %v1234_v31 = vstv %s2900_s9  ;;  %v874_v1 = vsel %vm784_vm0, %v873_v34, 0.0  ;;  %v876_v12 = vstv %s2941_s18  ;;  %s3017_s18 = sld [smem:[#allocation6 + $0x202]] }
  0xe1   : > { %v711_v41 = vadd.f32 %v708_v0, %v704_v35  ;;  %v1108_v35 = vstv %s2877_s29  ;;  %v297_v0 = vshrl.u32 %v296_v42, 7  ;;  %v837_v63 = vsel %vm796_vm2, %v789_v25, 0.0 }
  0xe2   : > { %v877_v15 = vsel %vm788_vm1, %v876_v12, 0.0 }
  0xe3   : > { %v298_v44 = vadd.s32 8, %v297_v0 }
  0xe5   : > { %v649_v36 = vpop.permute.xlu0 %648  ;;  %v651_v37 = vpop.permute.xlu1 %650 }
  0xe6   : > { %v724_v39 = vpop.permute.xlu2 %723  ;;  %v658_v40 = vadd.f32 %v651_v37, %v639_v43  ;;  %v657_v57 = vadd.f32 %v649_v36, %v638_v53  ;;  %v1129_v36 = vsel %vm788_vm1, %v1114_v29, 0.0  ;;  %v950_v37 = vsel %vm796_vm2, %v926_v17, 0.0 }
  0xe7   : > { %v730_v45 = vadd.f32 %v724_v39, %v711_v41  ;;  %v790_v39 = vsel %vm788_vm1, %v789_v25, 0.0  ;;  %v2953_v41 = vadd.f32 %v1129_v36, %v1127_v30 }
  0xe8   : > { %v665_v52 = vadd.f32 %v662_v47, %v658_v40  ;;  %v664_v5 = vadd.f32 %v661_v56, %v657_v57  ;;  %v1199_v40 = vstv %s2895_s6  ;;  %v791_v55 = vadd.f32 %v790_v39, %v786_v27 }
  0xe9   : > { %v794_v56 = vsel %vm792_vm3, %v793_v8, 0.0  ;;  %v1193_v8 = vstv %s2929_s20  ;;  %v838_v27 = vadd.f32 %v837_v63, %v2927_v28  ;;  %v878_v28 = vadd.f32 %v877_v15, %v874_v1  ;;  %s4385_s20 = smov 124  }
  0xea   : > { %v795_v18 = vadd.f32 %v794_v56, %v791_v55  ;;  %v1239_v25 = vsel %vm796_vm2, %v1193_v8, 0.0  ;;  %v929_v39 = vsel %vm792_vm3, %v873_v34, 0.0  ;;  %v1106_v55 = vsel %vm784_vm0, %v1105_v7, 0.0 }
  0xed   : > { %v675_v32 = vpop.permute.xlu0 %674  ;;  %v677_v46 = vpop.permute.xlu1 %676 }
  0xee   : > { %v743_v48 = vpop.permute.xlu2 %742  ;;  %v684_v62 = vadd.f32 %v677_v46, %v665_v52  ;;  %v683_v3 = vadd.f32 %v675_v32, %v664_v5  ;;  %v1154_v32 = vsel %vm796_vm2, %v1108_v35, 0.0  ;;  %v301_v46 = vstv %s2373_s19  ;;  %s2980_s19 = sld [smem:[#allocation6 + $0x200]] }
  0xef   : > { %v749_v49 = vadd.f32 %v743_v48, %v730_v45  ;;  %v1196_v45 = vstv %s2887_s30  ;;  %v2986_v58 = vadd.s32 %v301_v46, %v298_v44 }
  0xf0   : > { %v1212_v47 = vsel %vm784_vm0, %v1196_v45, 0.0 }
  0xf1   : > { %v755_v51 = vmax.f32 %v749_v49, 0.0  ;;  %v299_v49 = vadd.s32 16, %v297_v0  ;;  %vm4347_vm6 = vcmp.ge.s32.totalorder %v2986_v58, 0  ;;  %vm364_vm7 = vcmp.le.s32.totalorder %v2986_v58, 31 }
  0xf2   : > { %vm367_vm12 = vmand %vm4347_vm6, %vm364_vm7  ;;  %vm485_vm7 = vcmp.lt.s32.totalorder %v2832_v10, 96 }
  0xf3   : > { %763 = vrot.lane.b32.xlu2 %v755_v51, %s4343_s26  ;;  %s2967_s26 = sld [smem:[#allocation6 + $0x204]]  ;;  %v1214_v51 = vsel %vm788_vm1, %v1199_v40, 0.0  ;;  %vm3079_vm15 = vmand %vm367_vm12, %vm369_vm11 }
  0xf5   : > { %v694_v59 = vpop.permute.xlu0 %693  ;;  %v696_v60 = vpop.permute.xlu1 %695 }
  0xf6   : > { %v703_v6 = vadd.f32 %v696_v60, %v684_v62  ;;  %v702_v23 = vadd.f32 %v694_v59, %v683_v3  ;;  %v2982_v59 = vadd.f32 %v1214_v51, %v1212_v47  ;;  %v2984_v62 = vadd.s32 %v301_v46, %v297_v0 }
  0xf7   : > { %v1237_v3 = vsel %vm792_vm3, %v1190_v54, 0.0  ;;  %v799_v0 = vadd.f32 %v798_v9, %v795_v18  ;;  %v1109_v51 = vsel %vm788_vm1, %v1108_v35, 0.0  ;;  %v1166_v9 = vsel %vm796_vm2, %v1149_v11, 0.0 }
  0xf8   : > { %v710_v24 = vadd.f32 %v707_v4, %v703_v6  ;;  %v709_v42 = vadd.f32 %v706_v14, %v702_v23  ;;  %v1235_v4 = vsel %vm788_vm1, %v1234_v31, 0.0  ;;  %v3000_v14 = vadd.s32 %v301_v46, %v299_v49 }
  0xf9   : > { %vm4348_vm4 = vcmp.ge.s32.totalorder %v2984_v62, 0  ;;  %vm363_vm5 = vcmp.le.s32.totalorder %v2984_v62, 31  ;;  %v1284_v20 = vstv %s2967_s26  ;;  %v1238_v23 = vadd.f32 %v1237_v3, %v1235_v4  ;;  %s281_s26 = sld [smem:[#allocation3]] }
  0xfa   : > { %vm362_vm8 = vcmp.ge.s32.totalorder %v3000_v14, 0  ;;  %vm365_vm9 = vcmp.le.s32.totalorder %v3000_v14, 31  ;;  %vm366_vm10 = vmand %vm4348_vm4, %vm363_vm5  ;;  %v1278_v46 = vstv %s3017_s18  ;;  %v1112_v4 = vsel %vm792_vm3, %v1111_v26, 0.0 }
  0xfb   : > { %852 = vrot.lane.b32.xlu2 %v849_v2, %s4345_s24  ;;  %v1155_v2 = vadd.f32 %v1154_v32, %v1153_v38  ;;  %v927_v38 = vsel %vm788_vm1, %v926_v17, 0.0  ;;  %vm368_vm13 = vmand %vm362_vm8, %vm365_vm9  ;;  %v1332_v7 = vsel %vm796_vm2, %v1278_v46, 0.0  ;;  %v1194_v26 = vsel %vm788_vm1, %v1193_v8, 0.0 }
  0xfc   : > { %vm3073_vm14 = vmand %vm366_vm10, %vm369_vm11  ;;  %v930_v32 = vadd.f32 %v929_v39, %v927_v38  ;;  %v1191_v3 = vsel %vm784_vm0, %v1190_v54, 0.0  ;;  %v1200_v11 = vsel %vm796_vm2, %v1199_v40, 0.0  ;;  %v1285_v40 = vsel %vm796_vm2, %v1284_v20, 0.0 }
  0xfd   : > { %v720_v19 = vpop.permute.xlu0 %719  ;;  %v722_v33 = vpop.permute.xlu1 %721  ;;  %vm3094_vm5 = vmand %vm368_vm13, %vm369_vm11  ;;  %vm587_vm13 = vcmp.le.s32.totalorder %v3000_v14, 30  ;;  %v1115_v14 = vsel %vm796_vm2, %v1114_v29, 0.0  ;;  %v1195_v8 = vadd.f32 %v1194_v26, %v1191_v3  ;;  %v1197_v29 = vsel %vm792_vm3, %v1196_v45, 0.0 }
  0xfe   : > { %v729_v43 = vadd.f32 %v722_v33, %v710_v24  ;;  %v728_v48 = vadd.f32 %v720_v19, %v709_v42  ;;  %v3019_v19 = vpop.permute.xlu2 %387  ;;  %v1281_v33 = vstv %s2956_s12  ;;  %v1306_v24 = vsel %vm788_vm1, %v1284_v20, 0.0  ;;  %vm488_vm9 = vmand %vm3094_vm5, %vm485_vm7 }
  0xff   : > { %v1304_v21 = vsel %vm784_vm0, %v1281_v33, 0.0  ;;  %v880_v42 = vsel %vm792_vm3, %v879_v16, 0.0  ;;  %vm3124_vm10 = vmand %vm3079_vm15, %vm485_vm7  ;;  %v1198_v15 = vadd.f32 %v1197_v29, %v1195_v8 }
 0x100   : > { %v3047_v30 = vadd.f32 %v1306_v24, %v1304_v21  ;;  %v881_v47 = vadd.f32 %v880_v42, %v878_v28  ;;  %vm3134_vm12 = vmand %vm3073_vm14, %vm485_vm7  ;;  %v1279_v21 = vsel %vm788_vm1, %v1278_v46, 0.0 }
 0x101   : > { %v1201_v24 = vadd.f32 %v1200_v11, %v1198_v15 }
 0x103   : > { %953 = vrot.lane.b32.xlu2 %v950_v37, %s4345_s24  ;;  %s2988_s24 = sld [smem:[#allocation6 + $0x201]]  ;;  %v1327_v37 = vstv %s2980_s19 }
 0x104   : > { %v1328_v16 = vsel %vm788_vm1, %v1327_v37, 0.0  ;;  %vm4382_vm1 = vcmp.ge.s32.totalorder %v2984_v62, 0 }
 0x105   : > { %v739_v52 = vpop.permute.xlu0 %738  ;;  %v741_v53 = vpop.permute.xlu1 %740 }
 0x106   : > { %v747_v60 = vadd.f32 %v739_v52, %v728_v48  ;;  %v748_v57 = vadd.f32 %v741_v53, %v729_v43  ;;  %v1240_v43 = vadd.f32 %v1239_v25, %v1238_v23  ;;  %v500_v49 = vpop.permute.xlu2 %499  ;;  %v931_v52 = vsel %vm796_vm2, %v876_v12, 0.0 }
 0x107   : > { %v883_v53 = vsel %vm796_vm2, %v882_v13, 0.0  ;;  %v3118_v56 = vsel %vm488_vm9, %v500_v49, 0.0  ;;  %vm590_vm9 = vmand %vm362_vm8, %vm587_vm13  ;;  %vm373_vm8 = vcmp.lt.s32.totalorder %v2832_v10, 100  ;;  %v1251_v25 = vsel %vm796_vm2, %v1234_v31, 0.0 }
 0x108   : > { %v753_v5 = vmax.f32 %v747_v60, 0.0  ;;  %v754_v6 = vmax.f32 %v748_v57, 0.0  ;;  %v932_v57 = vadd.f32 %v931_v52, %v930_v32  ;;  %v884_v1 = vadd.f32 %v883_v53, %v881_v47  ;;  %vm593_vm6 = vmand %vm590_vm9, %vm369_vm11 }
 0x109   : > { %v1275_v36 = vstv %s2988_s24  ;;  %vm3149_vm4 = vmand %vm593_vm6, %vm485_vm7  ;;  %s4381_s24 = smov 8  }
 0x10a   : > { %761 = vrot.lane.b32.xlu1 %v754_v6, %s4367_s7  ;;  %759 = vrot.lane.b32.xlu0 %v753_v5, %s4367_s7  ;;  %v1330_v44 = vsel %vm792_vm3, %v1275_v36, 0.0  ;;  %vm596_vm13 = vmand %vm593_vm6, %vm373_vm8  ;;  %v1276_v23 = vsel %vm784_vm0, %v1275_v36, 0.0  ;;  %vm585_vm0 = vcmp.le.s32.totalorder %v2984_v62, 30 }
 0x10b   : > { %1157 = vrot.lane.b32.xlu2 %v1155_v2, %s4368_s8  ;;  %v1331_v35 = vadd.f32 %v1330_v44, %v1328_v16  ;;  %v1110_v2 = vadd.f32 %v1109_v51, %v1106_v55  ;;  %v1280_v45 = vadd.f32 %v1279_v21, %v1276_v23  ;;  %vm3208_vm6 = vmand %vm4382_vm1, %vm585_vm0 }
 0x10c   : > { %vm375_vm9 = vmand %vm3079_vm15, %vm373_vm8  ;;  %vm586_vm15 = vcmp.le.s32.totalorder %v2986_v58, 30 }
 0x10d   : > { %v1333_v5 = vadd.f32 %v1332_v7, %v1331_v35  ;;  %v1113_v12 = vadd.f32 %v1112_v4, %v1110_v2 }
 0x10f   : > { %v1116_v63 = vadd.f32 %v1115_v14, %v1113_v12 }
 0x112   : > { %840 = vrot.lane.b32.xlu1 %v838_v27, %s4368_s8  ;;  %801 = vrot.lane.b32.xlu0 %v799_v0, %s4368_s8  ;;  %v1282_v27 = vsel %vm792_vm3, %v1281_v33, 0.0  ;;  %v1351_v33 = vsel %vm796_vm2, %v1327_v37, 0.0  ;;  %vm374_vm3 = vmand %vm3073_vm14, %vm373_vm8 }
 0x113   : > { %1242 = vrot.lane.b32.xlu2 %v1240_v43, %s4368_s8  ;;  %v1283_v0 = vadd.f32 %v1282_v27, %v1280_v45  ;;  %vm376_vm2 = vmand %vm3094_vm5, %vm373_vm8  ;;  %vm4391_vm5 = vcmp.ge.s32.totalorder %v2986_v58, 0 }
 0x114   : > { %v384_v50 = vpop.permute.xlu0 %383  ;;  %v3239_v39 = vsel %vm376_vm2, %v3019_v19, 0.0 }
 0x115   : > { %v1286_v31 = vadd.f32 %v1285_v40, %v1283_v0  ;;  %v3234_v37 = vsel %vm374_vm3, %v384_v50, 0.0 }
 0x118   : > { %v386_v62 = vpop.permute.xlu1 %385 }
 0x119   : > { %v3236_v38 = vsel %vm375_vm9, %v386_v62, 0.0  ;;  %v3389_v62 = vstv %s281_s26 }
 0x11a   : > { %934 = vrot.lane.b32.xlu1 %v932_v57, %s4368_s8  ;;  %886 = vrot.lane.b32.xlu0 %v884_v1, %s4368_s8 }
 0x11b   : > { %1335 = vrot.lane.b32.xlu2 %v1333_v5, %s4368_s8 }
 0x11d   : > { %v608_v18 = vpop.permute.xlu2 %607 }
 0x11e   : > { %v3179_v54 = vsel %vm596_vm13, %v608_v18, 0.0  ;;  %vm589_vm13 = vmand %vm4391_vm5, %vm586_vm15 }
 0x11f   : > { %vm3291_vm0 = vmand %vm589_vm13, %vm369_vm11 }
 0x120   : > { %vm751_vm1 = vmand %vm3291_vm0, %vm485_vm7 }
 0x122   : > { %1118 = vrot.lane.b32.xlu1 %v1116_v63, %s4368_s8  ;;  %1169 = vrot.lane.b32.xlu0 %v1166_v9, %s4381_s24 }
 0x12a   : > { %1203 = vrot.lane.b32.xlu1 %v1201_v24, %s4368_s8  ;;  %1254 = vrot.lane.b32.xlu0 %v1251_v25, %s4381_s24 }
 0x132   : > { %1288 = vrot.lane.b32.xlu1 %v1286_v31, %s4368_s8  ;;  %1354 = vrot.lane.b32.xlu0 %v1351_v33, %s4381_s24 }
 0x134   : > { %v3276_v47 = vpop.permute.xlu1 %497  ;;  %v3278_v48 = vpop.permute.xlu0 %495 }
 0x14c   : > { %v3285_v52 = vpop.permute.xlu0 %603  ;;  %v606_v53 = vpop.permute.xlu1 %605 }
 0x14d   : > { %v764_v28 = vpop.permute.xlu2 %763 }
 0x14e   : > { %v3220_v20 = vsel %vm3149_vm4, %v764_v28, 0.0  ;;  %vm3256_vm4 = vmand %vm3208_vm6, %vm369_vm11  ;;  %vm893_vm11 = vcmask 1040384  }
 0x14f   : > { %vm3264_vm14 = vmand %vm3256_vm4, %vm485_vm7  ;;  %v1795_v35 = vmul.f32 %v2982_v59, %v3220_v20 }
 0x150   : > { %vm595_vm7 = vmand %vm3291_vm0, %vm373_vm8 }
 0x151   : > { %v1802_v14 = vrot.slane %v1795_v35, 7 }
 0x155   : > { %v3241_v42 = vpop.permute.xlu2 %852 }
 0x156   : > { %v857_v43 = vmul.f32 %v3241_v42, %v3239_v39  ;;  %v856_v17 = vmul.f32 %v3241_v42, %v3236_v38  ;;  %v855_v34 = vmul.f32 %v3241_v42, %v3234_v37 }
 0x158   : > { %865 = vrot.lane.b32.xlu2 %v857_v43, %s4385_s20  ;;  %863 = vrot.lane.b32.xlu1 %v856_v17, %s4385_s20  ;;  %v3395_v17 = vsel %vm595_vm7, %v606_v53, 0.0 }
 0x159   : > { %861 = vrot.lane.b32.xlu0 %v855_v34, %s4385_s20 }
 0x15d   : > { %v3268_v44 = vpop.permute.xlu2 %953 }
 0x165   : > { %v3270_v32 = vpop.permute.xlu2 %1157 }
 0x166   : > { %4390 = vst [vmem:[#allocation11_spill] sm:$0xff] %v3270_v32  ;;  %v3274_v46 = vmul.f32 %v3270_v32, %v3220_v20 }
 0x16d   : > { %v3280_v49 = vpop.permute.xlu2 %1242 }
 0x16e   : > { %v1818_v51 = vmul.f32 %v3280_v49, %v3220_v20 }
 0x170   : > { %v1825_v55 = vrot.slane %v1818_v51, 7 }
 0x175   : > { %v3329_v3 = vpop.permute.xlu2 %1335 }
 0x176   : > { %4394 = vst [vmem:[#allocation12_spill] sm:$0xff] %v3329_v3 }
 0x17c   : > { %v762_v7 = vpop.permute.xlu1 %761  ;;  %v760_v57 = vpop.permute.xlu0 %759 }
 0x17d   : > { %v3301_v1 = vsel %vm751_vm1, %v762_v7, 0.0  ;;  %v3305_v58 = vsel %vm3264_vm14, %v760_v57, 0.0 }
 0x17e   : > { %v3309_v2 = vmul.f32 %v2921_v22, %v3301_v1  ;;  %v3313_v4 = vmul.f32 %v3047_v30, %v3305_v58  ;;  %v3317_v5 = vmul.f32 %v2921_v22, %v3305_v58  ;;  %v3321_v6 = vmul.f32 %v3047_v30, %v3301_v1 }
 0x17f   : > { %v3325_v12 = vmul.f32 %v2982_v59, %v3305_v58  ;;  %v1794_v26 = vmul.f32 %v2982_v59, %v3301_v1  ;;  %v3336_v9 = vmul.f32 %v3270_v32, %v3305_v58  ;;  %v3342_v11 = vmul.f32 %v3329_v3, %v3305_v58 }
 0x180   : > { %v4356_v63 = vrot.slane %v3309_v2, 7  ;;  %v4355_v8 = vrot.slane %v3313_v4, 7  ;;  %v4354_v18 = vrot.slane %v3317_v5, 7  ;;  %v4353_v29 = vrot.slane %v3321_v6, 7 }
 0x181   : > { %v4352_v15 = vrot.slane %v3325_v12, 7  ;;  %v1800_v21 = vrot.slane %v1794_v26, 7  ;;  %v3353_v24 = vmul.f32 %v3329_v3, %v3301_v1  ;;  %v3357_v45 = vmul.f32 %v3280_v49, %v3305_v58 }
 0x182   : > { %v3349_v23 = vsel %vm893_vm11, %v4354_v18, %v4356_v63  ;;  %v3361_v25 = vmul.f32 %v3280_v49, %v3301_v1  ;;  %v3368_v27 = vsel %vm893_vm11, %v4355_v8, %v4353_v29  ;;  %v4351_v36 = vrot.slane %v3342_v11, 7 }
 0x183   : > { %4395 = vst [vmem:[#allocation13_spill] sm:$0xff] %v3357_v45  ;;  %v3373_v0 = vsel %vm893_vm11, %v4352_v15, %v1800_v21  ;;  %v3376_v40 = vsel %vm893_vm11, %v1800_v21, %v1802_v14  ;;  %v4349_v28 = vrot.slane %v3353_v24, 7 }
 0x184   : > { %4396 = vst [vmem:[#allocation14_spill] sm:$0xff] %v3361_v25  ;;  %v3383_v31 = vpop.permute.xlu1 %840  ;;  %v3385_v33 = vpop.permute.xlu0 %801  ;;  %v4350_v50 = vrot.slane %v3361_v25, 7 }
 0x185   : > { %v3393_v43 = vmul.f32 %v3383_v31, %v3305_v58  ;;  %v3402_v34 = vsel %vm893_vm11, %v4351_v36, %v4349_v28  ;;  %v1506_v16 = vmul.f32 %v3385_v33, %v3179_v54  ;;  %v1505_v35 = vmul.f32 %v3385_v33, %v3395_v17 }
 0x186   : > { %v3410_v7 = vmul.f32 %v3383_v31, %v3220_v20  ;;  %v3418_v57 = vsel %vm893_vm11, %v4350_v50, %v1825_v55  ;;  %v845_v45 = vmul.f32 %v3383_v31, %v3118_v56 }
 0x187   : > { %v3413_v53 = vadd.f32 %v1506_v16, %v3389_v62  ;;  %4398 = vst [vmem:[#allocation16_spill] sm:$0xff] %v3418_v57  ;;  %v3421_v26 = vadd.f32 %v1505_v35, %v3389_v62 }
 0x188   : > { %4397 = vst [vmem:[#allocation15_spill] sm:$0xff] %v3410_v7 }
 0x18c   : > { %v3423_v14 = vpop.permute.xlu1 %934  ;;  %v3425_v51 = vpop.permute.xlu0 %886 }
 0x18d   : > { %v3429_v21 = vmul.f32 %v3423_v14, %v3305_v58  ;;  %v3433_v16 = vmul.f32 %v3423_v14, %v3301_v1 }
 0x18f   : > { %v4357_v28 = vrot.slane %v3429_v21, 7  ;;  %v4358_v55 = vrot.slane %v3433_v16, 7 }
 0x191   : > { %v3442_v35 = vsel %vm893_vm11, %v4357_v28, %v4358_v55 }
 0x194   : > { %v3444_v50 = vpop.permute.xlu1 %1118  ;;  %v3446_v36 = vpop.permute.xlu0 %1169 }
 0x195   : > { %v1728_v15 = vmul.f32 %v3444_v50, %v3234_v37  ;;  %v1729_v29 = vmul.f32 %v3444_v50, %v3236_v38  ;;  %v1730_v18 = vmul.f32 %v3444_v50, %v3239_v39 }
 0x197   : > { %v3455_v8 = vadd.f32 %v1728_v15, %v3389_v62  ;;  %v3458_v63 = vadd.f32 %v1729_v29, %v3389_v62  ;;  %v3461_v28 = vadd.f32 %v1730_v18, %v3389_v62  ;;  %v3477_v18 = vsel %vm3134_vm12, %v3278_v48, 0.0 }
 0x198   : > { %v3482_v29 = vsel %vm3124_vm10, %v3276_v47, 0.0  ;;  %v3486_v15 = vmul.f32 %v3270_v32, %v3301_v1  ;;  %v814_v60 = vmul.f32 %v2869_v61, %v3477_v18  ;;  %v3496_v48 = vmul.f32 %v3383_v31, %v3301_v1  ;;  %vm594_vm10 = vmand %vm3256_vm4, %vm373_vm8 }
 0x199   : > { %4399 = vst [vmem:[#allocation17_spill] sm:$0xff] %v3455_v8  ;;  %v3506_v13 = vsel %vm594_vm10, %v3285_v52, 0.0  ;;  %v1174_v47 = vmul.f32 %v3446_v36, %v3179_v54  ;;  %v1217_v10 = vmul.f32 %v2982_v59, %v3482_v29  ;;  %v1216_v19 = vmul.f32 %v2982_v59, %v3477_v18 }
 0x19a   : > { %4400 = vst [vmem:[#allocation18_spill] sm:$0xff] %v3458_v63  ;;  %v1218_v52 = vmul.f32 %v2982_v59, %v3118_v56  ;;  %v1121_v32 = vmul.f32 %v3444_v50, %v3506_v13  ;;  %vm1071_vm12 = vcmask 778240  }
 0x19b   : > { %4401 = vst [vmem:[#allocation19_spill] sm:$0xff] %v3461_v28 }
 0x19c   : > { %v3463_v55 = vpop.permute.xlu0 %1254  ;;  %4402 = vst [vmem:[#allocation20_spill] sm:$0xff] %v3496_v48  ;;  %v1760_v48 = vmul.f32 %v3446_v36, %v3239_v39 }
 0x19d   : > { %v1259_v57 = vmul.f32 %v3463_v55, %v3239_v39  ;;  %v1258_v25 = vmul.f32 %v3463_v55, %v3236_v38  ;;  %v1257_v3 = vmul.f32 %v3463_v55, %v3234_v37 }
 0x19f   : > { %1267 = vrot.lane.b32.xlu0 %v1259_v57, %s4385_s20  ;;  %1265 = vrot.lane.b32.xlu2 %v1258_v25, %s4385_s20  ;;  %v816_v57 = vmul.f32 %v2869_v61, %v3118_v56  ;;  %v1173_v25 = vmul.f32 %v3446_v36, %v3395_v17 }
 0x1a0   : > { %1263 = vrot.lane.b32.xlu1 %v1257_v3, %s4385_s20  ;;  %v815_v3 = vmul.f32 %v2869_v61, %v3482_v29 }
 0x1a7   : > { %824 = vrot.lane.b32.xlu0 %v816_v57, %s4368_s8  ;;  %822 = vrot.lane.b32.xlu2 %v815_v3, %s4368_s8  ;;  %v1172_v57 = vmul.f32 %v3446_v36, %v3506_v13  ;;  %v956_v3 = vmul.f32 %v3268_v44, %v3506_v13 }
 0x1a8   : > { %820 = vrot.lane.b32.xlu1 %v814_v60, %s4368_s8  ;;  %v957_v60 = vmul.f32 %v3268_v44, %v3395_v17 }
 0x1af   : > { %1182 = vrot.lane.b32.xlu0 %v1174_v47, %s4385_s20  ;;  %1180 = vrot.lane.b32.xlu2 %v1173_v25, %s4385_s20  ;;  %v960_v47 = vrot.slane %v956_v3, 7  ;;  %v961_v25 = vrot.slane %v957_v60, 7  ;;  %v4404_v3 = vrot.slane %v3313_v4, 7  ;;  %v4405_v60 = vrot.slane %v3317_v5, 7 }
 0x1b0   : > { %1178 = vrot.lane.b32.xlu1 %v1172_v57, %s4385_s20  ;;  %v1132_v57 = vmul.f32 %v2953_v41, %v3301_v1 }
 0x1b1   : > { %v962_v59 = vsel %vm893_vm11, %v960_v47, %v961_v25 }
 0x1b7   : > { %1224 = vrot.lane.b32.xlu0 %v1217_v10, %s4368_s8  ;;  %1222 = vrot.lane.b32.xlu2 %v1216_v19, %s4368_s8  ;;  %v1131_v10 = vmul.f32 %v2953_v41, %v3305_v58  ;;  %v1133_v19 = vmul.f32 %v2953_v41, %v3220_v20 }
 0x1b8   : > { %1226 = vrot.lane.b32.xlu1 %v1218_v52, %s4368_s8  ;;  %v4403_v52 = vrot.slane %v3309_v2, 7  ;;  %v4407_v2 = vrot.slane %v3321_v6, 7  ;;  %v1512_v6 = vmul.f32 %v2869_v61, %v3220_v20  ;;  %v3589_v20 = vpop.permute.xlu1 %1203 }
 0x1bf   : > { %963 = vrot.lane.b32.xlu0 %v960_v47, %s4385_s20  ;;  %967 = vrot.lane.b32.xlu2 %v961_v25, %s4385_s20  ;;  %v3552_v47 = vpop.permute.xlu0 %1354 }
 0x1c0   : > { %965 = vrot.lane.b32.xlu1 %v962_v59, %s4385_s20  ;;  %4406 = vst [vmem:[#allocation21_spill] sm:$0xff] %v3552_v47  ;;  %v1358_v25 = vmul.f32 %v3552_v47, %v3395_v17  ;;  %v1357_v59 = vmul.f32 %v3552_v47, %v3506_v13 }
 0x1c2   : > { %v1362_v4 = vrot.slane %v1358_v25, 7  ;;  %v1361_v5 = vrot.slane %v1357_v59, 7  ;;  %v3604_v25 = vpop.permute.xlu1 %1288  ;;  %v1583_v59 = vmul.f32 %v3268_v44, %v3236_v38 }
 0x1c7   : > { %1139 = vrot.lane.b32.xlu0 %v1132_v57, %s4368_s8  ;;  %1137 = vrot.lane.b32.xlu2 %v1131_v10, %s4368_s8  ;;  %v1363_v57 = vsel %vm893_vm11, %v1361_v5, %v1362_v4  ;;  %v1535_v10 = vmul.f32 %v3241_v42, %v3395_v17 }
 0x1c8   : > { %1141 = vrot.lane.b32.xlu1 %v1133_v19, %s4368_s8  ;;  %v1534_v19 = vmul.f32 %v3241_v42, %v3506_v13 }
 0x1cf   : > { %918 = vrot.lane.b32.xlu0 %v4403_v52, %s4368_s8  ;;  %1315 = vrot.lane.b32.xlu2 %v4404_v3, %s4368_s8  ;;  %v1558_v52 = vmul.f32 %v2921_v22, %v3477_v18  ;;  %v1560_v3 = vmul.f32 %v2921_v22, %v3118_v56 }
 0x1d0   : > { %914 = vrot.lane.b32.xlu1 %v4405_v60, %s4368_s8  ;;  %v805_v60 = vmul.f32 %v3385_v33, %v3236_v38 }
 0x1d7   : > { %1317 = vrot.lane.b32.xlu0 %v3368_v27, %s4368_s8  ;;  %916 = vrot.lane.b32.xlu2 %v3349_v23, %s4368_s8  ;;  %v1511_v27 = vmul.f32 %v2869_v61, %v3301_v1  ;;  %v1510_v23 = vmul.f32 %v2869_v61, %v3305_v58  ;;  %v1536_v1 = vmul.f32 %v3241_v42, %v3179_v54  ;;  %v3587_v61 = vpop.permute.xlu2 %865 }
 0x1d8   : > { %1319 = vrot.lane.b32.xlu1 %v4407_v2, %s4368_s8  ;;  %v1559_v58 = vmul.f32 %v2921_v22, %v3482_v29  ;;  %v1582_v2 = vmul.f32 %v3268_v44, %v3234_v37  ;;  %v1584_v22 = vmul.f32 %v3268_v44, %v3239_v39  ;;  %v844_v44 = vmul.f32 %v3383_v31, %v3482_v29 }
 0x1df   : > { %1368 = vrot.lane.b32.xlu0 %v1362_v4, %s4385_s20  ;;  %1366 = vrot.lane.b32.xlu2 %v1363_v57, %s4385_s20  ;;  %v3616_v4 = vmul.f32 %v3425_v51, %v3506_v13  ;;  %v808_v57 = vadd.f32 %v805_v60, %v3389_v62 }
 0x1e0   : > { %1364 = vrot.lane.b32.xlu1 %v1361_v5, %s4385_s20  ;;  %v3620_v5 = vmul.f32 %v3425_v51, %v3395_v17 }
 0x1e7   : > { %1518 = vrot.lane.b32.xlu0 %v1511_v27, %s4368_s8  ;;  %1516 = vrot.lane.b32.xlu2 %v1510_v23, %s4368_s8 }
 0x1e8   : > { %1520 = vrot.lane.b32.xlu1 %v1512_v6, %s4368_s8  ;;  %v894_v6 = vrot.slane %v3616_v4, 7 }
 0x1ef   : > { %1542 = vrot.lane.b32.xlu0 %v1535_v10, %s4385_s20  ;;  %1540 = vrot.lane.b32.xlu2 %v1534_v19, %s4385_s20  ;;  %v895_v10 = vrot.slane %v3620_v5, 7  ;;  %v1833_v5 = vmul.f32 %v3463_v55, %v3506_v13 }
 0x1f0   : > { %1544 = vrot.lane.b32.xlu1 %v1536_v1, %s4385_s20  ;;  %v864_v1 = vpop.permute.xlu1 %863 }
 0x1f7   : > { %1566 = vrot.lane.b32.xlu0 %v1559_v58, %s4368_s8  ;;  %1564 = vrot.lane.b32.xlu2 %v1558_v52, %s4368_s8  ;;  %v1735_v58 = vmul.f32 %v2953_v41, %v3482_v29  ;;  %v1758_v52 = vmul.f32 %v3446_v36, %v3234_v37 }
 0x1f8   : > { %1568 = vrot.lane.b32.xlu1 %v1560_v3, %s4368_s8  ;;  %v1734_v3 = vmul.f32 %v2953_v41, %v3477_v18 }
 0x1f9   : > { %v3600_v42 = vpop.permute.xlu2 %1265 }
 0x1ff   : > { %1590 = vrot.lane.b32.xlu0 %v1583_v59, %s4385_s20  ;;  %1588 = vrot.lane.b32.xlu2 %v1582_v2, %s4385_s20  ;;  %v896_v59 = vsel %vm893_vm11, %v894_v6, %v895_v10 }
 0x200   : > { %1592 = vrot.lane.b32.xlu1 %v1584_v22, %s4385_s20  ;;  %v862_v22 = vpop.permute.xlu0 %861 }
 0x201   : > { %v823_v27 = vpop.permute.xlu2 %822 }
 0x202   : > { %v830_v23 = vadd.f32 %v823_v27, %v808_v57  ;;  %v1839_v57 = vrot.slane %v1833_v5, 7  ;;  %v1759_v27 = vmul.f32 %v3446_v36, %v3236_v38 }
 0x204   : > { %v847_v19 = vadd.f32 %v844_v44, %v830_v23  ;;  %v4408_v44 = vrot.slane %v3325_v12, 7  ;;  %v1834_v12 = vmul.f32 %v3463_v55, %v3395_v17 }
 0x206   : > { %v871_v60 = vadd.f32 %v864_v1, %v847_v19  ;;  %v1873_v1 = vmul.f32 %v3047_v30, %v3477_v18  ;;  %v1840_v63 = vrot.slane %v1834_v12, 7 }
 0x207   : > { %1742 = vrot.lane.b32.xlu0 %v1735_v58, %s4368_s8  ;;  %1764 = vrot.lane.b32.xlu2 %v1758_v52, %s4385_s20  ;;  %v806_v52 = vmul.f32 %v3385_v33, %v3239_v39 }
 0x208   : > { %1740 = vrot.lane.b32.xlu1 %v1734_v3, %s4368_s8  ;;  %v3638_v2 = vadd.f32 %v896_v59, %v871_v60  ;;  %v1879_v3 = vrot.slane %v1873_v1, 7  ;;  %v804_v60 = vmul.f32 %v3385_v33, %v3234_v37  ;;  %v1736_v59 = vmul.f32 %v2953_v41, %v3118_v56 }
 0x209   : > { %v3640_v4 = vpop.permute.xlu2 %1180  ;;  %v809_v5 = vadd.f32 %v806_v52, %v3389_v62  ;;  %v3673_v41 = vmul.f32 %v3552_v47, %v3234_v37  ;;  %v3684_v47 = vmul.f32 %v3047_v30, %v3482_v29  ;;  %v1841_v12 = vsel %vm893_vm11, %v1839_v57, %v1840_v63 }
 0x20b   : > { %v1919_v7 = vrot.slane %v3673_v41, 7 }
 0x20f   : > { %1844 = vrot.lane.b32.xlu0 %v1839_v57, %s4385_s20  ;;  %1766 = vrot.lane.b32.xlu2 %v1759_v27, %s4385_s20 }
 0x210   : > { %1804 = vrot.lane.b32.xlu1 %v4408_v44, %s4368_s8  ;;  %v807_v44 = vadd.f32 %v804_v60, %v3389_v62 }
 0x211   : > { %v1223_v23 = vpop.permute.xlu2 %1222  ;;  %v3651_v19 = vpop.permute.xlu0 %1267 }
 0x212   : > { %v1264_v58 = vpop.permute.xlu1 %1263 }
 0x217   : > { %1884 = vrot.lane.b32.xlu0 %v1879_v3, %s4368_s8  ;;  %1806 = vrot.lane.b32.xlu2 %v3373_v0, %s4368_s8  ;;  %v843_v0 = vmul.f32 %v3383_v31, %v3477_v18  ;;  %v1835_v31 = vmul.f32 %v3463_v55, %v3179_v54 }
 0x218   : > { %1744 = vrot.lane.b32.xlu1 %v1736_v59, %s4368_s8 }
 0x219   : > { %v3668_v27 = vpop.permute.xlu2 %967  ;;  %v825_v1 = vpop.permute.xlu0 %824  ;;  %v1842_v55 = vrot.slane %v1835_v31, 7 }
 0x21a   : > { %v821_v28 = vpop.permute.xlu1 %820  ;;  %v831_v8 = vadd.f32 %v825_v1, %v809_v5 }
 0x21b   : > { %v829_v59 = vadd.f32 %v821_v28, %v807_v44  ;;  %v1124_v28 = vadd.f32 %v1121_v32, %v3389_v62 }
 0x21c   : > { %v848_v52 = vadd.f32 %v845_v45, %v831_v8 }
 0x21d   : > { %v846_v60 = vadd.f32 %v843_v0, %v829_v59 }
 0x21e   : > { %v872_v8 = vadd.f32 %v3587_v61, %v848_v52  ;;  %v1880_v61 = vrot.slane %v3684_v47, 7  ;;  %v1206_v52 = vmul.f32 %v3589_v20, %v3234_v37 }
 0x21f   : > { %1924 = vrot.lane.b32.xlu0 %v1919_v7, %s4385_s20  ;;  %1846 = vrot.lane.b32.xlu2 %v1841_v12, %s4385_s20  ;;  %v870_v45 = vadd.f32 %v862_v22, %v846_v60  ;;  %v1843_v22 = vsel %vm893_vm11, %v1840_v63, %v1842_v55  ;;  %v1245_v60 = vmul.f32 %v3280_v49, %v3477_v18 }
 0x220   : > { %1768 = vrot.lane.b32.xlu1 %v1760_v48, %s4385_s20  ;;  %v902_v5 = vadd.f32 %v895_v10, %v872_v8  ;;  %v1881_v32 = vsel %vm893_vm11, %v1879_v3, %v1880_v61  ;;  %v1291_v63 = vmul.f32 %v3604_v25, %v3506_v13 }
 0x221   : > { %v1138_v36 = vpop.permute.xlu2 %1137  ;;  %v1183_v44 = vpop.permute.xlu0 %1182  ;;  %v900_v57 = vadd.f32 %v894_v6, %v870_v45 }
 0x222   : > { %v1146_v1 = vadd.f32 %v1138_v36, %v1124_v28  ;;  %v1179_v0 = vpop.permute.xlu1 %1178  ;;  %v1295_v3 = vrot.slane %v1291_v63, 7 }
 0x224   : > { %v1163_v59 = vadd.f32 %v3336_v9, %v1146_v1 }
 0x226   : > { %v1187_v12 = vadd.f32 %v1179_v0, %v1163_v59 }
 0x227   : > { %1848 = vrot.lane.b32.xlu0 %v1843_v22, %s4385_s20  ;;  %1886 = vrot.lane.b32.xlu2 %v1881_v32, %s4368_s8  ;;  %v1123_v22 = vmul.f32 %v3444_v50, %v3179_v54 }
 0x228   : > { %v1209_v48 = vadd.f32 %v1206_v52, %v1187_v12  ;;  %1808 = vrot.lane.b32.xlu1 %v3376_v40, %s4368_s8  ;;  %v4409_v52 = vrot.slane %v3342_v11, 7  ;;  %v1504_v11 = vmul.f32 %v3385_v33, %v3506_v13 }
 0x229   : > { %v1316_v6 = vpop.permute.xlu2 %1315  ;;  %v1225_v9 = vpop.permute.xlu0 %1224  ;;  %v1126_v32 = vadd.f32 %v1123_v22, %v3389_v62 }
 0x22a   : > { %v1231_v10 = vadd.f32 %v1223_v23, %v1209_v48  ;;  %v1227_v31 = vpop.permute.xlu1 %1226  ;;  %v1122_v23 = vmul.f32 %v3444_v50, %v3395_v17  ;;  %v1207_v50 = vmul.f32 %v3589_v20, %v3236_v38 }
 0x22c   : > { %v1248_v8 = vadd.f32 %v1245_v60, %v1231_v10 }
 0x22e   : > { %v1272_v45 = vadd.f32 %v1264_v58, %v1248_v8  ;;  %v1125_v58 = vadd.f32 %v1122_v23, %v3389_v62 }
 0x230   : > { %v1301_v28 = vadd.f32 %v1295_v3, %v1272_v45  ;;  %v1208_v45 = vmul.f32 %v3589_v20, %v3239_v39 }
 0x231   : > { %v917_v36 = vpop.permute.xlu2 %916  ;;  %v964_v1 = vpop.permute.xlu0 %963 }
 0x232   : > { %v1324_v0 = vadd.f32 %v1316_v6, %v1301_v28  ;;  %v924_v55 = vadd.f32 %v917_v36, %v3638_v2  ;;  %v966_v40 = vpop.permute.xlu1 %965  ;;  %v1292_v36 = vmul.f32 %v3604_v25, %v3395_v17 }
 0x234   : > { %v948_v59 = vadd.f32 %v3442_v35, %v924_v55  ;;  %v3720_v12 = vadd.f32 %v4409_v52, %v1324_v0 }
 0x239   : > { %v3726_v48 = vpop.permute.xlu2 %1366  ;;  %v1140_v2 = vpop.permute.xlu0 %1139 }
 0x23a   : > { %v1142_v6 = vpop.permute.xlu1 %1141  ;;  %v1147_v10 = vadd.f32 %v1140_v2, %v1125_v58  ;;  %v1296_v2 = vrot.slane %v1292_v36, 7 }
 0x23b   : > { %v1148_v35 = vadd.f32 %v1142_v6, %v1126_v32 }
 0x23c   : > { %v1164_v60 = vadd.f32 %v3486_v15, %v1147_v10  ;;  %v1507_v15 = vadd.f32 %v1504_v11, %v3389_v62  ;;  %v4410_v10 = vrot.slane %v3433_v16, 7  ;;  %v4411_v11 = vrot.slane %v3429_v21, 7 }
 0x23d   : > { %v1165_v63 = vadd.f32 %v3274_v46, %v1148_v35  ;;  %v1552_v21 = vmul.f32 %v3425_v51, %v3234_v37 }
 0x23e   : > { %v1188_v8 = vadd.f32 %v3640_v4, %v1164_v60  ;;  %v1246_v4 = vmul.f32 %v3280_v49, %v3482_v29 }
 0x23f   : > { %v1189_v28 = vadd.f32 %v1183_v44, %v1165_v63  ;;  %v1247_v44 = vmul.f32 %v3280_v49, %v3118_v56 }
 0x240   : > { %v1210_v0 = vadd.f32 %v1207_v50, %v1188_v8  ;;  %v1297_v8 = vsel %vm893_vm11, %v1295_v3, %v1296_v2  ;;  %v4412_v3 = vrot.slane %v3353_v24, 7 }
 0x241   : > { %v1211_v55 = vadd.f32 %v1208_v45, %v1189_v28  ;;  %v1517_v23 = vpop.permute.xlu2 %1516  ;;  %v919_v33 = vpop.permute.xlu0 %918 }
 0x242   : > { %v915_v52 = vpop.permute.xlu1 %914  ;;  %v1525_v46 = vadd.f32 %v1517_v23, %v1507_v15  ;;  %v925_v22 = vadd.f32 %v919_v33, %v902_v5  ;;  %v1232_v58 = vadd.f32 %v1225_v9, %v1210_v0 }
 0x243   : > { %v923_v32 = vadd.f32 %v915_v52, %v900_v57  ;;  %v1233_v6 = vadd.f32 %v1227_v31, %v1211_v55 }
 0x244   : > { %v949_v35 = vadd.f32 %v4410_v10, %v925_v22  ;;  %v1531_v62 = vadd.f32 %v3393_v43, %v1525_v46  ;;  %v1249_v60 = vadd.f32 %v1246_v4, %v1232_v58 }
 0x245   : > { %v947_v63 = vadd.f32 %v4411_v11, %v923_v32  ;;  %v1250_v5 = vadd.f32 %v1247_v44, %v1233_v6 }
 0x246   : > { %v1273_v9 = vadd.f32 %v3600_v42, %v1249_v60 }
 0x247   : > { %v972_v50 = vadd.f32 %v964_v1, %v947_v63  ;;  %v1274_v57 = vadd.f32 %v3651_v19, %v1250_v5  ;;  %v973_v19 = vadd.f32 %v966_v40, %v948_v59  ;;  %v974_v63 = vadd.f32 %v3668_v27, %v949_v35 }
 0x248   : > { %v1302_v49 = vadd.f32 %v1297_v8, %v1273_v9 }
 0x249   : > { %v975_v45 = vmax.f32 %v972_v50, 0.0  ;;  %v1303_v31 = vadd.f32 %v1296_v2, %v1274_v57  ;;  %v1541_v28 = vpop.permute.xlu2 %1540  ;;  %v1318_v16 = vpop.permute.xlu0 %1317  ;;  %v976_v23 = vmax.f32 %v973_v19, 0.0 }
 0x24a   : > { %v1320_v36 = vpop.permute.xlu1 %1319  ;;  %v1549_v0 = vadd.f32 %v1541_v28, %v1531_v62  ;;  %v1325_v43 = vadd.f32 %v1318_v16, %v1302_v49  ;;  %v4414_v16 = vld [vmem:[#allocation15_spill] sm:$0xff] }
 0x24b   : > { %981 = vst [vmem:[#allocation1] sm:$0xff] %v975_v45  ;;  %v1326_v15 = vadd.f32 %v1320_v36, %v1303_v31  ;;  %v4413_v45 = vld [vmem:[#allocation20_spill] sm:$0xff] }
 0x24c   : > { %v3755_v42 = vadd.f32 %v3402_v34, %v1325_v43  ;;  %v1555_v1 = vadd.f32 %v1552_v21, %v1549_v0  ;;  %v1576_v34 = vmul.f32 %v3423_v14, %v3477_v18 }
 0x24d   : > { %v3759_v55 = vadd.f32 %v4412_v3, %v1326_v15  ;;  %v977_v15 = vmax.f32 %v974_v63, 0.0 }
 0x251   : > { %v1565_v33 = vpop.permute.xlu2 %1564  ;;  %v3761_v52 = vpop.permute.xlu0 %1368 }
 0x252   : > { %v983_v46 = vld [vmem:[#allocation1 + $0x1] ss:$9 sm:$0xff]  ;;  %v987_v58 = vld [vmem:[#allocation1 + $0x3] ss:$9 sm:$0xff]  ;;  %v1365_v4 = vpop.permute.xlu1 %1364  ;;  %v1573_v32 = vadd.f32 %v1565_v33, %v1555_v1 }
 0x253   : > { %v985_v22 = vld [vmem:[#allocation1 + $0x2] ss:$9 sm:$0xff]  ;;  %v989_v44 = vld [vmem:[#allocation1 + $0x4] ss:$9 sm:$0xff]  ;;  %v1009_v59 = vperm.slane %v987_v58, 0  ;;  %v1007_v10 = vperm.slane %v983_v46, 0  ;;  %v1373_v3 = vadd.f32 %v1365_v4, %v3720_v12  ;;  %v1553_v46 = vmul.f32 %v3425_v51, %v3236_v38 }
 0x254   : > { %v991_v2 = vld [vmem:[#allocation1 + $0x5] ss:$9 sm:$0xff]  ;;  %v995_v40 = vld [vmem:[#allocation1 + $0x7] ss:$9 sm:$0xff]  ;;  %v1008_v24 = vperm.slane %v985_v22, 0  ;;  %v3765_v62 = vadd.f32 %v1576_v34, %v1573_v32  ;;  %v1010_v49 = vperm.slane %v989_v44, 0  ;;  %v1554_v58 = vmul.f32 %v3425_v51, %v3239_v39 }
 0x255   : > { %v993_v6 = vld [vmem:[#allocation1 + $0x6] ss:$9 sm:$0xff]  ;;  %1027 = vrot.lane.b32.xlu2 %v1009_v59, %s4385_s20  ;;  %1023 = vrot.lane.b32.xlu0 %v1007_v10, %s4385_s20  ;;  %v1011_v8 = vperm.slane %v991_v2, 0  ;;  %v1376_v59 = vmax.f32 %v1373_v3, 0.0  ;;  %v1577_v51 = vmul.f32 %v3423_v14, %v3482_v29  ;;  %v3821_v3 = vmul.f32 %v3589_v20, %v3395_v17 }
 0x256   : > { %996 = vst [vmem:[#allocation1] sm:$0xff] %v976_v23  ;;  %1025 = vrot.lane.b32.xlu1 %v1008_v24, %s4385_s20  ;;  %v1012_v57 = vperm.slane %v993_v6, 0  ;;  %v1013_v6 = vperm.slane %v995_v40, 0  ;;  %v1578_v40 = vmul.f32 %v3423_v14, %v3118_v56 }
 0x259   : > { %v3770_v60 = vpop.permute.xlu2 %1588  ;;  %v1519_v11 = vpop.permute.xlu0 %1518 }
 0x25a   : > { %v1521_v5 = vpop.permute.xlu1 %1520  ;;  %v1526_v9 = vadd.f32 %v1519_v11, %v3421_v26 }
 0x25b   : > { %v1527_v50 = vadd.f32 %v1521_v5, %v3413_v53 }
 0x25c   : > { %v1532_v31 = vadd.f32 %v4413_v45, %v1526_v9 }
 0x25d   : > { %v998_v28 = vld [vmem:[#allocation1 + $0x1] ss:$9 sm:$0xff]  ;;  %v1533_v36 = vadd.f32 %v4414_v16, %v1527_v50  ;;  %v1001_v21 = vld [vmem:[#allocation1 + $0x4] ss:$9 sm:$0xff]  ;;  %1033 = vrot.lane.b32.xlu2 %v1012_v57, %s4385_s20  ;;  %1029 = vrot.lane.b32.xlu0 %v1010_v49, %s4385_s20  ;;  %v1004_v53 = vld [vmem:[#allocation1 + $0x7] ss:$9 sm:$0xff]  ;;  %v1374_v57 = vadd.f32 %v3726_v48, %v3755_v42 }
 0x25e   : > { %v997_v0 = vld [vmem:[#allocation1] ss:$9 sm:$0xff]  ;;  %v999_v43 = vld [vmem:[#allocation1 + $0x2] ss:$9 sm:$0xff]  ;;  %1031 = vrot.lane.b32.xlu1 %v1011_v8, %s4385_s20  ;;  %v1015_v32 = vperm.slane %v998_v28, 0  ;;  %v1018_v5 = vperm.slane %v1001_v21, 0 }
 0x25f   : > { %v1000_v27 = vld [vmem:[#allocation1 + $0x3] ss:$9 sm:$0xff]  ;;  %v1002_v26 = vld [vmem:[#allocation1 + $0x5] ss:$9 sm:$0xff]  ;;  %v1014_v44 = vperm.slane %v997_v0, 0  ;;  %v1016_v8 = vperm.slane %v999_v43, 0 }
 0x260   : > { %v1003_v35 = vld [vmem:[#allocation1 + $0x6] ss:$9 sm:$0xff]  ;;  %v1017_v9 = vperm.slane %v1000_v27, 0  ;;  %v1377_v16 = vmax.f32 %v1374_v57, 0.0  ;;  %v1021_v21 = vperm.slane %v1004_v53, 0 }
 0x261   : > { %1005 = vst [vmem:[#allocation1] sm:$0xff] %v977_v15  ;;  %v3780_v1 = vpop.permute.xlu2 %1764  ;;  %v1543_v19 = vpop.permute.xlu0 %1542  ;;  %v1020_v15 = vperm.slane %v1003_v35, 0  ;;  %v4415_v53 = vld [vmem:[#allocation11_spill] sm:$0xff] }
 0x262   : > { %v1545_v23 = vpop.permute.xlu1 %1544  ;;  %v1550_v33 = vadd.f32 %v1543_v19, %v1532_v31  ;;  %v1019_v19 = vperm.slane %v1002_v26, 0  ;;  %v1753_v35 = vmul.f32 %v4415_v53, %v3482_v29 }
 0x263   : > { %v1551_v22 = vadd.f32 %v1545_v23, %v1533_v36  ;;  %v1375_v23 = vadd.f32 %v3761_v52, %v3759_v55 }
 0x264   : > { %v1556_v2 = vadd.f32 %v1553_v46, %v1550_v33  ;;  %v1776_v33 = vmul.f32 %v3589_v20, %v3506_v13  ;;  %v1783_v46 = vrot.slane %v3821_v3, 7  ;;  %v1858_v3 = vmul.f32 %v3604_v25, %v3239_v39 }
 0x265   : > { %v1557_v34 = vadd.f32 %v1554_v58, %v1551_v22  ;;  %1039 = vrot.lane.b32.xlu2 %v1015_v32, %s4385_s20  ;;  %1035 = vrot.lane.b32.xlu0 %v1013_v6, %s4385_s20  ;;  %v1378_v17 = vmax.f32 %v1375_v23, 0.0  ;;  %v4416_v58 = vld [vmem:[#allocation18_spill] sm:$0xff] }
 0x266   : > { %1037 = vrot.lane.b32.xlu1 %v1014_v44, %s4385_s20  ;;  %v1782_v55 = vrot.slane %v1776_v33, 7  ;;  %v1752_v44 = vmul.f32 %v4415_v53, %v3477_v18 }
 0x268   : > { %v3790_v12 = vld [vmem:[#allocation1] ss:$9 sm:$0xff] }
 0x269   : > { %1382 = vst [vmem:[#allocation1] sm:$0xff] %v1376_v59  ;;  %v1567_v4 = vpop.permute.xlu0 %1566  ;;  %v1767_v63 = vpop.permute.xlu2 %1766 }
 0x26a   : > { %v1569_v24 = vpop.permute.xlu1 %1568  ;;  %v1574_v10 = vadd.f32 %v1567_v4, %v1556_v2  ;;  %v4417_v2 = vld [vmem:[#allocation17_spill] sm:$0xff] }
 0x26b   : > { %v1575_v11 = vadd.f32 %v1569_v24, %v1557_v34 }
 0x26c   : > { %v3796_v50 = vadd.f32 %v1577_v51, %v1574_v10 }
 0x26d   : > { %v3800_v49 = vadd.f32 %v1578_v40, %v1575_v11  ;;  %1045 = vrot.lane.b32.xlu2 %v1018_v5, %s4385_s20  ;;  %1041 = vrot.lane.b32.xlu0 %v1016_v8, %s4385_s20  ;;  %v1022_v5 = vperm.slane %v3790_v12, 0 }
 0x26e   : > { %1043 = vrot.lane.b32.xlu1 %v1017_v9, %s4385_s20 }
 0x270   : > { %v1386_v45 = vld [vmem:[#allocation1 + $0x2] ss:$9 sm:$0xff]  ;;  %v3805_v28 = vld [vmem:[#allocation1 + $0x5] ss:$9 sm:$0xff] }
 0x271   : > { %v1384_v31 = vld [vmem:[#allocation1 + $0x1] ss:$9 sm:$0xff]  ;;  %v3807_v14 = vld [vmem:[#allocation1 + $0x4] ss:$9 sm:$0xff]  ;;  %v3809_v36 = vpop.permute.xlu0 %1590  ;;  %v3813_v48 = vld [vmem:[#allocation1 + $0x7] ss:$9 sm:$0xff]  ;;  %v1807_v27 = vpop.permute.xlu2 %1806 }
 0x272   : > { %v3811_v0 = vld [vmem:[#allocation1 + $0x3] ss:$9 sm:$0xff]  ;;  %v3815_v42 = vpop.permute.xlu1 %1592  ;;  %v3817_v43 = vld [vmem:[#allocation1 + $0x6] ss:$9 sm:$0xff]  ;;  %v1409_v24 = vperm.slane %v1386_v45, 0  ;;  %v1408_v10 = vperm.slane %v1384_v31, 0  ;;  %v1784_v31 = vsel %vm893_vm11, %v1782_v55, %v1783_v46 }
 0x273   : > { %1397 = vst [vmem:[#allocation1] sm:$0xff] %v1377_v16  ;;  %v4418_v16 = vld [vmem:[#allocation13_spill] sm:$0xff] }
 0x275   : > { %1051 = vrot.lane.b32.xlu2 %v1021_v21, %s4385_s20  ;;  %1047 = vrot.lane.b32.xlu0 %v1019_v19, %s4385_s20  ;;  %v1822_v21 = vrot.slane %v4418_v16, 7  ;;  %v1597_v19 = vadd.f32 %v3770_v60, %v3765_v62 }
 0x276   : > { %1049 = vrot.lane.b32.xlu1 %v1020_v15, %s4385_s20  ;;  %v1856_v15 = vmul.f32 %v3604_v25, %v3234_v37 }
 0x277   : > { %v1600_v62 = vmax.f32 %v1597_v19, 0.0  ;;  %v1754_v19 = vmul.f32 %v4415_v53, %v3118_v56 }
 0x279   : > { %v1743_v26 = vpop.permute.xlu0 %1742  ;;  %v1847_v45 = vpop.permute.xlu2 %1846 }
 0x27a   : > { %v1741_v22 = vpop.permute.xlu1 %1740  ;;  %v1750_v32 = vadd.f32 %v1743_v26, %v4416_v58  ;;  %v3834_v52 = vld [vmem:[#allocation1] ss:$9 sm:$0xff]  ;;  %v3839_v6 = vld [vmem:[#allocation1 + $0x2] ss:$9 sm:$0xff] }
 0x27b   : > { %v1749_v13 = vadd.f32 %v1741_v22, %v4417_v2  ;;  %v3841_v34 = vld [vmem:[#allocation1 + $0x1] ss:$9 sm:$0xff]  ;;  %v3843_v59 = vld [vmem:[#allocation1 + $0x3] ss:$9 sm:$0xff] }
 0x27c   : > { %v1756_v4 = vadd.f32 %v1753_v35, %v1750_v32  ;;  %v3845_v51 = vld [vmem:[#allocation1 + $0x5] ss:$9 sm:$0xff]  ;;  %v3852_v57 = vld [vmem:[#allocation1 + $0x7] ss:$9 sm:$0xff] }
 0x27d   : > { %v3847_v11 = vld [vmem:[#allocation1 + $0x4] ss:$9 sm:$0xff]  ;;  %v1755_v40 = vadd.f32 %v1752_v44, %v1749_v13  ;;  %v3850_v9 = vld [vmem:[#allocation1 + $0x6] ss:$9 sm:$0xff]  ;;  %1426 = vrot.lane.b32.xlu2 %v1409_v24, %s4385_s20  ;;  %1053 = vrot.lane.b32.xlu0 %v1022_v5, %s4385_s20  ;;  %v1862_v44 = vrot.slane %v1856_v15, 7 }
 0x27e   : > { %v1774_v8 = vadd.f32 %v1767_v63, %v1756_v4  ;;  %1424 = vrot.lane.b32.xlu1 %v1408_v10, %s4385_s20  ;;  %1406 = vst [vmem:[#allocation1] sm:$0xff] %v1378_v17  ;;  %v3866_v63 = vmul.f32 %v3604_v25, %v3236_v38  ;;  %v4419_v22 = vld [vmem:[#allocation12_spill] sm:$0xff]  ;;  %v1420_v25 = vperm.slane %v3845_v51, 0 }
 0x27f   : > { %v1773_v12 = vadd.f32 %v3780_v1, %v1755_v40  ;;  %v3872_v58 = vmul.f32 %v4419_v22, %v3477_v18  ;;  %v4420_v1 = vld [vmem:[#allocation14_spill] sm:$0xff]  ;;  %v3880_v13 = vmul.f32 %v4419_v22, %v3482_v29  ;;  %v1410_v18 = vperm.slane %v3811_v0, 0 }
 0x280   : > { %v1791_v23 = vadd.f32 %v1784_v31, %v1774_v8  ;;  %v4421_v32 = vrot.slane %v4420_v1, 7  ;;  %v1863_v2 = vrot.slane %v3866_v63, 7  ;;  %v1598_v31 = vadd.f32 %v3809_v36, %v3796_v50 }
 0x281   : > { %v1845_v33 = vpop.permute.xlu0 %1844  ;;  %v1790_v26 = vadd.f32 %v1782_v55, %v1773_v12  ;;  %v1412_v55 = vperm.slane %v3805_v28, 0  ;;  %v1902_v28 = vrot.slane %v3872_v58, 7  ;;  %v1887_v40 = vpop.permute.xlu2 %1886  ;;  %v4422_v12 = vld [vmem:[#allocation19_spill] sm:$0xff]  ;;  %v1413_v50 = vperm.slane %v3817_v43, 0 }
 0x282   : > { %v1805_v35 = vpop.permute.xlu1 %1804  ;;  %v1814_v17 = vadd.f32 %v1807_v27, %v1791_v23  ;;  %v1824_v37 = vsel %vm893_vm11, %v1822_v21, %v4421_v32  ;;  %v1411_v27 = vperm.slane %v3807_v14, 0  ;;  %v1864_v29 = vsel %vm893_vm11, %v1862_v44, %v1863_v2 }
 0x283   : > { %v1813_v24 = vadd.f32 %v1805_v35, %v1790_v26  ;;  %v1903_v14 = vrot.slane %v3880_v13, 7  ;;  %v1414_v35 = vperm.slane %v3813_v48, 0  ;;  %v1415_v26 = vperm.slane %v3834_v52, 0 }
 0x284   : > { %v1831_v60 = vadd.f32 %v1824_v37, %v1814_v17  ;;  %v1601_v52 = vmax.f32 %v1598_v31, 0.0 }
 0x285   : > { %v3885_v4 = vld [vmem:[#allocation1] ss:$9 sm:$0xff]  ;;  %1432 = vrot.lane.b32.xlu2 %v1412_v55, %s4385_s20  ;;  %1428 = vrot.lane.b32.xlu0 %v1410_v18, %s4385_s20  ;;  %v1830_v8 = vadd.f32 %v1822_v21, %v1813_v24  ;;  %v1904_v23 = vsel %vm893_vm11, %v1902_v28, %v1903_v14  ;;  %v1778_v21 = vmul.f32 %v3589_v20, %v3179_v54  ;;  %v1418_v18 = vperm.slane %v3843_v59, 0 }
 0x286   : > { %v1854_v10 = vadd.f32 %v1847_v45, %v1831_v60  ;;  %1430 = vrot.lane.b32.xlu1 %v1411_v27, %s4385_s20  ;;  %1606 = vst [vmem:[#allocation1] sm:$0xff] %v1600_v62  ;;  %v1417_v27 = vperm.slane %v3839_v6, 0 }
 0x287   : > { %v1853_v1 = vadd.f32 %v1845_v33, %v1830_v8  ;;  %v1785_v43 = vrot.slane %v1778_v21, 7 }
 0x288   : > { %v1871_v0 = vadd.f32 %v1864_v29, %v1854_v10  ;;  %v1416_v10 = vperm.slane %v3841_v34, 0 }
 0x289   : > { %v1885_v45 = vpop.permute.xlu0 %1884  ;;  %v1870_v33 = vadd.f32 %v1862_v44, %v1853_v1  ;;  %v1786_v24 = vsel %vm893_vm11, %v1783_v46, %v1785_v43 }
 0x28a   : > { %v1894_v5 = vadd.f32 %v1887_v40, %v1871_v0  ;;  %v1745_v16 = vpop.permute.xlu1 %1744  ;;  %v1599_v0 = vadd.f32 %v3815_v42, %v3800_v49 }
 0x28b   : > { %v1751_v15 = vadd.f32 %v1745_v16, %v4422_v12  ;;  %v1893_v40 = vadd.f32 %v1885_v45, %v1870_v33 }
 0x28c   : > { %v3907_v17 = vadd.f32 %v1904_v23, %v1894_v5  ;;  %v1602_v44 = vmax.f32 %v1599_v0, 0.0  ;;  %v4423_v23 = vld [vmem:[#allocation16_spill] sm:$0xff] }
 0x28d   : > { %v1757_v36 = vadd.f32 %v1754_v19, %v1751_v15  ;;  %v1608_v58 = vld [vmem:[#allocation1 + $0x1] ss:$9 sm:$0xff]  ;;  %1438 = vrot.lane.b32.xlu2 %v1415_v26, %s4385_s20  ;;  %v3914_v32 = vld [vmem:[#allocation1 + $0x4] ss:$9 sm:$0xff]  ;;  %1434 = vrot.lane.b32.xlu0 %v1413_v50, %s4385_s20  ;;  %v3921_v20 = vld [vmem:[#allocation1 + $0x7] ss:$9 sm:$0xff]  ;;  %v1910_v49 = vadd.f32 %v1902_v28, %v1893_v40 }
 0x28e   : > { %1436 = vrot.lane.b32.xlu1 %v1414_v35, %s4385_s20  ;;  %v3912_v53 = vld [vmem:[#allocation1 + $0x2] ss:$9 sm:$0xff]  ;;  %v3919_v54 = vld [vmem:[#allocation1 + $0x5] ss:$9 sm:$0xff]  ;;  %v1421_v15 = vperm.slane %v3850_v9, 0  ;;  %v1865_v19 = vrot.slane %v1858_v3, 7 }
 0x28f   : > { %v3916_v48 = vld [vmem:[#allocation1 + $0x3] ss:$9 sm:$0xff]  ;;  %v3923_v37 = vld [vmem:[#allocation1 + $0x6] ss:$9 sm:$0xff]  ;;  %v1419_v28 = vperm.slane %v3847_v11, 0  ;;  %v1632_v1 = vperm.slane %v1608_v58, 0 }
 0x290   : > { %1621 = vst [vmem:[#allocation1] sm:$0xff] %v1601_v52  ;;  %v1866_v51 = vsel %vm893_vm11, %v1863_v2, %v1865_v19  ;;  %v1423_v11 = vperm.slane %v3885_v4, 0  ;;  %v1422_v52 = vperm.slane %v3852_v57, 0  ;;  %v1635_v63 = vperm.slane %v3914_v32, 0 }
 0x291   : > { %v1925_v55 = vpop.permute.xlu0 %1924  ;;  %v1634_v2 = vperm.slane %v3916_v48, 0  ;;  %v1633_v43 = vperm.slane %v3912_v53, 0  ;;  %v1638_v4 = vperm.slane %v3921_v20, 0  ;;  %v1637_v58 = vperm.slane %v3923_v37, 0  ;;  %v4424_v48 = vld [vmem:[#allocation21_spill] sm:$0xff] }
 0x292   : > { %v1769_v62 = vpop.permute.xlu1 %1768  ;;  %v1933_v12 = vadd.f32 %v1925_v55, %v1910_v49  ;;  %v1636_v53 = vperm.slane %v3919_v54, 0  ;;  %v1875_v32 = vmul.f32 %v3047_v30, %v3118_v56  ;;  %v1914_v33 = vmul.f32 %v4424_v48, %v3236_v38 }
 0x293   : > { %v1775_v60 = vadd.f32 %v1769_v62, %v1757_v36 }
 0x294   : > { %v1936_v50 = vmax.f32 %v1933_v12, 0.0  ;;  %v1882_v20 = vrot.slane %v1875_v32, 7  ;;  %v1920_v37 = vrot.slane %v1914_v33, 7 }
 0x295   : > { %v1792_v29 = vadd.f32 %v1786_v24, %v1775_v60  ;;  %1444 = vrot.lane.b32.xlu2 %v1418_v18, %s4385_s20  ;;  %1440 = vrot.lane.b32.xlu0 %v1416_v10, %s4385_s20  ;;  %v1915_v60 = vmul.f32 %v4424_v48, %v3239_v39 }
 0x296   : > { %1442 = vrot.lane.b32.xlu1 %v1417_v27, %s4385_s20  ;;  %v1883_v30 = vsel %vm893_vm11, %v1880_v61, %v1882_v20  ;;  %v1921_v38 = vsel %vm893_vm11, %v1919_v7, %v1920_v37 }
 0x297   : > { %v3936_v6 = vld [vmem:[#allocation1] ss:$9 sm:$0xff]  ;;  %v3940_v59 = vld [vmem:[#allocation1 + $0x2] ss:$9 sm:$0xff]  ;;  %v1922_v7 = vrot.slane %v1915_v60, 7 }
 0x298   : > { %v3942_v46 = vld [vmem:[#allocation1 + $0x1] ss:$9 sm:$0xff]  ;;  %v3946_v5 = vld [vmem:[#allocation1 + $0x4] ss:$9 sm:$0xff]  ;;  %v3950_v45 = vld [vmem:[#allocation1 + $0x7] ss:$9 sm:$0xff] }
 0x299   : > { %v3944_v34 = vld [vmem:[#allocation1 + $0x5] ss:$9 sm:$0xff]  ;;  %v3948_v8 = vld [vmem:[#allocation1 + $0x3] ss:$9 sm:$0xff]  ;;  %v1849_v26 = vpop.permute.xlu0 %1848  ;;  %v1639_v54 = vperm.slane %v3936_v6, 0  ;;  %v1641_v41 = vperm.slane %v3940_v59, 0  ;;  %v1923_v39 = vsel %vm893_vm11, %v1920_v37, %v1922_v7  ;;  %v1898_v37 = vmul.f32 %v4419_v22, %v3118_v56 }
 0x29a   : > { %v1809_v42 = vpop.permute.xlu1 %1808  ;;  %v3952_v31 = vld [vmem:[#allocation1 + $0x6] ss:$9 sm:$0xff]  ;;  %v1640_v61 = vperm.slane %v3942_v46, 0  ;;  %v1644_v24 = vperm.slane %v3944_v34, 0  ;;  %v1643_v10 = vperm.slane %v3946_v5, 0  ;;  %v1646_v3 = vperm.slane %v3950_v45, 0 }
 0x29b   : > { %v1815_v16 = vadd.f32 %v1809_v42, %v1792_v29  ;;  %1630 = vst [vmem:[#allocation1] sm:$0xff] %v1602_v44  ;;  %v1642_v29 = vperm.slane %v3948_v8, 0  ;;  %v1645_v46 = vperm.slane %v3952_v31, 0 }
 0x29d   : > { %v1832_v35 = vadd.f32 %v4423_v23, %v1815_v16  ;;  %1450 = vrot.lane.b32.xlu2 %v1421_v15, %s4385_s20  ;;  %1446 = vrot.lane.b32.xlu0 %v1419_v28, %s4385_s20 }
 0x29e   : > { %1448 = vrot.lane.b32.xlu1 %v1420_v25, %s4385_s20 }
 0x29f   : > { %v1855_v21 = vadd.f32 %v1849_v26, %v1832_v35 }
 0x2a1   : > { %v3964_v9 = vadd.f32 %v1866_v51, %v1855_v21 }
 0x2a2   : > { %v3966_v36 = vld [vmem:[#allocation1] ss:$9 sm:$0xff] }
 0x2a3   : > { %1942 = vst [vmem:[#allocation1] sm:$0xff] %v1936_v50  ;;  %v1647_v59 = vperm.slane %v3966_v36, 0 }
 0x2a5   : > { %1648 = vrot.lane.b32.xlu2 %v1632_v1, %s4385_s20  ;;  %1452 = vrot.lane.b32.xlu0 %v1422_v52, %s4385_s20 }
 0x2a6   : > { %1454 = vrot.lane.b32.xlu1 %v1423_v11, %s4385_s20 }
 0x2aa   : > { %v1948_v42 = vld [vmem:[#allocation1 + $0x4] ss:$9 sm:$0xff]  ;;  %v1944_v8 = vld [vmem:[#allocation1 + $0x2] ss:$9 sm:$0xff] }
 0x2ab   : > { %v1946_v5 = vld [vmem:[#allocation1 + $0x3] ss:$9 sm:$0xff]  ;;  %v1970_v16 = vperm.slane %v1948_v42, 0  ;;  %v1968_v31 = vperm.slane %v1944_v8, 0  ;;  %v1952_v23 = vld [vmem:[#allocation1 + $0x6] ss:$9 sm:$0xff] }
 0x2ac   : > { %v1969_v45 = vperm.slane %v1946_v5, 0  ;;  %v1954_v19 = vld [vmem:[#allocation1 + $0x7] ss:$9 sm:$0xff]  ;;  %v1950_v35 = vld [vmem:[#allocation1 + $0x5] ss:$9 sm:$0xff]  ;;  %v1972_v26 = vperm.slane %v1952_v23, 0 }
 0x2ad   : > { %1654 = vrot.lane.b32.xlu2 %v1635_v63, %s4385_s20  ;;  %1650 = vrot.lane.b32.xlu0 %v1633_v43, %s4385_s20  ;;  %v1973_v28 = vperm.slane %v1954_v19, 0  ;;  %v1971_v21 = vperm.slane %v1950_v35, 0 }
 0x2ae   : > { %1652 = vrot.lane.b32.xlu1 %v1634_v2, %s4385_s20 }
 0x2af   : > { %v1028_v57 = vpop.permute.xlu2 %1027 }
 0x2b0   : > { %1074 = vst.msk [vmem:[%s3980_s14 + $0x8] sm:$0x1] %vm1071_vm12, %v1028_v57 }
 0x2b1   : > { %2376 = vst.msk [vmem:[%s3980_s14 + $0x48] sm:$0x1] %vm1071_vm12, %v1028_v57 }
 0x2b5   : > { %1660 = vrot.lane.b32.xlu2 %v1638_v4, %s4385_s20  ;;  %1656 = vrot.lane.b32.xlu0 %v1636_v53, %s4385_s20 }
 0x2b6   : > { %1658 = vrot.lane.b32.xlu1 %v1637_v58, %s4385_s20 }
 0x2b7   : > { %v1034_v62 = vpop.permute.xlu2 %1033 }
 0x2b8   : > { %1077 = vst.msk [vmem:[%s3980_s14 + $0x14] sm:$0x1] %vm1071_vm12, %v1034_v62 }
 0x2b9   : > { %2379 = vst.msk [vmem:[%s3980_s14 + $0x54] sm:$0x1] %vm1071_vm12, %v1034_v62 }
 0x2bd   : > { %1888 = vrot.lane.b32.xlu2 %v1883_v30, %s4368_s8  ;;  %1662 = vrot.lane.b32.xlu0 %v1639_v54, %s4385_s20  ;;  %v1905_v30 = vrot.slane %v1898_v37, 7 }
 0x2be   : > { %1926 = vrot.lane.b32.xlu1 %v1921_v38, %s4385_s20 }
 0x2bf   : > { %v1040_v47 = vpop.permute.xlu2 %1039  ;;  %v1906_v22 = vsel %vm893_vm11, %v1903_v14, %v1905_v30 }
 0x2c0   : > { %1080 = vst.msk [vmem:[%s3980_s14 + $0x20] sm:$0x1] %vm1071_vm12, %v1040_v47 }
 0x2c1   : > { %2382 = vst.msk [vmem:[%s3980_s14 + $0x60] sm:$0x1] %vm1071_vm12, %v1040_v47 }
 0x2c5   : > { %1666 = vrot.lane.b32.xlu2 %v1641_v41, %s4385_s20  ;;  %1928 = vrot.lane.b32.xlu0 %v1923_v39, %s4385_s20 }
 0x2c6   : > { %1664 = vrot.lane.b32.xlu1 %v1640_v61, %s4385_s20 }
 0x2c7   : > { %v1046_v27 = vpop.permute.xlu2 %1045  ;;  %v1024_v18 = vpop.permute.xlu0 %1023 }
 0x2c8   : > { %v1026_v55 = vpop.permute.xlu1 %1025  ;;  %1083 = vst.msk [vmem:[%s3980_s14 + $0x2c] sm:$0x1] %vm1071_vm12, %v1046_v27 }
 0x2c9   : > { %1073 = vst.msk [vmem:[%s3980_s14 + $0x4] sm:$0x1] %vm1071_vm12, %v1026_v55 }
 0x2ca   : > { %2375 = vst.msk [vmem:[%s3980_s14 + $0x44] sm:$0x1] %vm1071_vm12, %v1026_v55 }
 0x2cb   : > { %2385 = vst.msk [vmem:[%s3980_s14 + $0x6c] sm:$0x1] %vm1071_vm12, %v1046_v27 }
 0x2cc   : > { %1072 = vst.msk [vmem:[%s3980_s14] sm:$0x1] %vm1071_vm12, %v1024_v18 }
 0x2cd   : > { %2374 = vst.msk [vmem:[%s3980_s14 + $0x40] sm:$0x1] %vm1071_vm12, %v1024_v18  ;;  %1672 = vrot.lane.b32.xlu2 %v1644_v24, %s4385_s20  ;;  %1668 = vrot.lane.b32.xlu0 %v1642_v29, %s4385_s20 }
 0x2ce   : > { %1670 = vrot.lane.b32.xlu1 %v1643_v10, %s4385_s20 }
 0x2cf   : > { %v1052_v40 = vpop.permute.xlu2 %1051  ;;  %v1030_v6 = vpop.permute.xlu0 %1029 }
 0x2d0   : > { %v1032_v0 = vpop.permute.xlu1 %1031  ;;  %1086 = vst.msk [vmem:[%s3980_s14 + $0x38] sm:$0x1] %vm1071_vm12, %v1052_v40 }
 0x2d1   : > { %1076 = vst.msk [vmem:[%s3980_s14 + $0x10] sm:$0x1] %vm1071_vm12, %v1032_v0 }
 0x2d2   : > { %2378 = vst.msk [vmem:[%s3980_s14 + $0x50] sm:$0x1] %vm1071_vm12, %v1032_v0 }
 0x2d3   : > { %2388 = vst.msk [vmem:[%s3980_s14 + $0x78] sm:$0x1] %vm1071_vm12, %v1052_v40 }
 0x2d4   : > { %1075 = vst.msk [vmem:[%s3980_s14 + $0xc] sm:$0x1] %vm1071_vm12, %v1030_v6 }
 0x2d5   : > { %2377 = vst.msk [vmem:[%s3980_s14 + $0x4c] sm:$0x1] %vm1071_vm12, %v1030_v6  ;;  %1678 = vrot.lane.b32.xlu2 %v1647_v59, %s4385_s20  ;;  %1674 = vrot.lane.b32.xlu0 %v1645_v46, %s4385_s20 }
 0x2d6   : > { %1676 = vrot.lane.b32.xlu1 %v1646_v3, %s4385_s20 }
 0x2d7   : > { %v1427_v44 = vpop.permute.xlu2 %1426  ;;  %v1036_v49 = vpop.permute.xlu0 %1035 }
 0x2d8   : > { %v1038_v34 = vpop.permute.xlu1 %1037  ;;  %1473 = vst.msk [vmem:[%s3980_s14 + $0x5] sm:$0x1] %vm1071_vm12, %v1427_v44 }
 0x2d9   : > { %1079 = vst.msk [vmem:[%s3980_s14 + $0x1c] sm:$0x1] %vm1071_vm12, %v1038_v34 }
 0x2da   : > { %2381 = vst.msk [vmem:[%s3980_s14 + $0x5c] sm:$0x1] %vm1071_vm12, %v1038_v34 }
 0x2db   : > { %2391 = vst.msk [vmem:[%s3980_s14 + $0x45] sm:$0x1] %vm1071_vm12, %v1427_v44 }
 0x2dc   : > { %1078 = vst.msk [vmem:[%s3980_s14 + $0x18] sm:$0x1] %vm1071_vm12, %v1036_v49 }
 0x2dd   : > { %2380 = vst.msk [vmem:[%s3980_s14 + $0x58] sm:$0x1] %vm1071_vm12, %v1036_v49  ;;  %1988 = vrot.lane.b32.xlu2 %v1970_v16, %s4385_s20  ;;  %1984 = vrot.lane.b32.xlu0 %v1968_v31, %s4385_s20 }
 0x2de   : > { %1986 = vrot.lane.b32.xlu1 %v1969_v45, %s4385_s20 }
 0x2df   : > { %v1433_v25 = vpop.permute.xlu2 %1432  ;;  %v1042_v15 = vpop.permute.xlu0 %1041 }
 0x2e0   : > { %v1044_v12 = vpop.permute.xlu1 %1043  ;;  %1476 = vst.msk [vmem:[%s3980_s14 + $0x11] sm:$0x1] %vm1071_vm12, %v1433_v25 }
 0x2e1   : > { %1082 = vst.msk [vmem:[%s3980_s14 + $0x28] sm:$0x1] %vm1071_vm12, %v1044_v12 }
 0x2e2   : > { %2384 = vst.msk [vmem:[%s3980_s14 + $0x68] sm:$0x1] %vm1071_vm12, %v1044_v12 }
 0x2e3   : > { %2394 = vst.msk [vmem:[%s3980_s14 + $0x51] sm:$0x1] %vm1071_vm12, %v1433_v25 }
 0x2e4   : > { %1081 = vst.msk [vmem:[%s3980_s14 + $0x24] sm:$0x1] %vm1071_vm12, %v1042_v15 }
 0x2e5   : > { %2383 = vst.msk [vmem:[%s3980_s14 + $0x64] sm:$0x1] %vm1071_vm12, %v1042_v15  ;;  %1994 = vrot.lane.b32.xlu2 %v1973_v28, %s4385_s20  ;;  %1990 = vrot.lane.b32.xlu0 %v1971_v21, %s4385_s20 }
 0x2e6   : > { %1992 = vrot.lane.b32.xlu1 %v1972_v26, %s4385_s20 }
 0x2e7   : > { %v1439_v51 = vpop.permute.xlu2 %1438  ;;  %v1048_v36 = vpop.permute.xlu0 %1047 }
 0x2e8   : > { %v1050_v50 = vpop.permute.xlu1 %1049  ;;  %1479 = vst.msk [vmem:[%s3980_s14 + $0x1d] sm:$0x1] %vm1071_vm12, %v1439_v51 }
 0x2e9   : > { %1085 = vst.msk [vmem:[%s3980_s14 + $0x34] sm:$0x1] %vm1071_vm12, %v1050_v50 }
 0x2ea   : > { %2387 = vst.msk [vmem:[%s3980_s14 + $0x74] sm:$0x1] %vm1071_vm12, %v1050_v50 }
 0x2eb   : > { %2397 = vst.msk [vmem:[%s3980_s14 + $0x5d] sm:$0x1] %vm1071_vm12, %v1439_v51 }
 0x2ec   : > { %1084 = vst.msk [vmem:[%s3980_s14 + $0x30] sm:$0x1] %vm1071_vm12, %v1048_v36 }
 0x2ed   : > { %2386 = vst.msk [vmem:[%s3980_s14 + $0x70] sm:$0x1] %vm1071_vm12, %v1048_v36 }
 0x2ef   : > { %v1445_v11 = vpop.permute.xlu2 %1444  ;;  %v1054_v52 = vpop.permute.xlu0 %1053 }
 0x2f0   : > { %v1425_v1 = vpop.permute.xlu1 %1424  ;;  %1482 = vst.msk [vmem:[%s3980_s14 + $0x29] sm:$0x1] %vm1071_vm12, %v1445_v11 }
 0x2f1   : > { %1472 = vst.msk [vmem:[%s3980_s14 + $0x1] sm:$0x1] %vm1071_vm12, %v1425_v1 }
 0x2f2   : > { %2390 = vst.msk [vmem:[%s3980_s14 + $0x41] sm:$0x1] %vm1071_vm12, %v1425_v1 }
 0x2f3   : > { %2400 = vst.msk [vmem:[%s3980_s14 + $0x69] sm:$0x1] %vm1071_vm12, %v1445_v11 }
 0x2f4   : > { %1087 = vst.msk [vmem:[%s3980_s14 + $0x3c] sm:$0x1] %vm1071_vm12, %v1054_v52 }
 0x2f5   : > { %2389 = vst.msk [vmem:[%s3980_s14 + $0x7c] sm:$0x1] %vm1071_vm12, %v1054_v52 }
 0x2f7   : > { %v1451_v2 = vpop.permute.xlu2 %1450  ;;  %v1429_v43 = vpop.permute.xlu0 %1428 }
 0x2f8   : > { %v1431_v63 = vpop.permute.xlu1 %1430  ;;  %1485 = vst.msk [vmem:[%s3980_s14 + $0x35] sm:$0x1] %vm1071_vm12, %v1451_v2 }
 0x2f9   : > { %1475 = vst.msk [vmem:[%s3980_s14 + $0xd] sm:$0x1] %vm1071_vm12, %v1431_v63 }
 0x2fa   : > { %2393 = vst.msk [vmem:[%s3980_s14 + $0x4d] sm:$0x1] %vm1071_vm12, %v1431_v63 }
 0x2fb   : > { %2403 = vst.msk [vmem:[%s3980_s14 + $0x75] sm:$0x1] %vm1071_vm12, %v1451_v2 }
 0x2fc   : > { %1474 = vst.msk [vmem:[%s3980_s14 + $0x9] sm:$0x1] %vm1071_vm12, %v1429_v43 }
 0x2fd   : > { %2392 = vst.msk [vmem:[%s3980_s14 + $0x49] sm:$0x1] %vm1071_vm12, %v1429_v43 }
 0x2ff   : > { %v1649_v4 = vpop.permute.xlu2 %1648  ;;  %v1435_v58 = vpop.permute.xlu0 %1434 }
 0x300   : > { %v1437_v57 = vpop.permute.xlu1 %1436  ;;  %1696 = vst.msk [vmem:[%s3980_s14 + $0x2] sm:$0x1] %vm1071_vm12, %v1649_v4 }
 0x301   : > { %1478 = vst.msk [vmem:[%s3980_s14 + $0x19] sm:$0x1] %vm1071_vm12, %v1437_v57 }
 0x302   : > { %2396 = vst.msk [vmem:[%s3980_s14 + $0x59] sm:$0x1] %vm1071_vm12, %v1437_v57 }
 0x303   : > { %2406 = vst.msk [vmem:[%s3980_s14 + $0x42] sm:$0x1] %vm1071_vm12, %v1649_v4 }
 0x304   : > { %1477 = vst.msk [vmem:[%s3980_s14 + $0x15] sm:$0x1] %vm1071_vm12, %v1435_v58 }
 0x305   : > { %2395 = vst.msk [vmem:[%s3980_s14 + $0x55] sm:$0x1] %vm1071_vm12, %v1435_v58 }
 0x307   : > { %v1655_v32 = vpop.permute.xlu2 %1654  ;;  %v1441_v48 = vpop.permute.xlu0 %1440 }
 0x308   : > { %v1443_v53 = vpop.permute.xlu1 %1442  ;;  %1699 = vst.msk [vmem:[%s3980_s14 + $0xe] sm:$0x1] %vm1071_vm12, %v1655_v32 }
 0x309   : > { %1481 = vst.msk [vmem:[%s3980_s14 + $0x25] sm:$0x1] %vm1071_vm12, %v1443_v53 }
 0x30a   : > { %2399 = vst.msk [vmem:[%s3980_s14 + $0x65] sm:$0x1] %vm1071_vm12, %v1443_v53 }
 0x30b   : > { %2409 = vst.msk [vmem:[%s3980_s14 + $0x4e] sm:$0x1] %vm1071_vm12, %v1655_v32 }
 0x30c   : > { %1480 = vst.msk [vmem:[%s3980_s14 + $0x21] sm:$0x1] %vm1071_vm12, %v1441_v48 }
 0x30d   : > { %2398 = vst.msk [vmem:[%s3980_s14 + $0x61] sm:$0x1] %vm1071_vm12, %v1441_v48 }
 0x30f   : > { %v1661_v62 = vpop.permute.xlu2 %1660  ;;  %v1447_v20 = vpop.permute.xlu0 %1446 }
 0x310   : > { %v1449_v33 = vpop.permute.xlu1 %1448  ;;  %1702 = vst.msk [vmem:[%s3980_s14 + $0x1a] sm:$0x1] %vm1071_vm12, %v1661_v62 }
 0x311   : > { %1484 = vst.msk [vmem:[%s3980_s14 + $0x31] sm:$0x1] %vm1071_vm12, %v1449_v33 }
 0x312   : > { %2402 = vst.msk [vmem:[%s3980_s14 + $0x71] sm:$0x1] %vm1071_vm12, %v1449_v33 }
 0x313   : > { %2412 = vst.msk [vmem:[%s3980_s14 + $0x5a] sm:$0x1] %vm1071_vm12, %v1661_v62 }
 0x314   : > { %1483 = vst.msk [vmem:[%s3980_s14 + $0x2d] sm:$0x1] %vm1071_vm12, %v1447_v20 }
 0x315   : > { %2401 = vst.msk [vmem:[%s3980_s14 + $0x6d] sm:$0x1] %vm1071_vm12, %v1447_v20 }
 0x317   : > { %v1889_v38 = vpop.permute.xlu2 %1888  ;;  %v1453_v56 = vpop.permute.xlu0 %1452 }
 0x318   : > { %v1455_v54 = vpop.permute.xlu1 %1454  ;;  %v1895_v60 = vadd.f32 %v1889_v38, %v3964_v9  ;;  %1486 = vst.msk [vmem:[%s3980_s14 + $0x39] sm:$0x1] %vm1071_vm12, %v1453_v56 }
 0x319   : > { %1487 = vst.msk [vmem:[%s3980_s14 + $0x3d] sm:$0x1] %vm1071_vm12, %v1455_v54 }
 0x31a   : > { %2405 = vst.msk [vmem:[%s3980_s14 + $0x7d] sm:$0x1] %vm1071_vm12, %v1455_v54  ;;  %v1912_v47 = vadd.f32 %v1906_v22, %v1895_v60 }
 0x31b   : > { %2404 = vst.msk [vmem:[%s3980_s14 + $0x79] sm:$0x1] %vm1071_vm12, %v1453_v56 }
 0x31f   : > { %v1667_v7 = vpop.permute.xlu2 %1666  ;;  %v1651_v41 = vpop.permute.xlu0 %1650 }
 0x320   : > { %v1653_v9 = vpop.permute.xlu1 %1652  ;;  %1705 = vst.msk [vmem:[%s3980_s14 + $0x26] sm:$0x1] %vm1071_vm12, %v1667_v7 }
 0x321   : > { %1698 = vst.msk [vmem:[%s3980_s14 + $0xa] sm:$0x1] %vm1071_vm12, %v1653_v9 }
 0x322   : > { %2408 = vst.msk [vmem:[%s3980_s14 + $0x4a] sm:$0x1] %vm1071_vm12, %v1653_v9 }
 0x323   : > { %2415 = vst.msk [vmem:[%s3980_s14 + $0x66] sm:$0x1] %vm1071_vm12, %v1667_v7 }
 0x324   : > { %1697 = vst.msk [vmem:[%s3980_s14 + $0x6] sm:$0x1] %vm1071_vm12, %v1651_v41 }
 0x325   : > { %2407 = vst.msk [vmem:[%s3980_s14 + $0x46] sm:$0x1] %vm1071_vm12, %v1651_v41 }
 0x327   : > { %v1673_v14 = vpop.permute.xlu2 %1672  ;;  %v1657_v61 = vpop.permute.xlu0 %1656 }
 0x328   : > { %v1659_v13 = vpop.permute.xlu1 %1658  ;;  %1708 = vst.msk [vmem:[%s3980_s14 + $0x32] sm:$0x1] %vm1071_vm12, %v1673_v14 }
 0x329   : > { %1701 = vst.msk [vmem:[%s3980_s14 + $0x16] sm:$0x1] %vm1071_vm12, %v1659_v13 }
 0x32a   : > { %2411 = vst.msk [vmem:[%s3980_s14 + $0x56] sm:$0x1] %vm1071_vm12, %v1659_v13 }
 0x32b   : > { %2418 = vst.msk [vmem:[%s3980_s14 + $0x72] sm:$0x1] %vm1071_vm12, %v1673_v14 }
 0x32c   : > { %1700 = vst.msk [vmem:[%s3980_s14 + $0x12] sm:$0x1] %vm1071_vm12, %v1657_v61 }
 0x32d   : > { %2410 = vst.msk [vmem:[%s3980_s14 + $0x52] sm:$0x1] %vm1071_vm12, %v1657_v61 }
 0x32f   : > { %v1679_v55 = vpop.permute.xlu2 %1678  ;;  %v1663_v18 = vpop.permute.xlu0 %1662 }
 0x330   : > { %v1927_v39 = vpop.permute.xlu1 %1926  ;;  %1711 = vst.msk [vmem:[%s3980_s14 + $0x3e] sm:$0x1] %vm1071_vm12, %v1679_v55 }
 0x331   : > { %v1934_v27 = vadd.f32 %v1927_v39, %v3907_v17  ;;  %2421 = vst.msk [vmem:[%s3980_s14 + $0x7e] sm:$0x1] %vm1071_vm12, %v1679_v55 }
 0x332   : > { %1703 = vst.msk [vmem:[%s3980_s14 + $0x1e] sm:$0x1] %vm1071_vm12, %v1663_v18 }
 0x333   : > { %v1937_v24 = vmax.f32 %v1934_v27, 0.0  ;;  %2413 = vst.msk [vmem:[%s3980_s14 + $0x5e] sm:$0x1] %vm1071_vm12, %v1663_v18 }
 0x335   : > { %1955 = vst [vmem:[#allocation1] sm:$0xff] %v1937_v24 }
 0x337   : > { %v1989_v29 = vpop.permute.xlu2 %1988  ;;  %v1929_v0 = vpop.permute.xlu0 %1928 }
 0x338   : > { %v1665_v10 = vpop.permute.xlu1 %1664  ;;  %2034 = vst.msk [vmem:[%s3980_s14 + $0xb] sm:$0x1] %vm1071_vm12, %v1989_v29  ;;  %v1935_v59 = vadd.f32 %v1929_v0, %v1912_v47 }
 0x339   : > { %1704 = vst.msk [vmem:[%s3980_s14 + $0x22] sm:$0x1] %vm1071_vm12, %v1665_v10 }
 0x33a   : > { %2414 = vst.msk [vmem:[%s3980_s14 + $0x62] sm:$0x1] %vm1071_vm12, %v1665_v10  ;;  %v1938_v5 = vmax.f32 %v1935_v59, 0.0 }
 0x33b   : > { %2424 = vst.msk [vmem:[%s3980_s14 + $0x4b] sm:$0x1] %vm1071_vm12, %v1989_v29 }
 0x33c   : > { %v1959_v17 = vld [vmem:[#allocation1 + $0x2] ss:$9 sm:$0xff]  ;;  %v1956_v3 = vld [vmem:[#allocation1] ss:$9 sm:$0xff] }
 0x33d   : > { %v1976_v40 = vperm.slane %v1959_v17, 0  ;;  %v1958_v6 = vld [vmem:[#allocation1 + $0x1] ss:$9 sm:$0xff]  ;;  %v1974_v34 = vperm.slane %v1956_v3, 0  ;;  %v1961_v16 = vld [vmem:[#allocation1 + $0x4] ss:$9 sm:$0xff] }
 0x33e   : > { %v1975_v46 = vperm.slane %v1958_v6, 0  ;;  %v1962_v8 = vld [vmem:[#allocation1 + $0x5] ss:$9 sm:$0xff]  ;;  %v1960_v45 = vld [vmem:[#allocation1 + $0x3] ss:$9 sm:$0xff]  ;;  %v1978_v15 = vperm.slane %v1961_v16, 0 }
 0x33f   : > { %2000 = vrot.lane.b32.xlu2 %v1976_v40, %s4385_s20  ;;  %1996 = vrot.lane.b32.xlu0 %v1974_v34, %s4385_s20  ;;  %v1995_v49 = vpop.permute.xlu2 %1994  ;;  %v1669_v42 = vpop.permute.xlu0 %1668  ;;  %v1964_v31 = vld [vmem:[#allocation1 + $0x7] ss:$9 sm:$0xff]  ;;  %v1979_v25 = vperm.slane %v1962_v8, 0  ;;  %v1977_v19 = vperm.slane %v1960_v45, 0 }
 0x340   : > { %1998 = vrot.lane.b32.xlu1 %v1975_v46, %s4385_s20  ;;  %v1671_v44 = vpop.permute.xlu1 %1670  ;;  %2037 = vst.msk [vmem:[%s3980_s14 + $0x17] sm:$0x1] %vm1071_vm12, %v1995_v49  ;;  %v1963_v12 = vld [vmem:[#allocation1 + $0x6] ss:$9 sm:$0xff]  ;;  %v1981_v28 = vperm.slane %v1964_v31, 0 }
 0x341   : > { %1707 = vst.msk [vmem:[%s3980_s14 + $0x2e] sm:$0x1] %vm1071_vm12, %v1671_v44  ;;  %v1980_v26 = vperm.slane %v1963_v12, 0 }
 0x342   : > { %2417 = vst.msk [vmem:[%s3980_s14 + $0x6e] sm:$0x1] %vm1071_vm12, %v1671_v44 }
 0x343   : > { %2427 = vst.msk [vmem:[%s3980_s14 + $0x57] sm:$0x1] %vm1071_vm12, %v1995_v49 }
 0x344   : > { %1706 = vst.msk [vmem:[%s3980_s14 + $0x2a] sm:$0x1] %vm1071_vm12, %v1669_v42 }
 0x345   : > { %2416 = vst.msk [vmem:[%s3980_s14 + $0x6a] sm:$0x1] %vm1071_vm12, %v1669_v42 }
 0x346   : > { %1965 = vst [vmem:[#allocation1] sm:$0xff] %v1938_v5 }
 0x347   : > { %2006 = vrot.lane.b32.xlu2 %v1979_v25, %s4385_s20  ;;  %2002 = vrot.lane.b32.xlu0 %v1977_v19, %s4385_s20  ;;  %v1675_v35 = vpop.permute.xlu0 %1674 }
 0x348   : > { %2004 = vrot.lane.b32.xlu1 %v1978_v15, %s4385_s20  ;;  %v1677_v23 = vpop.permute.xlu1 %1676  ;;  %1709 = vst.msk [vmem:[%s3980_s14 + $0x36] sm:$0x1] %vm1071_vm12, %v1675_v35 }
 0x349   : > { %1710 = vst.msk [vmem:[%s3980_s14 + $0x3a] sm:$0x1] %vm1071_vm12, %v1677_v23 }
 0x34a   : > { %2420 = vst.msk [vmem:[%s3980_s14 + $0x7a] sm:$0x1] %vm1071_vm12, %v1677_v23 }
 0x34b   : > { %2419 = vst.msk [vmem:[%s3980_s14 + $0x76] sm:$0x1] %vm1071_vm12, %v1675_v35 }
 0x34d   : > { %v1966_v21 = vld [vmem:[#allocation1] ss:$9 sm:$0xff] }
 0x34e   : > { %v1982_v50 = vperm.slane %v1966_v21, 0  ;;  %v1967_v1 = vld [vmem:[#allocation1 + $0x1] ss:$9 sm:$0xff] }
 0x34f   : > { %2008 = vrot.lane.b32.xlu0 %v1980_v26, %s4385_s20  ;;  %v1985_v36 = vpop.permute.xlu0 %1984  ;;  %v1983_v11 = vperm.slane %v1967_v1, 0 }
 0x350   : > { %2010 = vrot.lane.b32.xlu1 %v1981_v28, %s4385_s20  ;;  %v1987_v51 = vpop.permute.xlu1 %1986  ;;  %2012 = vrot.lane.b32.xlu2 %v1982_v50, %s4385_s20  ;;  %2032 = vst.msk [vmem:[%s3980_s14 + $0x3] sm:$0x1] %vm1071_vm12, %v1985_v36 }
 0x351   : > { %2033 = vst.msk [vmem:[%s3980_s14 + $0x7] sm:$0x1] %vm1071_vm12, %v1987_v51 }
 0x352   : > { %2423 = vst.msk [vmem:[%s3980_s14 + $0x47] sm:$0x1] %vm1071_vm12, %v1987_v51 }
 0x353   : > { %2422 = vst.msk [vmem:[%s3980_s14 + $0x43] sm:$0x1] %vm1071_vm12, %v1985_v36 }
 0x357   : > { %2014 = vrot.lane.b32.xlu0 %v1983_v11, %s4385_s20  ;;  %v1991_v63 = vpop.permute.xlu0 %1990 }
 0x358   : > { %v1993_v52 = vpop.permute.xlu1 %1992  ;;  %2035 = vst.msk [vmem:[%s3980_s14 + $0xf] sm:$0x1] %vm1071_vm12, %v1991_v63  ;;  %v2090_v20 = vld [vmem:[%s3980_s14] sm:$0xff] (%p2622_p4)  }
 0x359   : > { %2036 = vst.msk [vmem:[%s3980_s14 + $0x13] sm:$0x1] %vm1071_vm12, %v1993_v52 }
 0x35a   : > { %2426 = vst.msk [vmem:[%s3980_s14 + $0x53] sm:$0x1] %vm1071_vm12, %v1993_v52  ;;  %v2122_v47 = vld [vmem:[%s3980_s14 + $0x40] sm:$0xff] (%p2622_p4)  }
 0x35b   : > { %2425 = vst.msk [vmem:[%s3980_s14 + $0x4f] sm:$0x1] %vm1071_vm12, %v1991_v63 }
 0x35c   : > { %2091 = vst [vmem:[%s2073_s17] sm:$0xff] (%p2622_p4), %v2090_v20  }
 0x35d   : > { %2123 = vst [vmem:[%s2073_s17 + $0x80] sm:$0xff] (%p2622_p4), %v2122_v47  }
 0x35f   : > { %v2094_v37 = vld [vmem:[%s3980_s14 + $0x8] sm:$0xff] (%p2622_p4)  }
 0x360   : > { %v2098_v30 = vld [vmem:[%s3980_s14 + $0x10] sm:$0xff] (%p2622_p4)   ;;  %2095 = vst [vmem:[%s2073_s17 + $0x8] sm:$0xff] (%p2622_p4), %v2094_v37  }
 0x361   : > { %2099 = vst [vmem:[%s2073_s17 + $0x10] sm:$0xff] (%p2622_p4), %v2098_v30   ;;  %v2130_v7 = vld [vmem:[%s3980_s14 + $0x50] sm:$0xff] (%p2622_p4)  }
 0x362   : > { %v2126_v9 = vld [vmem:[%s3980_s14 + $0x48] sm:$0xff] (%p2622_p4)   ;;  %2131 = vst [vmem:[%s2073_s17 + $0x90] sm:$0xff] (%p2622_p4), %v2130_v7  }
 0x363   : > { %2127 = vst [vmem:[%s2073_s17 + $0x88] sm:$0xff] (%p2622_p4), %v2126_v9  }
 0x399   : > { %v2001_v2 = vpop.permute.xlu2 %2000 }
 0x39a   : > { %2040 = vst.msk [vmem:[%s3980_s14 + $0x23] sm:$0x1] %vm1071_vm12, %v2001_v2 }
 0x39b   : > { %2430 = vst.msk [vmem:[%s3980_s14 + $0x63] sm:$0x1] %vm1071_vm12, %v2001_v2 }
 0x3a1   : > { %v2007_v43 = vpop.permute.xlu2 %2006 }
 0x3a2   : > { %2043 = vst.msk [vmem:[%s3980_s14 + $0x2f] sm:$0x1] %vm1071_vm12, %v2007_v43 }
 0x3a3   : > { %2433 = vst.msk [vmem:[%s3980_s14 + $0x6f] sm:$0x1] %vm1071_vm12, %v2007_v43 }
 0x3aa   : > { %v2013_v57 = vpop.permute.xlu2 %2012 }
 0x3ab   : > { %2046 = vst.msk [vmem:[%s3980_s14 + $0x3b] sm:$0x1] %vm1071_vm12, %v2013_v57 }
 0x3ac   : > { %2436 = vst.msk [vmem:[%s3980_s14 + $0x7b] sm:$0x1] %vm1071_vm12, %v2013_v57 }
 0x3b1   : > { %v1997_v58 = vpop.permute.xlu0 %1996 }
 0x3b2   : > { %v1999_v4 = vpop.permute.xlu1 %1998  ;;  %2038 = vst.msk [vmem:[%s3980_s14 + $0x1b] sm:$0x1] %vm1071_vm12, %v1997_v58 }
 0x3b3   : > { %2039 = vst.msk [vmem:[%s3980_s14 + $0x1f] sm:$0x1] %vm1071_vm12, %v1999_v4 }
 0x3b4   : > { %2429 = vst.msk [vmem:[%s3980_s14 + $0x5f] sm:$0x1] %vm1071_vm12, %v1999_v4 }
 0x3b5   : > { %2428 = vst.msk [vmem:[%s3980_s14 + $0x5b] sm:$0x1] %vm1071_vm12, %v1997_v58 }
 0x3b9   : > { %v2003_v32 = vpop.permute.xlu0 %2002 }
 0x3ba   : > { %v2005_v53 = vpop.permute.xlu1 %2004  ;;  %2041 = vst.msk [vmem:[%s3980_s14 + $0x27] sm:$0x1] %vm1071_vm12, %v2003_v32  ;;  %v2102_v38 = vld [vmem:[%s3980_s14 + $0x18] sm:$0xff] (%p2622_p4)  }
 0x3bb   : > { %2042 = vst.msk [vmem:[%s3980_s14 + $0x2b] sm:$0x1] %vm1071_vm12, %v2005_v53 }
 0x3bc   : > { %2432 = vst.msk [vmem:[%s3980_s14 + $0x6b] sm:$0x1] %vm1071_vm12, %v2005_v53  ;;  %v2134_v41 = vld [vmem:[%s3980_s14 + $0x58] sm:$0xff] (%p2622_p4)  }
 0x3bd   : > { %2431 = vst.msk [vmem:[%s3980_s14 + $0x67] sm:$0x1] %vm1071_vm12, %v2003_v32 }
 0x3be   : > { %2103 = vst [vmem:[%s2073_s17 + $0x18] sm:$0xff] (%p2622_p4), %v2102_v38  }
 0x3bf   : > { %2135 = vst [vmem:[%s2073_s17 + $0x98] sm:$0xff] (%p2622_p4), %v2134_v41  }
 0x3c1   : > { %v2009_v33 = vpop.permute.xlu0 %2008  ;;  %v2106_v54 = vld [vmem:[%s3980_s14 + $0x20] sm:$0xff] (%p2622_p4)  }
 0x3c2   : > { %v2011_v48 = vpop.permute.xlu1 %2010  ;;  %2044 = vst.msk [vmem:[%s3980_s14 + $0x33] sm:$0x1] %vm1071_vm12, %v2009_v33  ;;  %v2110_v60 = vld [vmem:[%s3980_s14 + $0x28] sm:$0xff] (%p2622_p4)  }
 0x3c3   : > { %2045 = vst.msk [vmem:[%s3980_s14 + $0x37] sm:$0x1] %vm1071_vm12, %v2011_v48  ;;  %v2142_v14 = vld [vmem:[%s3980_s14 + $0x68] sm:$0xff] (%p2622_p4)  }
 0x3c4   : > { %2435 = vst.msk [vmem:[%s3980_s14 + $0x77] sm:$0x1] %vm1071_vm12, %v2011_v48  ;;  %v2138_v13 = vld [vmem:[%s3980_s14 + $0x60] sm:$0xff] (%p2622_p4)  }
 0x3c5   : > { %2434 = vst.msk [vmem:[%s3980_s14 + $0x73] sm:$0x1] %vm1071_vm12, %v2009_v33 }
 0x3c6   : > { %2107 = vst [vmem:[%s2073_s17 + $0x20] sm:$0xff] (%p2622_p4), %v2106_v54  }
 0x3c7   : > { %2070 = sbr.rel (!%p2622_p4) target bundleno = 980 (0x3d4), region = 52  ;;  %2111 = vst [vmem:[%s2073_s17 + $0x28] sm:$0xff] (%p2622_p4), %v2110_v60  }
 0x3c8   : > { %2139 = vst [vmem:[%s2073_s17 + $0xa0] sm:$0xff] (%p2622_p4), %v2138_v13  }
 0x3c9   : > { %v2015_v62 = vpop.permute.xlu0 %2014  ;;  %2143 = vst [vmem:[%s2073_s17 + $0xa8] sm:$0xff] (%p2622_p4), %v2142_v14  }
 0x3ca   : > { %2047 = vst.msk [vmem:[%s3980_s14 + $0x3f] sm:$0x1] %vm1071_vm12, %v2015_v62  ;;  %v2114_v56 = vld [vmem:[%s3980_s14 + $0x30] sm:$0xff] (%p2622_p4)  }
 0x3cb   : > { %2437 = vst.msk [vmem:[%s3980_s14 + $0x7f] sm:$0x1] %vm1071_vm12, %v2015_v62 }
 0x3cc   : > { %2115 = vst [vmem:[%s2073_s17 + $0x30] sm:$0xff] %v2114_v56   ;;  %v2146_v61 = vld [vmem:[%s3980_s14 + $0x70] sm:$0xff]  }
 0x3cd   : > { %2147 = vst [vmem:[%s2073_s17 + $0xb0] sm:$0xff] %v2146_v61  }
 0x3d1   : > { %v2118_v22 = vld [vmem:[%s3980_s14 + $0x38] sm:$0xff]  }
 0x3d2   : > { %2119 = vst [vmem:[%s2073_s17 + $0x38] sm:$0xff] %v2118_v22   ;;  %v2150_v39 = vld [vmem:[%s3980_s14 + $0x78] sm:$0xff]  }
 0x3d3   : > { %2151 = vst [vmem:[%s2073_s17 + $0xb8] sm:$0xff] %v2150_v39  }
 0x3d4 PF: > { %p16_p10 = scmp.ge.s32.totalorder %s2612_s4, 4   ;;  %s4425_s22 = smov %s2549_s23 }
 0x3d5   : > { %s4426_s23 = smov %s2620_s27  ;;  %s4427_s24 = smov %s2612_s4 }
 0x3d6   :  { %18 = sbr.rel (!%p16_p10) target bundleno = 6 (0x6), region = 149 }
 0x3db   :  { %2251 = vsyncpa [#allocation5], 1 }
 0x3dc   :  { %2253 = vsyncpa [#allocation5 + $0x1], 1 }
 0x3dd   :  { %2254 = vsyncpa [#allocation7], 1 }

</bundles_post_ra>
